<compile_context>
chip_gen: v7x
topology: tpu7x:2x2x1
jax: 0.10.0
libtpu: 0.0.40
codegen_flags: <defaults>
</compile_context>

<pallas_src>
import numpy as np
import jax
import jax.numpy as jnp
from jax.experimental import pallas as pl
from jax.experimental.pallas import tpu as pltpu

T_KERNEL = 9          # temporal kernel size (standard ST-GCN)
NUM_NODES = 6         # 'mmpose_arms' layout: shoulders, elbows, wrists


def build_arms_adjacency(V=NUM_NODES):
    """Uniform-strategy normalized adjacency (K=1) for the 6-node arm graph."""
    # nodes: 0 L_shoulder, 1 R_shoulder, 2 L_elbow, 3 R_elbow, 4 L_wrist, 5 R_wrist
    edges = [(0, 2), (2, 4), (1, 3), (3, 5)]
    A = np.zeros((V, V), np.float32)
    for i, j in edges:
        A[i, j] = 1.0
        A[j, i] = 1.0
    A = A + np.eye(V, dtype=np.float32)          # hop-0 self links
    D = A.sum(0)
    Dn = np.diag(np.where(D > 0, 1.0 / D, 0.0)).astype(np.float32)
    return (A @ Dn).astype(np.float32)           # normalize_digraph


def make_kernel(NB, T, V, CP, HIDP, Kt):
    """NB samples per grid step; v-major row layout: row = n*T*V + v*T + t."""
    TV = T * V
    NSEG = NB * V                     # padded temporal segments (one per sample x node)
    pad = (Kt - 1) // 2
    PT = T + 2 * pad                  # padded frames per segment
    bf16 = jnp.bfloat16
    f32 = jnp.float32
    W2_OFF = 0
    T1_OFF = HIDP
    T2_OFF = HIDP + Kt * HIDP

    def kernel(x_ref, dbn_ref, mg_ref, w1_ref, wbig_ref, vec_ref, out_ref, ybuf):
        # zero the per-segment temporal-pad rows each step (scratch is uninitialized)
        zpad = jnp.zeros((NSEG, pad, HIDP), f32)
        ybuf[:, pl.ds(0, pad), :] = zpad
        ybuf[:, pl.ds(pad + T, pad), :] = zpad

        Mg = mg_ref[...]                                   # (TV, TV) bf16 = kron(A^T, I_T)
        w1 = w1_ref[...]                                   # (CP, HIDP)  bf16
        vecs = vec_ref[...]                                # (16, HIDP)  f32
        (b1, s1a, h1a, t1b, s1b, h1b,
         b2, s2a, h2a, t2b, s2b, h2b) = [vecs[i:i + 1, :] for i in range(12)]

        def store_padded(y):
            # y: (NB*TV, HIDP) f32 in v-major row order -> interior rows of every padded segment
            ybuf[:, pl.ds(pad, T), :] = y.reshape(NSEG, T, HIDP)

        def temporal_conv(w_off, bias):
            # fused 9-tap temporal conv: per-tap bf16 matmul, f32 accumulation (no im2col copy)
            acc = None
            for k in range(Kt):
                wk = wbig_ref[pl.ds(w_off + k * HIDP, HIDP), :]              # (HIDP, HIDP) bf16
                tap = ybuf[:, pl.ds(k, T), :].reshape(NB * TV, HIDP)         # (NB*TV, HIDP) f32
                part = jnp.dot(tap.astype(bf16), wk, preferred_element_type=f32)
                acc = part if acc is None else acc + part
            return acc + bias

        def graph_mix(y):
            # per-sample block-diagonal node mixing; bf16 MXU inputs, f32 accumulation
            yb = y.astype(bf16)
            rows = [jnp.dot(Mg, yb[n * TV:(n + 1) * TV, :], preferred_element_type=f32)
                    for n in range(NB)]
            return jnp.concatenate(rows, axis=0) if NB > 1 else rows[0]

        # data BN (eval, folded) + block-1 graph mix (reordered before the channel conv:
        # exact by linearity, and shrinks the (TV,TV) matmul output width from HIDP to CP).
        scale = dbn_ref[0]                                 # (TV, CP) f32
        shift = dbn_ref[1]
        mixed = []
        for n in range(NB):
            xn = (x_ref[n] * scale + shift).astype(bf16)   # (TV, CP)
            mixed.append(jnp.dot(Mg, xn, preferred_element_type=f32))
        xg = jnp.concatenate(mixed, axis=0) if NB > 1 else mixed[0]          # (NB*TV, CP) f32

        # ---- block 1 (CP -> HIDP, no residual) ----
        y = jnp.dot(xg.astype(bf16), w1, preferred_element_type=f32) + b1    # 1x1 channel conv
        y = jnp.maximum(y * s1a + h1a, 0.0)                                  # BN + ReLU (f32)
        store_padded(y)
        z = temporal_conv(T1_OFF, t1b)                                       # fused 9-tap conv
        h1 = jnp.maximum(z * s1b + h1b, 0.0)                                 # (NB*TV, HIDP) f32

        # ---- block 2 (HIDP -> HIDP, identity residual) ----
        w2 = wbig_ref[pl.ds(W2_OFF, HIDP), :]                                # loaded where used
        y = jnp.dot(h1.astype(bf16), w2, preferred_element_type=f32) + b2
        y = graph_mix(y)
        y = jnp.maximum(y * s2a + h2a, 0.0)
        store_padded(y)
        z = temporal_conv(T2_OFF, t2b)
        h2 = jnp.maximum(z * s2b + h2b + h1, 0.0)                            # residual + ReLU

        # ---- arm-wise max pooling straight from the value ----
        # v-major rows: node v of sample n is the contiguous block [(n*V+v)*T, (n*V+v+1)*T).
        for n in range(NB):
            def node(v, n=n):
                s = (n * V + v) * T
                return h2[s:s + T, :]                                        # (T, HIDP) f32
            out_ref[n, 0, :, :] = jnp.maximum(jnp.maximum(node(1), node(3)), node(5))
            out_ref[n, 1, :, :] = jnp.maximum(jnp.maximum(node(0), node(2)), node(4))

    return kernel


def init_params(key, cin, hid, V=NUM_NODES, Kt=T_KERNEL):
    ks = jax.random.split(key, 20)
    f32 = jnp.float32

    def nrm(k, shape, scale):
        return (scale * jax.random.normal(k, shape)).astype(f32)

    def bn(k):
        k1, k2 = jax.random.split(k)
        scale = (1.0 + 0.1 * jax.random.normal(k1, (1, hid))).astype(f32)
        shift = (0.05 * jax.random.normal(k2, (1, hid))).astype(f32)
        return scale, shift

    p = {}
    p["dbn_scale"] = (1.0 + 0.1 * jax.random.normal(ks[0], (V, cin))).astype(f32)
    p["dbn_shift"] = (0.05 * jax.random.normal(ks[1], (V, cin))).astype(f32)
    # block 1 (cin -> hid, no residual)
    p["w1"] = nrm(ks[2], (cin, hid), 1.0 / np.sqrt(cin))
    p["b1"] = nrm(ks[3], (1, hid), 0.05)
    p["s1a"], p["h1a"] = bn(ks[4])
    p["t1w"] = nrm(ks[5], (Kt, hid, hid), 1.0 / np.sqrt(Kt * hid))
    p["t1b"] = nrm(ks[6], (1, hid), 0.05)
    p["s1b"], p["h1b"] = bn(ks[7])
    # block 2 (hid -> hid, identity residual)
    p["w2"] = nrm(ks[8], (hid, hid), 1.0 / np.sqrt(hid))
    p["b2"] = nrm(ks[9], (1, hid), 0.05)
    p["s2a"], p["h2a"] = bn(ks[10])
    p["t2w"] = nrm(ks[11], (Kt, hid, hid), 1.0 / np.sqrt(Kt * hid))
    p["t2b"] = nrm(ks[12], (1, hid), 0.05)
    p["s2b"], p["h2b"] = bn(ks[13])
    return p


def _pack_params(p, C, hid, T, V, Kt, CP, HIDP):
    """Pad hidden dim to HIDP (zeros -> padded lanes stay exactly 0 through ReLU/residual) and
    pack the many small operands into a vector table + one stacked bf16 weight slab."""
    f32 = jnp.float32
    bf16 = jnp.bfloat16
    dh = HIDP - hid

    def row(name):                      # (1, hid) -> (1, HIDP)
        return jnp.pad(p[name].astype(f32), ((0, 0), (0, dh)))

    vec_names = ["b1", "s1a", "h1a", "t1b", "s1b", "h1b",
                 "b2", "s2a", "h2a", "t2b", "s2b", "h2b"]
    vecs = jnp.concatenate([row(n) for n in vec_names], axis=0)             # (12, HIDP)
    vecs = jnp.pad(vecs, ((0, 16 - vecs.shape[0]), (0, 0)))                 # (16, HIDP) f32

    w1p = jnp.pad(p["w1"].astype(f32), ((0, CP - C), (0, dh))).astype(bf16)  # (CP, HIDP) bf16
    w2p = jnp.pad(p["w2"].astype(f32), ((0, dh), (0, dh)))
    t1w = jnp.pad(p["t1w"].astype(f32), ((0, 0), (0, dh), (0, dh))).reshape(Kt * HIDP, HIDP)
    t2w = jnp.pad(p["t2w"].astype(f32), ((0, 0), (0, dh), (0, dh))).reshape(Kt * HIDP, HIDP)
    wbig = jnp.concatenate([w2p, t1w, t2w], axis=0).astype(bf16)            # ((1+2Kt)*HIDP, HIDP)

    # folded data-BN, v-major rows (row = v*T + t)
    dbn_s = jnp.pad(jnp.repeat(p["dbn_scale"].astype(f32), T, axis=0), ((0, 0), (0, CP - C)))
    dbn_b = jnp.pad(jnp.repeat(p["dbn_shift"].astype(f32), T, axis=0), ((0, 0), (0, CP - C)))
    dbn = jnp.stack([dbn_s, dbn_b], axis=0)                                 # (2, TV, CP) f32
    return w1p, wbig, vecs, dbn


def arms_extractor_forward(x, p, A_norm, Kt=T_KERNEL):
    """Pallas forward. x: (N, T, V, C) float32 (same layout the PyTorch module receives)."""
    N, T, V, C = x.shape
    hid = p["w1"].shape[1]
    TV = T * V
    pad = (Kt - 1) // 2
    PT = T + 2 * pad
    HIDP = ((hid + 127) // 128) * 128            # lane-dense hidden width
    CP = ((C + 7) // 8) * 8                      # small channel pad

    # TODO(synk): pad/mask the time axis for clips whose T is not a multiple of 8.
    assert T % 8 == 0, "T must be a multiple of 8 for aligned segment tiling"
    # TODO(synk): for very long clips switch the graph mix to a per-frame formulation; the dense
    # kron(A^T, I_T) operand is O(T^2 V^2) and only acceptable because TV is small here.
    assert TV <= 1024, "dense (TV,TV) graph-mix operand would be too large (see TODO above)"

    # lens = (x != 0).all(-1).all(-1).sum(1) -- kept for parity with the PyTorch module.
    # TODO(synk): lens is consumed only inside the (unavailable) reference STGCN source; it is
    # computed but unused here, consistent with eval-mode semantics of this synthetic STGCN.
    lens = jnp.sum(jnp.all(x != 0.0, axis=(2, 3)).astype(jnp.int32), axis=1)

    # adaptive batch tiling: aim for M = NB*TV ~ 256-512 rows per step (MXU row utilization),
    # more grid steps so the x-input DMA pipelines behind compute; NB must divide N.
    target_rows = 512
    nb_cap = max(1, target_rows // TV)
    NB = 1
    for d in range(1, N + 1):
        if N % d == 0 and d <= nb_cap:
            NB = d
    grid_n = N // NB
    NSEG = NB * V

    # v-major row layout (row = v*T + t): per-node blocks are contiguous -> scratch-free pooling.
    xp = jnp.pad(jnp.transpose(x, (0, 2, 1, 3)).reshape(N, TV, C).astype(jnp.float32),
                 ((0, 0), (0, 0), (0, CP - C)))
    Mg = jnp.asarray(np.kron(np.asarray(A_norm, np.float32).T,
                             np.eye(T, dtype=np.float32))).astype(jnp.bfloat16)
    w1p, wbig, vecs, dbn = _pack_params(p, C, hid, T, V, Kt, CP, HIDP)

    # explicit VMEM budget (invariant operands + pipelined buffers + scratch + live values)
    inv_bytes = dbn.size * 4 + Mg.size * 2 + w1p.size * 2 + wbig.size * 2 + vecs.size * 4
    x_bytes = 2 * NB * TV * CP * 4
    out_bytes = 2 * NB * 2 * T * HIDP * 4
    ybuf_bytes = NSEG * PT * HIDP * 4
    live_bytes = 8 * NB * TV * HIDP * 4
    est = inv_bytes + x_bytes + out_bytes + ybuf_bytes + live_bytes
    if est > 56 * 1024 * 1024:
        # TODO(synk): add a T-tiled grid path (carrying a Kt-1 frame halo) for very long clips.
        raise ValueError(f"per-step VMEM working set ~{est >> 20} MiB exceeds budget; "
                         "reduce T/hid or add T tiling")
    vmem_limit = int(min(64 << 20, max(32 << 20, int(1.25 * est))))

    vmem = pltpu.MemorySpace.VMEM
    out = pl.pallas_call(
        make_kernel(NB, T, V, CP, HIDP, Kt),
        grid=(grid_n,),
        in_specs=[
            pl.BlockSpec((NB, TV, CP), lambda g: (g, 0, 0)),   # x: pipelined over the batch
            pl.BlockSpec(memory_space=vmem),                   # dbn   } grid-invariant operands:
            pl.BlockSpec(memory_space=vmem),                   # Mg    } whole-array, resident in
            pl.BlockSpec(memory_space=vmem),                   # w1    } VMEM, single-buffered
            pl.BlockSpec(memory_space=vmem),                   # wbig  }
            pl.BlockSpec(memory_space=vmem),                   # vecs  }
        ],
        out_specs=pl.BlockSpec((NB, 2, T, HIDP), lambda g: (g, 0, 0, 0)),
        out_shape=jax.ShapeDtypeStruct((N, 2, T, HIDP), jnp.float32),
        scratch_shapes=[pltpu.VMEM((NSEG, PT, HIDP), jnp.float32)],   # zero-padded temporal buf
        compiler_params=pltpu.CompilerParams(
            dimension_semantics=("parallel",),
            vmem_limit_bytes=vmem_limit),
    )(xp, dbn, Mg, w1p, wbig, vecs)

    rarm_k = out[:, 0, :, :hid]                  # (N, T, hid), padded lanes dropped
    larm_k = out[:, 1, :, :hid]
    # to PyTorch output layout: (N, hid, T, 1)
    rarm_t = jnp.transpose(rarm_k, (0, 2, 1))[..., None]
    larm_t = jnp.transpose(larm_k, (0, 2, 1))[..., None]
    return (rarm_t, larm_t), (rarm_k, larm_k), lens


def reference_forward(x, p, A_norm, Kt=T_KERNEL):
    """Plain-JAX reference of the same synthetic STGCN + arm pooling."""
    N, T, V, C = x.shape
    A = jnp.asarray(A_norm)
    h = x.astype(jnp.float32)
    h = h * p["dbn_scale"][None, None] + p["dbn_shift"][None, None]
    pad = (Kt - 1) // 2

    def block(h, w, b, sa, ha, tw, tb, sb, hb, residual):
        res = h if residual else None
        y = jnp.einsum("ntvc,cd->ntvd", h, w) + b.reshape(1, 1, 1, -1)
        y = jnp.einsum("ntvd,vw->ntwd", y, A)
        y = y * sa.reshape(1, 1, 1, -1) + ha.reshape(1, 1, 1, -1)
        y = jnp.maximum(y, 0.0)
        yp = jnp.pad(y, ((0, 0), (pad, pad), (0, 0), (0, 0)))
        acc = jnp.zeros((N, T, V, y.shape[-1]), jnp.float32)
        for k in range(Kt):
            acc = acc + jnp.einsum("ntvd,de->ntve", yp[:, k:k + T], tw[k])
        z = acc + tb.reshape(1, 1, 1, -1)
        z = z * sb.reshape(1, 1, 1, -1) + hb.reshape(1, 1, 1, -1)
        if residual:
            z = z + res
        return jnp.maximum(z, 0.0)

    h = block(h, p["w1"], p["b1"], p["s1a"], p["h1a"], p["t1w"], p["t1b"], p["s1b"], p["h1b"], False)
    h = block(h, p["w2"], p["b2"], p["s2a"], p["h2a"], p["t2w"], p["t2b"], p["s2b"], p["h2b"], True)
    rarm = jnp.max(h[:, :, (1, 3, 5), :], axis=2)   # (N, T, hid)
    larm = jnp.max(h[:, :, (0, 2, 4), :], axis=2)
    return rarm, larm


if __name__ == "__main__":
    N, T, V, C, HID = 2, 8, NUM_NODES, 2, 32
    key = jax.random.PRNGKey(0)
    kx, kp = jax.random.split(key)
    x = jax.random.normal(kx, (N, T, V, C), dtype=jnp.float32)
    x = x.at[0, T - 2:].set(0.0)     # zero-padded trailing frames -> exercises lens
    params = init_params(kp, C, HID)
    A_norm = build_arms_adjacency(V)

    (rarm, larm), (rarm_k, larm_k), lens = arms_extractor_forward(x, params, A_norm)
    jax.block_until_ready((rarm, larm, lens))

    rarm_ref, larm_ref = reference_forward(x, params, A_norm)
    # tolerance accommodates bf16 MXU inputs (f32 accumulation) for all weight / graph matmuls
    np.testing.assert_allclose(np.asarray(rarm_k), np.asarray(rarm_ref), rtol=5e-2, atol=5e-2)
    np.testing.assert_allclose(np.asarray(larm_k), np.asarray(larm_ref), rtol=5e-2, atol=5e-2)
    assert rarm.shape == (N, HID, T, 1) and larm.shape == (N, HID, T, 1)
    print("KERNEL_OK")
</pallas_src>

<mosaic_0001>
module attributes {stable_mosaic.version = 11 : i64} {
  func.func @kernel(%arg0: i32, %arg1: memref<2x48x8xf32, #tpu.memory_space<vmem>>, %arg2: memref<2x48x8xf32, #tpu.memory_space<vmem>>, %arg3: memref<48x48xbf16, #tpu.memory_space<vmem>>, %arg4: memref<8x128xbf16, #tpu.memory_space<vmem>>, %arg5: memref<2432x128xbf16, #tpu.memory_space<vmem>>, %arg6: memref<16x128xf32, #tpu.memory_space<vmem>>, %arg7: memref<2x2x8x128xf32, #tpu.memory_space<vmem>>, %arg8: memref<12x16x128xf32, #tpu.memory_space<vmem>>) attributes {dimension_semantics = [#tpu.dimension_semantics<parallel>], iteration_bounds = array<i64: 1>, scalar_prefetch = 0 : i64, scratch_operands = 1 : i64, tpu.core_type = #tpu.core_type<tc>, window_params = [{transform_indices = @transform_0, window_bounds = array<i64: 2, 48, 8>}, {pipeline_mode = #tpu.pipeline_mode<synchronous>, transform_indices = @transform_1, window_bounds = array<i64: 2, 48, 8>}, {pipeline_mode = #tpu.pipeline_mode<synchronous>, transform_indices = @transform_2, window_bounds = array<i64: 48, 48>}, {pipeline_mode = #tpu.pipeline_mode<synchronous>, transform_indices = @transform_3, window_bounds = array<i64: 8, 128>}, {pipeline_mode = #tpu.pipeline_mode<synchronous>, transform_indices = @transform_4, window_bounds = array<i64: 2432, 128>}, {pipeline_mode = #tpu.pipeline_mode<synchronous>, transform_indices = @transform_5, window_bounds = array<i64: 16, 128>}, {transform_indices = @transform_6, window_bounds = array<i64: 2, 2, 8, 128>}]} {
    %cst = arith.constant 0.000000e+00 : f32
    %0 = vector.broadcast %cst : f32 to vector<12x4x128xf32>
    %c0 = arith.constant 0 : index
    %c0_0 = arith.constant 0 : index
    %c0_1 = arith.constant 0 : index
    %1 = vector.load %arg8[%c0, %c0_0, %c0_1] : memref<12x16x128xf32, #tpu.memory_space<vmem>>, vector<12x4x128xf32>
    tpu.vector_store %arg8[%c0, %c0_0, %c0_1], %0 {strides = array<i32>} : memref<12x16x128xf32, #tpu.memory_space<vmem>>, vector<12x4x128xf32>,
    %c0_2 = arith.constant 0 : index
    %c12 = arith.constant 12 : index
    %c0_3 = arith.constant 0 : index
    %2 = vector.load %arg8[%c0_2, %c12, %c0_3] : memref<12x16x128xf32, #tpu.memory_space<vmem>>, vector<12x4x128xf32>
    tpu.vector_store %arg8[%c0_2, %c12, %c0_3], %0 {strides = array<i32>} : memref<12x16x128xf32, #tpu.memory_space<vmem>>, vector<12x4x128xf32>,
    %c0_4 = arith.constant 0 : index
    %c0_5 = arith.constant 0 : index
    %3 = vector.load %arg3[%c0_4, %c0_5] : memref<48x48xbf16, #tpu.memory_space<vmem>>, vector<48x48xbf16>
    %c0_6 = arith.constant 0 : index
    %c0_7 = arith.constant 0 : index
    %4 = vector.load %arg4[%c0_6, %c0_7] : memref<8x128xbf16, #tpu.memory_space<vmem>>, vector<8x128xbf16>
    %c0_8 = arith.constant 0 : index
    %c0_9 = arith.constant 0 : index
    %5 = vector.load %arg6[%c0_8, %c0_9] : memref<16x128xf32, #tpu.memory_space<vmem>>, vector<16x128xf32>
    %6 = vector.extract_strided_slice %5 {offsets = [0, 0], sizes = [1, 128], strides = [1, 1]} : vector<16x128xf32> to vector<1x128xf32>
    %7 = vector.extract_strided_slice %5 {offsets = [1, 0], sizes = [1, 128], strides = [1, 1]} : vector<16x128xf32> to vector<1x128xf32>
    %8 = vector.extract_strided_slice %5 {offsets = [2, 0], sizes = [1, 128], strides = [1, 1]} : vector<16x128xf32> to vector<1x128xf32>
    %9 = vector.extract_strided_slice %5 {offsets = [3, 0], sizes = [1, 128], strides = [1, 1]} : vector<16x128xf32> to vector<1x128xf32>
    %10 = vector.extract_strided_slice %5 {offsets = [4, 0], sizes = [1, 128], strides = [1, 1]} : vector<16x128xf32> to vector<1x128xf32>
    %11 = vector.extract_strided_slice %5 {offsets = [5, 0], sizes = [1, 128], strides = [1, 1]} : vector<16x128xf32> to vector<1x128xf32>
    %12 = vector.extract_strided_slice %5 {offsets = [6, 0], sizes = [1, 128], strides = [1, 1]} : vector<16x128xf32> to vector<1x128xf32>
    %13 = vector.extract_strided_slice %5 {offsets = [7, 0], sizes = [1, 128], strides = [1, 1]} : vector<16x128xf32> to vector<1x128xf32>
    %14 = vector.extract_strided_slice %5 {offsets = [8, 0], sizes = [1, 128], strides = [1, 1]} : vector<16x128xf32> to vector<1x128xf32>
    %15 = vector.extract_strided_slice %5 {offsets = [9, 0], sizes = [1, 128], strides = [1, 1]} : vector<16x128xf32> to vector<1x128xf32>
    %16 = vector.extract_strided_slice %5 {offsets = [10, 0], sizes = [1, 128], strides = [1, 1]} : vector<16x128xf32> to vector<1x128xf32>
    %17 = vector.extract_strided_slice %5 {offsets = [11, 0], sizes = [1, 128], strides = [1, 1]} : vector<16x128xf32> to vector<1x128xf32>
    %c0_10 = arith.constant 0 : index
    %c0_11 = arith.constant 0 : index
    %c0_12 = arith.constant 0 : index
    %18 = vector.load %arg2[%c0_10, %c0_11, %c0_12] : memref<2x48x8xf32, #tpu.memory_space<vmem>>, vector<1x48x8xf32>
    %19 = vector.shape_cast %18 : vector<1x48x8xf32> to vector<48x8xf32>
    %c1 = arith.constant 1 : index
    %c0_13 = arith.constant 0 : index
    %c0_14 = arith.constant 0 : index
    %20 = vector.load %arg2[%c1, %c0_13, %c0_14] : memref<2x48x8xf32, #tpu.memory_space<vmem>>, vector<1x48x8xf32>
    %21 = vector.shape_cast %20 : vector<1x48x8xf32> to vector<48x8xf32>
    %c0_15 = arith.constant 0 : index
    %c0_16 = arith.constant 0 : index
    %c0_17 = arith.constant 0 : index
    %22 = vector.load %arg1[%c0_15, %c0_16, %c0_17] : memref<2x48x8xf32, #tpu.memory_space<vmem>>, vector<1x48x8xf32>
    %23 = vector.shape_cast %22 : vector<1x48x8xf32> to vector<48x8xf32>
    %24 = arith.mulf %23, %19 : vector<48x8xf32>
    %25 = arith.addf %24, %21 : vector<48x8xf32>
    %26 = arith.truncf %25 : vector<48x8xf32> to vector<48x8xbf16>
    %cst_18 = arith.constant dense<0.000000e+00> : vector<48x8xf32>
    %27 = tpu.matmul %3, %26, %cst_18 {dimension_numbers = #tpu.dot_dimension_numbers<[1], [0], [0], [1], [0, 0, 1, 1], [], []>} : vector<48x48xbf16>, vector<48x8xbf16>, vector<48x8xf32> -> vector<48x8xf32>
    %c1_19 = arith.constant 1 : index
    %c0_20 = arith.constant 0 : index
    %c0_21 = arith.constant 0 : index
    %28 = vector.load %arg1[%c1_19, %c0_20, %c0_21] : memref<2x48x8xf32, #tpu.memory_space<vmem>>, vector<1x48x8xf32>
    %29 = vector.shape_cast %28 : vector<1x48x8xf32> to vector<48x8xf32>
    %30 = arith.mulf %29, %19 : vector<48x8xf32>
    %31 = arith.addf %30, %21 : vector<48x8xf32>
    %32 = arith.truncf %31 : vector<48x8xf32> to vector<48x8xbf16>
    %cst_22 = arith.constant dense<0.000000e+00> : vector<48x8xf32>
    %33 = tpu.matmul %3, %32, %cst_22 {dimension_numbers = #tpu.dot_dimension_numbers<[1], [0], [0], [1], [0, 0, 1, 1], [], []>} : vector<48x48xbf16>, vector<48x8xbf16>, vector<48x8xf32> -> vector<48x8xf32>
    %34 = tpu.concatenate %27, %33 in 0 : vector<48x8xf32>, vector<48x8xf32> -> vector<96x8xf32>
    %35 = arith.truncf %34 : vector<96x8xf32> to vector<96x8xbf16>
    %cst_23 = arith.constant dense<0.000000e+00> : vector<96x128xf32>
    %36 = tpu.matmul %35, %4, %cst_23 {dimension_numbers = #tpu.dot_dimension_numbers<[1], [0], [0], [1], [0, 0, 1, 1], [], []>} : vector<96x8xbf16>, vector<8x128xbf16>, vector<96x128xf32> -> vector<96x128xf32>
    %37 = vector.broadcast %6 : vector<1x128xf32> to vector<96x128xf32>
    %38 = arith.addf %36, %37 : vector<96x128xf32>
    %39 = vector.broadcast %7 : vector<1x128xf32> to vector<96x128xf32>
    %40 = arith.mulf %38, %39 : vector<96x128xf32>
    %41 = vector.broadcast %8 : vector<1x128xf32> to vector<96x128xf32>
    %42 = arith.addf %40, %41 : vector<96x128xf32>
    %cst_24 = arith.constant 0.000000e+00 : f32
    %43 = vector.broadcast %cst_24 : f32 to vector<96x128xf32>
    %44 = arith.maximumf %42, %43 : vector<96x128xf32>
    %45 = vector.shape_cast %44 : vector<96x128xf32> to vector<12x8x128xf32>
    %c0_25 = arith.constant 0 : index
    %c4 = arith.constant 4 : index
    %c0_26 = arith.constant 0 : index
    %46 = vector.load %arg8[%c0_25, %c4, %c0_26] : memref<12x16x128xf32, #tpu.memory_space<vmem>>, vector<12x8x128xf32>
    tpu.vector_store %arg8[%c0_25, %c4, %c0_26], %45 {strides = array<i32>} : memref<12x16x128xf32, #tpu.memory_space<vmem>>, vector<12x8x128xf32>,
    %c128 = arith.constant 128 : index
    %c0_27 = arith.constant 0 : index
    %47 = vector.load %arg5[%c128, %c0_27] : memref<2432x128xbf16, #tpu.memory_space<vmem>>, vector<128x128xbf16>
    %c0_28 = arith.constant 0 : index
    %c0_29 = arith.constant 0 : index
    %c0_30 = arith.constant 0 : index
    %48 = vector.load %arg8[%c0_28, %c0_29, %c0_30] : memref<12x16x128xf32, #tpu.memory_space<vmem>>, vector<12x8x128xf32>
    %49 = vector.shape_cast %48 : vector<12x8x128xf32> to vector<96x128xf32>
    %50 = arith.truncf %49 : vector<96x128xf32> to vector<96x128xbf16>
    %cst_31 = arith.constant dense<0.000000e+00> : vector<96x128xf32>
    %51 = tpu.matmul %50, %47, %cst_31 {dimension_numbers = #tpu.dot_dimension_numbers<[1], [0], [0], [1], [0, 0, 1, 1], [], []>} : vector<96x128xbf16>, vector<128x128xbf16>, vector<96x128xf32> -> vector<96x128xf32>
    %c256 = arith.constant 256 : index
    %c0_32 = arith.constant 0 : index
    %52 = vector.load %arg5[%c256, %c0_32] : memref<2432x128xbf16, #tpu.memory_space<vmem>>, vector<128x128xbf16>
    %c0_33 = arith.constant 0 : index
    %c1_34 = arith.constant 1 : index
    %c0_35 = arith.constant 0 : index
    %53 = vector.load %arg8[%c0_33, %c1_34, %c0_35] : memref<12x16x128xf32, #tpu.memory_space<vmem>>, vector<12x8x128xf32>
    %54 = vector.shape_cast %53 : vector<12x8x128xf32> to vector<96x128xf32>
    %55 = arith.truncf %54 : vector<96x128xf32> to vector<96x128xbf16>
    %cst_36 = arith.constant dense<0.000000e+00> : vector<96x128xf32>
    %56 = tpu.matmul %55, %52, %cst_36 {dimension_numbers = #tpu.dot_dimension_numbers<[1], [0], [0], [1], [0, 0, 1, 1], [], []>} : vector<96x128xbf16>, vector<128x128xbf16>, vector<96x128xf32> -> vector<96x128xf32>
    %57 = arith.addf %51, %56 : vector<96x128xf32>
    %c384 = arith.constant 384 : index
    %c0_37 = arith.constant 0 : index
    %58 = vector.load %arg5[%c384, %c0_37] : memref<2432x128xbf16, #tpu.memory_space<vmem>>, vector<128x128xbf16>
    %c0_38 = arith.constant 0 : index
    %c2 = arith.constant 2 : index
    %c0_39 = arith.constant 0 : index
    %59 = vector.load %arg8[%c0_38, %c2, %c0_39] : memref<12x16x128xf32, #tpu.memory_space<vmem>>, vector<12x8x128xf32>
    %60 = vector.shape_cast %59 : vector<12x8x128xf32> to vector<96x128xf32>
    %61 = arith.truncf %60 : vector<96x128xf32> to vector<96x128xbf16>
    %cst_40 = arith.constant dense<0.000000e+00> : vector<96x128xf32>
    %62 = tpu.matmul %61, %58, %cst_40 {dimension_numbers = #tpu.dot_dimension_numbers<[1], [0], [0], [1], [0, 0, 1, 1], [], []>} : vector<96x128xbf16>, vector<128x128xbf16>, vector<96x128xf32> -> vector<96x128xf32>
    %63 = arith.addf %57, %62 : vector<96x128xf32>
    %c512 = arith.constant 512 : index
    %c0_41 = arith.constant 0 : index
    %64 = vector.load %arg5[%c512, %c0_41] : memref<2432x128xbf16, #tpu.memory_space<vmem>>, vector<128x128xbf16>
    %c0_42 = arith.constant 0 : index
    %c3 = arith.constant 3 : index
    %c0_43 = arith.constant 0 : index
    %65 = vector.load %arg8[%c0_42, %c3, %c0_43] : memref<12x16x128xf32, #tpu.memory_space<vmem>>, vector<12x8x128xf32>
    %66 = vector.shape_cast %65 : vector<12x8x128xf32> to vector<96x128xf32>
    %67 = arith.truncf %66 : vector<96x128xf32> to vector<96x128xbf16>
    %cst_44 = arith.constant dense<0.000000e+00> : vector<96x128xf32>
    %68 = tpu.matmul %67, %64, %cst_44 {dimension_numbers = #tpu.dot_dimension_numbers<[1], [0], [0], [1], [0, 0, 1, 1], [], []>} : vector<96x128xbf16>, vector<128x128xbf16>, vector<96x128xf32> -> vector<96x128xf32>
    %69 = arith.addf %63, %68 : vector<96x128xf32>
    %c640 = arith.constant 640 : index
    %c0_45 = arith.constant 0 : index
    %70 = vector.load %arg5[%c640, %c0_45] : memref<2432x128xbf16, #tpu.memory_space<vmem>>, vector<128x128xbf16>
    %c0_46 = arith.constant 0 : index
    %c4_47 = arith.constant 4 : index
    %c0_48 = arith.constant 0 : index
    %71 = vector.load %arg8[%c0_46, %c4_47, %c0_48] : memref<12x16x128xf32, #tpu.memory_space<vmem>>, vector<12x8x128xf32>
    %72 = vector.shape_cast %71 : vector<12x8x128xf32> to vector<96x128xf32>
    %73 = arith.truncf %72 : vector<96x128xf32> to vector<96x128xbf16>
    %cst_49 = arith.constant dense<0.000000e+00> : vector<96x128xf32>
    %74 = tpu.matmul %73, %70, %cst_49 {dimension_numbers = #tpu.dot_dimension_numbers<[1], [0], [0], [1], [0, 0, 1, 1], [], []>} : vector<96x128xbf16>, vector<128x128xbf16>, vector<96x128xf32> -> vector<96x128xf32>
    %75 = arith.addf %69, %74 : vector<96x128xf32>
    %c768 = arith.constant 768 : index
    %c0_50 = arith.constant 0 : index
    %76 = vector.load %arg5[%c768, %c0_50] : memref<2432x128xbf16, #tpu.memory_space<vmem>>, vector<128x128xbf16>
    %c0_51 = arith.constant 0 : index
    %c5 = arith.constant 5 : index
    %c0_52 = arith.constant 0 : index
    %77 = vector.load %arg8[%c0_51, %c5, %c0_52] : memref<12x16x128xf32, #tpu.memory_space<vmem>>, vector<12x8x128xf32>
    %78 = vector.shape_cast %77 : vector<12x8x128xf32> to vector<96x128xf32>
    %79 = arith.truncf %78 : vector<96x128xf32> to vector<96x128xbf16>
    %cst_53 = arith.constant dense<0.000000e+00> : vector<96x128xf32>
    %80 = tpu.matmul %79, %76, %cst_53 {dimension_numbers = #tpu.dot_dimension_numbers<[1], [0], [0], [1], [0, 0, 1, 1], [], []>} : vector<96x128xbf16>, vector<128x128xbf16>, vector<96x128xf32> -> vector<96x128xf32>
    %81 = arith.addf %75, %80 : vector<96x128xf32>
    %c896 = arith.constant 896 : index
    %c0_54 = arith.constant 0 : index
    %82 = vector.load %arg5[%c896, %c0_54] : memref<2432x128xbf16, #tpu.memory_space<vmem>>, vector<128x128xbf16>
    %c0_55 = arith.constant 0 : index
    %c6 = arith.constant 6 : index
    %c0_56 = arith.constant 0 : index
    %83 = vector.load %arg8[%c0_55, %c6, %c0_56] : memref<12x16x128xf32, #tpu.memory_space<vmem>>, vector<12x8x128xf32>
    %84 = vector.shape_cast %83 : vector<12x8x128xf32> to vector<96x128xf32>
    %85 = arith.truncf %84 : vector<96x128xf32> to vector<96x128xbf16>
    %cst_57 = arith.constant dense<0.000000e+00> : vector<96x128xf32>
    %86 = tpu.matmul %85, %82, %cst_57 {dimension_numbers = #tpu.dot_dimension_numbers<[1], [0], [0], [1], [0, 0, 1, 1], [], []>} : vector<96x128xbf16>, vector<128x128xbf16>, vector<96x128xf32> -> vector<96x128xf32>
    %87 = arith.addf %81, %86 : vector<96x128xf32>
    %c1024 = arith.constant 1024 : index
    %c0_58 = arith.constant 0 : index
    %88 = vector.load %arg5[%c1024, %c0_58] : memref<2432x128xbf16, #tpu.memory_space<vmem>>, vector<128x128xbf16>
    %c0_59 = arith.constant 0 : index
    %c7 = arith.constant 7 : index
    %c0_60 = arith.constant 0 : index
    %89 = vector.load %arg8[%c0_59, %c7, %c0_60] : memref<12x16x128xf32, #tpu.memory_space<vmem>>, vector<12x8x128xf32>
    %90 = vector.shape_cast %89 : vector<12x8x128xf32> to vector<96x128xf32>
    %91 = arith.truncf %90 : vector<96x128xf32> to vector<96x128xbf16>
    %cst_61 = arith.constant dense<0.000000e+00> : vector<96x128xf32>
    %92 = tpu.matmul %91, %88, %cst_61 {dimension_numbers = #tpu.dot_dimension_numbers<[1], [0], [0], [1], [0, 0, 1, 1], [], []>} : vector<96x128xbf16>, vector<128x128xbf16>, vector<96x128xf32> -> vector<96x128xf32>
    %93 = arith.addf %87, %92 : vector<96x128xf32>
    %c1152 = arith.constant 1152 : index
    %c0_62 = arith.constant 0 : index
    %94 = vector.load %arg5[%c1152, %c0_62] : memref<2432x128xbf16, #tpu.memory_space<vmem>>, vector<128x128xbf16>
    %c0_63 = arith.constant 0 : index
    %c8 = arith.constant 8 : index
    %c0_64 = arith.constant 0 : index
    %95 = vector.load %arg8[%c0_63, %c8, %c0_64] : memref<12x16x128xf32, #tpu.memory_space<vmem>>, vector<12x8x128xf32>
    %96 = vector.shape_cast %95 : vector<12x8x128xf32> to vector<96x128xf32>
    %97 = arith.truncf %96 : vector<96x128xf32> to vector<96x128xbf16>
    %cst_65 = arith.constant dense<0.000000e+00> : vector<96x128xf32>
    %98 = tpu.matmul %97, %94, %cst_65 {dimension_numbers = #tpu.dot_dimension_numbers<[1], [0], [0], [1], [0, 0, 1, 1], [], []>} : vector<96x128xbf16>, vector<128x128xbf16>, vector<96x128xf32> -> vector<96x128xf32>
    %99 = arith.addf %93, %98 : vector<96x128xf32>
    %100 = vector.broadcast %9 : vector<1x128xf32> to vector<96x128xf32>
    %101 = arith.addf %99, %100 : vector<96x128xf32>
    %102 = vector.broadcast %10 : vector<1x128xf32> to vector<96x128xf32>
    %103 = arith.mulf %101, %102 : vector<96x128xf32>
    %104 = vector.broadcast %11 : vector<1x128xf32> to vector<96x128xf32>
    %105 = arith.addf %103, %104 : vector<96x128xf32>
    %cst_66 = arith.constant 0.000000e+00 : f32
    %106 = vector.broadcast %cst_66 : f32 to vector<96x128xf32>
    %107 = arith.maximumf %105, %106 : vector<96x128xf32>
    %c0_67 = arith.constant 0 : index
    %c0_68 = arith.constant 0 : index
    %108 = vector.load %arg5[%c0_67, %c0_68] : memref<2432x128xbf16, #tpu.memory_space<vmem>>, vector<128x128xbf16>
    %109 = arith.truncf %107 : vector<96x128xf32> to vector<96x128xbf16>
    %cst_69 = arith.constant dense<0.000000e+00> : vector<96x128xf32>
    %110 = tpu.matmul %109, %108, %cst_69 {dimension_numbers = #tpu.dot_dimension_numbers<[1], [0], [0], [1], [0, 0, 1, 1], [], []>} : vector<96x128xbf16>, vector<128x128xbf16>, vector<96x128xf32> -> vector<96x128xf32>
    %111 = vector.broadcast %12 : vector<1x128xf32> to vector<96x128xf32>
    %112 = arith.addf %110, %111 : vector<96x128xf32>
    %113 = arith.truncf %112 : vector<96x128xf32> to vector<96x128xbf16>
    %114 = vector.extract_strided_slice %113 {offsets = [0, 0], sizes = [48, 128], strides = [1, 1]} : vector<96x128xbf16> to vector<48x128xbf16>
    %cst_70 = arith.constant dense<0.000000e+00> : vector<48x128xf32>
    %115 = tpu.matmul %3, %114, %cst_70 {dimension_numbers = #tpu.dot_dimension_numbers<[1], [0], [0], [1], [0, 0, 1, 1], [], []>} : vector<48x48xbf16>, vector<48x128xbf16>, vector<48x128xf32> -> vector<48x128xf32>
    %116 = vector.extract_strided_slice %113 {offsets = [48, 0], sizes = [48, 128], strides = [1, 1]} : vector<96x128xbf16> to vector<48x128xbf16>
    %cst_71 = arith.constant dense<0.000000e+00> : vector<48x128xf32>
    %117 = tpu.matmul %3, %116, %cst_71 {dimension_numbers = #tpu.dot_dimension_numbers<[1], [0], [0], [1], [0, 0, 1, 1], [], []>} : vector<48x48xbf16>, vector<48x128xbf16>, vector<48x128xf32> -> vector<48x128xf32>
    %118 = tpu.concatenate %115, %117 in 0 : vector<48x128xf32>, vector<48x128xf32> -> vector<96x128xf32>
    %119 = vector.broadcast %13 : vector<1x128xf32> to vector<96x128xf32>
    %120 = arith.mulf %118, %119 : vector<96x128xf32>
    %121 = vector.broadcast %14 : vector<1x128xf32> to vector<96x128xf32>
    %122 = arith.addf %120, %121 : vector<96x128xf32>
    %cst_72 = arith.constant 0.000000e+00 : f32
    %123 = vector.broadcast %cst_72 : f32 to vector<96x128xf32>
    %124 = arith.maximumf %122, %123 : vector<96x128xf32>
    %125 = vector.shape_cast %124 : vector<96x128xf32> to vector<12x8x128xf32>
    %c0_73 = arith.constant 0 : index
    %c4_74 = arith.constant 4 : index
    %c0_75 = arith.constant 0 : index
    %126 = vector.load %arg8[%c0_73, %c4_74, %c0_75] : memref<12x16x128xf32, #tpu.memory_space<vmem>>, vector<12x8x128xf32>
    tpu.vector_store %arg8[%c0_73, %c4_74, %c0_75], %125 {strides = array<i32>} : memref<12x16x128xf32, #tpu.memory_space<vmem>>, vector<12x8x128xf32>,
    %c1280 = arith.constant 1280 : index
    %c0_76 = arith.constant 0 : index
    %127 = vector.load %arg5[%c1280, %c0_76] : memref<2432x128xbf16, #tpu.memory_space<vmem>>, vector<128x128xbf16>
    %c0_77 = arith.constant 0 : index
    %c0_78 = arith.constant 0 : index
    %c0_79 = arith.constant 0 : index
    %128 = vector.load %arg8[%c0_77, %c0_78, %c0_79] : memref<12x16x128xf32, #tpu.memory_space<vmem>>, vector<12x8x128xf32>
    %129 = vector.shape_cast %128 : vector<12x8x128xf32> to vector<96x128xf32>
    %130 = arith.truncf %129 : vector<96x128xf32> to vector<96x128xbf16>
    %cst_80 = arith.constant dense<0.000000e+00> : vector<96x128xf32>
    %131 = tpu.matmul %130, %127, %cst_80 {dimension_numbers = #tpu.dot_dimension_numbers<[1], [0], [0], [1], [0, 0, 1, 1], [], []>} : vector<96x128xbf16>, vector<128x128xbf16>, vector<96x128xf32> -> vector<96x128xf32>
    %c1408 = arith.constant 1408 : index
    %c0_81 = arith.constant 0 : index
    %132 = vector.load %arg5[%c1408, %c0_81] : memref<2432x128xbf16, #tpu.memory_space<vmem>>, vector<128x128xbf16>
    %c0_82 = arith.constant 0 : index
    %c1_83 = arith.constant 1 : index
    %c0_84 = arith.constant 0 : index
    %133 = vector.load %arg8[%c0_82, %c1_83, %c0_84] : memref<12x16x128xf32, #tpu.memory_space<vmem>>, vector<12x8x128xf32>
    %134 = vector.shape_cast %133 : vector<12x8x128xf32> to vector<96x128xf32>
    %135 = arith.truncf %134 : vector<96x128xf32> to vector<96x128xbf16>
    %cst_85 = arith.constant dense<0.000000e+00> : vector<96x128xf32>
    %136 = tpu.matmul %135, %132, %cst_85 {dimension_numbers = #tpu.dot_dimension_numbers<[1], [0], [0], [1], [0, 0, 1, 1], [], []>} : vector<96x128xbf16>, vector<128x128xbf16>, vector<96x128xf32> -> vector<96x128xf32>
    %137 = arith.addf %131, %136 : vector<96x128xf32>
    %c1536 = arith.constant 1536 : index
    %c0_86 = arith.constant 0 : index
    %138 = vector.load %arg5[%c1536, %c0_86] : memref<2432x128xbf16, #tpu.memory_space<vmem>>, vector<128x128xbf16>
    %c0_87 = arith.constant 0 : index
    %c2_88 = arith.constant 2 : index
    %c0_89 = arith.constant 0 : index
    %139 = vector.load %arg8[%c0_87, %c2_88, %c0_89] : memref<12x16x128xf32, #tpu.memory_space<vmem>>, vector<12x8x128xf32>
    %140 = vector.shape_cast %139 : vector<12x8x128xf32> to vector<96x128xf32>
    %141 = arith.truncf %140 : vector<96x128xf32> to vector<96x128xbf16>
    %cst_90 = arith.constant dense<0.000000e+00> : vector<96x128xf32>
    %142 = tpu.matmul %141, %138, %cst_90 {dimension_numbers = #tpu.dot_dimension_numbers<[1], [0], [0], [1], [0, 0, 1, 1], [], []>} : vector<96x128xbf16>, vector<128x128xbf16>, vector<96x128xf32> -> vector<96x128xf32>
    %143 = arith.addf %137, %142 : vector<96x128xf32>
    %c1664 = arith.constant 1664 : index
    %c0_91 = arith.constant 0 : index
    %144 = vector.load %arg5[%c1664, %c0_91] : memref<2432x128xbf16, #tpu.memory_space<vmem>>, vector<128x128xbf16>
    %c0_92 = arith.constant 0 : index
    %c3_93 = arith.constant 3 : index
    %c0_94 = arith.constant 0 : index
    %145 = vector.load %arg8[%c0_92, %c3_93, %c0_94] : memref<12x16x128xf32, #tpu.memory_space<vmem>>, vector<12x8x128xf32>
    %146 = vector.shape_cast %145 : vector<12x8x128xf32> to vector<96x128xf32>
    %147 = arith.truncf %146 : vector<96x128xf32> to vector<96x128xbf16>
    %cst_95 = arith.constant dense<0.000000e+00> : vector<96x128xf32>
    %148 = tpu.matmul %147, %144, %cst_95 {dimension_numbers = #tpu.dot_dimension_numbers<[1], [0], [0], [1], [0, 0, 1, 1], [], []>} : vector<96x128xbf16>, vector<128x128xbf16>, vector<96x128xf32> -> vector<96x128xf32>
    %149 = arith.addf %143, %148 : vector<96x128xf32>
    %c1792 = arith.constant 1792 : index
    %c0_96 = arith.constant 0 : index
    %150 = vector.load %arg5[%c1792, %c0_96] : memref<2432x128xbf16, #tpu.memory_space<vmem>>, vector<128x128xbf16>
    %c0_97 = arith.constant 0 : index
    %c4_98 = arith.constant 4 : index
    %c0_99 = arith.constant 0 : index
    %151 = vector.load %arg8[%c0_97, %c4_98, %c0_99] : memref<12x16x128xf32, #tpu.memory_space<vmem>>, vector<12x8x128xf32>
    %152 = vector.shape_cast %151 : vector<12x8x128xf32> to vector<96x128xf32>
    %153 = arith.truncf %152 : vector<96x128xf32> to vector<96x128xbf16>
    %cst_100 = arith.constant dense<0.000000e+00> : vector<96x128xf32>
    %154 = tpu.matmul %153, %150, %cst_100 {dimension_numbers = #tpu.dot_dimension_numbers<[1], [0], [0], [1], [0, 0, 1, 1], [], []>} : vector<96x128xbf16>, vector<128x128xbf16>, vector<96x128xf32> -> vector<96x128xf32>
    %155 = arith.addf %149, %154 : vector<96x128xf32>
    %c1920 = arith.constant 1920 : index
    %c0_101 = arith.constant 0 : index
    %156 = vector.load %arg5[%c1920, %c0_101] : memref<2432x128xbf16, #tpu.memory_space<vmem>>, vector<128x128xbf16>
    %c0_102 = arith.constant 0 : index
    %c5_103 = arith.constant 5 : index
    %c0_104 = arith.constant 0 : index
    %157 = vector.load %arg8[%c0_102, %c5_103, %c0_104] : memref<12x16x128xf32, #tpu.memory_space<vmem>>, vector<12x8x128xf32>
    %158 = vector.shape_cast %157 : vector<12x8x128xf32> to vector<96x128xf32>
    %159 = arith.truncf %158 : vector<96x128xf32> to vector<96x128xbf16>
    %cst_105 = arith.constant dense<0.000000e+00> : vector<96x128xf32>
    %160 = tpu.matmul %159, %156, %cst_105 {dimension_numbers = #tpu.dot_dimension_numbers<[1], [0], [0], [1], [0, 0, 1, 1], [], []>} : vector<96x128xbf16>, vector<128x128xbf16>, vector<96x128xf32> -> vector<96x128xf32>
    %161 = arith.addf %155, %160 : vector<96x128xf32>
    %c2048 = arith.constant 2048 : index
    %c0_106 = arith.constant 0 : index
    %162 = vector.load %arg5[%c2048, %c0_106] : memref<2432x128xbf16, #tpu.memory_space<vmem>>, vector<128x128xbf16>
    %c0_107 = arith.constant 0 : index
    %c6_108 = arith.constant 6 : index
    %c0_109 = arith.constant 0 : index
    %163 = vector.load %arg8[%c0_107, %c6_108, %c0_109] : memref<12x16x128xf32, #tpu.memory_space<vmem>>, vector<12x8x128xf32>
    %164 = vector.shape_cast %163 : vector<12x8x128xf32> to vector<96x128xf32>
    %165 = arith.truncf %164 : vector<96x128xf32> to vector<96x128xbf16>
    %cst_110 = arith.constant dense<0.000000e+00> : vector<96x128xf32>
    %166 = tpu.matmul %165, %162, %cst_110 {dimension_numbers = #tpu.dot_dimension_numbers<[1], [0], [0], [1], [0, 0, 1, 1], [], []>} : vector<96x128xbf16>, vector<128x128xbf16>, vector<96x128xf32> -> vector<96x128xf32>
    %167 = arith.addf %161, %166 : vector<96x128xf32>
    %c2176 = arith.constant 2176 : index
    %c0_111 = arith.constant 0 : index
    %168 = vector.load %arg5[%c2176, %c0_111] : memref<2432x128xbf16, #tpu.memory_space<vmem>>, vector<128x128xbf16>
    %c0_112 = arith.constant 0 : index
    %c7_113 = arith.constant 7 : index
    %c0_114 = arith.constant 0 : index
    %169 = vector.load %arg8[%c0_112, %c7_113, %c0_114] : memref<12x16x128xf32, #tpu.memory_space<vmem>>, vector<12x8x128xf32>
    %170 = vector.shape_cast %169 : vector<12x8x128xf32> to vector<96x128xf32>
    %171 = arith.truncf %170 : vector<96x128xf32> to vector<96x128xbf16>
    %cst_115 = arith.constant dense<0.000000e+00> : vector<96x128xf32>
    %172 = tpu.matmul %171, %168, %cst_115 {dimension_numbers = #tpu.dot_dimension_numbers<[1], [0], [0], [1], [0, 0, 1, 1], [], []>} : vector<96x128xbf16>, vector<128x128xbf16>, vector<96x128xf32> -> vector<96x128xf32>
    %173 = arith.addf %167, %172 : vector<96x128xf32>
    %c2304 = arith.constant 2304 : index
    %c0_116 = arith.constant 0 : index
    %174 = vector.load %arg5[%c2304, %c0_116] : memref<2432x128xbf16, #tpu.memory_space<vmem>>, vector<128x128xbf16>
    %c0_117 = arith.constant 0 : index
    %c8_118 = arith.constant 8 : index
    %c0_119 = arith.constant 0 : index
    %175 = vector.load %arg8[%c0_117, %c8_118, %c0_119] : memref<12x16x128xf32, #tpu.memory_space<vmem>>, vector<12x8x128xf32>
    %176 = vector.shape_cast %175 : vector<12x8x128xf32> to vector<96x128xf32>
    %177 = arith.truncf %176 : vector<96x128xf32> to vector<96x128xbf16>
    %cst_120 = arith.constant dense<0.000000e+00> : vector<96x128xf32>
    %178 = tpu.matmul %177, %174, %cst_120 {dimension_numbers = #tpu.dot_dimension_numbers<[1], [0], [0], [1], [0, 0, 1, 1], [], []>} : vector<96x128xbf16>, vector<128x128xbf16>, vector<96x128xf32> -> vector<96x128xf32>
    %179 = arith.addf %173, %178 : vector<96x128xf32>
    %180 = vector.broadcast %15 : vector<1x128xf32> to vector<96x128xf32>
    %181 = arith.addf %179, %180 : vector<96x128xf32>
    %182 = vector.broadcast %16 : vector<1x128xf32> to vector<96x128xf32>
    %183 = arith.mulf %181, %182 : vector<96x128xf32>
    %184 = vector.broadcast %17 : vector<1x128xf32> to vector<96x128xf32>
    %185 = arith.addf %183, %184 : vector<96x128xf32>
    %186 = arith.addf %185, %107 : vector<96x128xf32>
    %cst_121 = arith.constant 0.000000e+00 : f32
    %187 = vector.broadcast %cst_121 : f32 to vector<96x128xf32>
    %188 = arith.maximumf %186, %187 : vector<96x128xf32>
    %189 = vector.extract_strided_slice %188 {offsets = [8, 0], sizes = [8, 128], strides = [1, 1]} : vector<96x128xf32> to vector<8x128xf32>
    %190 = vector.extract_strided_slice %188 {offsets = [24, 0], sizes = [8, 128], strides = [1, 1]} : vector<96x128xf32> to vector<8x128xf32>
    %191 = arith.maximumf %189, %190 : vector<8x128xf32>
    %192 = vector.extract_strided_slice %188 {offsets = [40, 0], sizes = [8, 128], strides = [1, 1]} : vector<96x128xf32> to vector<8x128xf32>
    %193 = arith.maximumf %191, %192 : vector<8x128xf32>
    %c0_122 = arith.constant 0 : index
    %c0_123 = arith.constant 0 : index
    %c0_124 = arith.constant 0 : index
    %c0_125 = arith.constant 0 : index
    %194 = vector.load %arg7[%c0_122, %c0_123, %c0_124, %c0_125] : memref<2x2x8x128xf32, #tpu.memory_space<vmem>>, vector<1x1x8x128xf32>
    %195 = vector.shape_cast %194 : vector<1x1x8x128xf32> to vector<8x128xf32>
    %196 = vector.shape_cast %193 : vector<8x128xf32> to vector<1x1x8x128xf32>
    tpu.vector_store %arg7[%c0_122, %c0_123, %c0_124, %c0_125], %196 {strides = array<i32>} : memref<2x2x8x128xf32, #tpu.memory_space<vmem>>, vector<1x1x8x128xf32>,
    %197 = vector.extract_strided_slice %188 {offsets = [0, 0], sizes = [8, 128], strides = [1, 1]} : vector<96x128xf32> to vector<8x128xf32>
    %198 = vector.extract_strided_slice %188 {offsets = [16, 0], sizes = [8, 128], strides = [1, 1]} : vector<96x128xf32> to vector<8x128xf32>
    %199 = arith.maximumf %197, %198 : vector<8x128xf32>
    %200 = vector.extract_strided_slice %188 {offsets = [32, 0], sizes = [8, 128], strides = [1, 1]} : vector<96x128xf32> to vector<8x128xf32>
    %201 = arith.maximumf %199, %200 : vector<8x128xf32>
    %c0_126 = arith.constant 0 : index
    %c1_127 = arith.constant 1 : index
    %c0_128 = arith.constant 0 : index
    %c0_129 = arith.constant 0 : index
    %202 = vector.load %arg7[%c0_126, %c1_127, %c0_128, %c0_129] : memref<2x2x8x128xf32, #tpu.memory_space<vmem>>, vector<1x1x8x128xf32>
    %203 = vector.shape_cast %202 : vector<1x1x8x128xf32> to vector<8x128xf32>
    %204 = vector.shape_cast %201 : vector<8x128xf32> to vector<1x1x8x128xf32>
    tpu.vector_store %arg7[%c0_126, %c1_127, %c0_128, %c0_129], %204 {strides = array<i32>} : memref<2x2x8x128xf32, #tpu.memory_space<vmem>>, vector<1x1x8x128xf32>,
    %205 = vector.extract_strided_slice %188 {offsets = [56, 0], sizes = [8, 128], strides = [1, 1]} : vector<96x128xf32> to vector<8x128xf32>
    %206 = vector.extract_strided_slice %188 {offsets = [72, 0], sizes = [8, 128], strides = [1, 1]} : vector<96x128xf32> to vector<8x128xf32>
    %207 = arith.maximumf %205, %206 : vector<8x128xf32>
    %208 = vector.extract_strided_slice %188 {offsets = [88, 0], sizes = [8, 128], strides = [1, 1]} : vector<96x128xf32> to vector<8x128xf32>
    %209 = arith.maximumf %207, %208 : vector<8x128xf32>
    %c1_130 = arith.constant 1 : index
    %c0_131 = arith.constant 0 : index
    %c0_132 = arith.constant 0 : index
    %c0_133 = arith.constant 0 : index
    %210 = vector.load %arg7[%c1_130, %c0_131, %c0_132, %c0_133] : memref<2x2x8x128xf32, #tpu.memory_space<vmem>>, vector<1x1x8x128xf32>
    %211 = vector.shape_cast %210 : vector<1x1x8x128xf32> to vector<8x128xf32>
    %212 = vector.shape_cast %209 : vector<8x128xf32> to vector<1x1x8x128xf32>
    tpu.vector_store %arg7[%c1_130, %c0_131, %c0_132, %c0_133], %212 {strides = array<i32>} : memref<2x2x8x128xf32, #tpu.memory_space<vmem>>, vector<1x1x8x128xf32>,
    %213 = vector.extract_strided_slice %188 {offsets = [48, 0], sizes = [8, 128], strides = [1, 1]} : vector<96x128xf32> to vector<8x128xf32>
    %214 = vector.extract_strided_slice %188 {offsets = [64, 0], sizes = [8, 128], strides = [1, 1]} : vector<96x128xf32> to vector<8x128xf32>
    %215 = arith.maximumf %213, %214 : vector<8x128xf32>
    %216 = vector.extract_strided_slice %188 {offsets = [80, 0], sizes = [8, 128], strides = [1, 1]} : vector<96x128xf32> to vector<8x128xf32>
    %217 = arith.maximumf %215, %216 : vector<8x128xf32>
    %c1_134 = arith.constant 1 : index
    %c1_135 = arith.constant 1 : index
    %c0_136 = arith.constant 0 : index
    %c0_137 = arith.constant 0 : index
    %218 = vector.load %arg7[%c1_134, %c1_135, %c0_136, %c0_137] : memref<2x2x8x128xf32, #tpu.memory_space<vmem>>, vector<1x1x8x128xf32>
    %219 = vector.shape_cast %218 : vector<1x1x8x128xf32> to vector<8x128xf32>
    %220 = vector.shape_cast %217 : vector<8x128xf32> to vector<1x1x8x128xf32>
    tpu.vector_store %arg7[%c1_134, %c1_135, %c0_136, %c0_137], %220 {strides = array<i32>} : memref<2x2x8x128xf32, #tpu.memory_space<vmem>>, vector<1x1x8x128xf32>,
    return
  }
  func.func @transform_0(%arg0: i32) -> (i32, i32, i32) {
    %c0_i32 = arith.constant 0 : i32
    %c0_i32_0 = arith.constant 0 : i32
    %c0_i32_1 = arith.constant 0 : i32
    return %arg0, %c0_i32, %c0_i32_0 : i32, i32, i32
  }
  func.func @transform_1(%arg0: i32) -> (i32, i32, i32) {
    %c0_i32 = arith.constant 0 : i32
    %c0_i32_0 = arith.constant 0 : i32
    %c0_i32_1 = arith.constant 0 : i32
    %c0_i32_2 = arith.constant 0 : i32
    return %c0_i32, %c0_i32_0, %c0_i32_1 : i32, i32, i32
  }
  func.func @transform_2(%arg0: i32) -> (i32, i32) {
    %c0_i32 = arith.constant 0 : i32
    %c0_i32_0 = arith.constant 0 : i32
    %c0_i32_1 = arith.constant 0 : i32
    return %c0_i32, %c0_i32_0 : i32, i32
  }
  func.func @transform_3(%arg0: i32) -> (i32, i32) {
    %c0_i32 = arith.constant 0 : i32
    %c0_i32_0 = arith.constant 0 : i32
    %c0_i32_1 = arith.constant 0 : i32
    return %c0_i32, %c0_i32_0 : i32, i32
  }
  func.func @transform_4(%arg0: i32) -> (i32, i32) {
    %c0_i32 = arith.constant 0 : i32
    %c0_i32_0 = arith.constant 0 : i32
    %c0_i32_1 = arith.constant 0 : i32
    return %c0_i32, %c0_i32_0 : i32, i32
  }
  func.func @transform_5(%arg0: i32) -> (i32, i32) {
    %c0_i32 = arith.constant 0 : i32
    %c0_i32_0 = arith.constant 0 : i32
    %c0_i32_1 = arith.constant 0 : i32
    return %c0_i32, %c0_i32_0 : i32, i32
  }
  func.func @transform_6(%arg0: i32) -> (i32, i32, i32, i32) {
    %c0_i32 = arith.constant 0 : i32
    %c0_i32_0 = arith.constant 0 : i32
    %c0_i32_1 = arith.constant 0 : i32
    %c0_i32_2 = arith.constant 0 : i32
    return %arg0, %c0_i32, %c0_i32_0, %c0_i32_1 : i32, i32, i32, i32
  }
}

</mosaic_0001>

<bundles_post_ra>
// kernel: tpu_custom_call.1
= control target key start
LH: loop header
LB: loop body
LE: loop exit
PB: predicated region body
PF: predicated region fallthrough
CT: control target
= control target key end

     0   :  { %11 = vsyncpa [#allocation4], 0  ;;  %s6059_s0 = inlined_call_operand.vmem [shape: f32[2,48,8], index: 0, kind: input, shape index: {}]   ;;  %s6060_s1 = inlined_call_operand.vmem [shape: f32[2,48,8], index: 1, kind: input, shape index: {}]   ;;  %s6061_s2 = inlined_call_operand.vmem [shape: bf16[48,48], index: 2, kind: input, shape index: {}]   ;;  %s6062_s3 = inlined_call_operand.vmem [shape: bf16[8,128], index: 3, kind: input, shape index: {}]   ;;  %s6063_s4 = inlined_call_operand.hbm [shape: bf16[2432,128], index: 4, kind: input, shape index: {}]   ;;  %s6064_s5 = inlined_call_operand.vmem [shape: f32[16,128], index: 5, kind: input, shape index: {}]   ;;  %s6065_s6 = inlined_call_operand.hbm [shape: f32[2,2,8,128], index: 6, kind: output, shape index: {}]  }
   0x1   :  { %12 = vsyncpa [#allocation5], 0  ;;  %s5542_s21 = smov [#allocation3]   ;;  %s5494_s25 = scalar_lea.hbm %s6063_s4, 19456 }
   0x2   :  { %s26_s22 = sshll.u32 %s5542_s21, 4  ;;  %p5495_p0 = scmp.ne.s32.totalorder %s6063_s4, %s5494_s25  ;;  %s27_s22 = int_to_ptr.vmem [resolvable:$true] %s26_s22 }
   0x3   :  { %p5498_p1 = scmp.lt.u32.totalorder %s5494_s25, %s6063_s4 }
   0x5   :  { %p5500_p2 = pnand %p5498_p1, %p5495_p0 }
   0x7   :  { %5503 = shalt.err (!%p5500_p2)
}
   0x8   :  { %s5504_s30 = scalar_lea.vmem %s27_s22, 19456  ;;  %p5509_p4 = scmp.lt.s32.totalorder %s27_s22, %s27_s22 }
   0x9   :  { %p5505_p3 = scmp.ne.s32.totalorder %s27_s22, %s5504_s30  ;;  %p5510_p5 = scmp.lt.s32.totalorder %s5504_s30, %s5504_s30 }
   0xb   :  { %p5511_p6 = por %p5510_p5, %p5509_p4 }
   0xd   :  { %p5512_p7 = pnand %p5511_p6, %p5505_p3 }
   0xf   :  { %5515 = shalt.err (!%p5512_p7)
}
  0x10   :  { %s5543_s7 = smov 64   ;;  %s5544_s8 = smov 4  }
  0x11   :  { %32 = dma.hbm_to_vmem [thread:$0]  %s6063_s4, 19456, %s27_s22, [#allocation4], %s5543_s7, %s5543_s7, %s5544_s8  }
  0x12   :  { %5538 = dma.done.wait [#allocation4], 19456  }
  0x13   :  { %5539 = vsyncadd [#allocation4], 4294947840  ;;  %v5545_v0 = vmov 0.0   ;;  %vm5546_vm0 = vmmov 0   ;;  %v72_v1 = vld [vmem:[%s6060_s1] sm:$0xff]  ;;  %v73_v2 = vld [vmem:[%s6060_s1 + $0x8] sm:$0xff] }
  0x14   :  { %4516 = vmatprep.subr.bf16.mxu1 %v5545_v0  ;;  %39 = vst [vmem:[#allocation2] sm:$0xf] %v5545_v0  ;;  %40 = vst [vmem:[#allocation2 + $0x10] sm:$0xf] %v5545_v0  ;;  %4522 = vmatprep.mubr.msk.bf16.mxu1 %vm5546_vm0, %v5545_v0  ;;  %v4034_v3 = vld [vmem:[%s6060_s1 + $0x30] sm:$0xff]  ;;  %v4035_v4 = vld [vmem:[%s6060_s1 + $0x38] sm:$0xff] }
  0x15   :  { %41 = vst [vmem:[#allocation2 + $0x20] sm:$0xf] %v5545_v0  ;;  %42 = vst [vmem:[#allocation2 + $0x30] sm:$0xf] %v5545_v0  ;;  %v85_v5 = vld [vmem:[%s6059_s0] sm:$0xff]  ;;  %v86_v6 = vld [vmem:[%s6059_s0 + $0x8] sm:$0xff] }
  0x16   :  { %43 = vst [vmem:[#allocation2 + $0x40] sm:$0xf] %v5545_v0  ;;  %44 = vst [vmem:[#allocation2 + $0x50] sm:$0xf] %v5545_v0  ;;  %v91_v7 = vmul.f32 %v85_v5, %v72_v1  ;;  %v92_v8 = vmul.f32 %v86_v6, %v73_v2  ;;  %v4046_v9 = vld [vmem:[%s6059_s0 + $0x30] sm:$0xff]  ;;  %v4047_v11 = vld [vmem:[%s6059_s0 + $0x38] sm:$0xff] }
  0x17   :  { %45 = vst [vmem:[#allocation2 + $0x60] sm:$0xf] %v5545_v0  ;;  %46 = vst [vmem:[#allocation2 + $0x70] sm:$0xf] %v5545_v0  ;;  %v74_v10 = vld [vmem:[%s6060_s1 + $0x10] sm:$0xff]  ;;  %v75_v12 = vld [vmem:[%s6060_s1 + $0x18] sm:$0xff]  ;;  %v195_v24 = vmul.f32 %v4046_v9, %v72_v1  ;;  %v196_v27 = vmul.f32 %v4047_v11, %v73_v2 }
  0x18   :  { %47 = vst [vmem:[#allocation2 + $0x80] sm:$0xf] %v5545_v0  ;;  %48 = vst [vmem:[#allocation2 + $0x90] sm:$0xf] %v5545_v0  ;;  %v4036_v13 = vld [vmem:[%s6060_s1 + $0x40] sm:$0xff]  ;;  %v97_v14 = vadd.f32 %v4034_v3, %v91_v7  ;;  %v98_v15 = vadd.f32 %v4035_v4, %v92_v8  ;;  %v4037_v16 = vld [vmem:[%s6060_s1 + $0x48] sm:$0xff] }
  0x19   :  { %49 = vst [vmem:[#allocation2 + $0xa0] sm:$0xf] %v5545_v0  ;;  %50 = vst [vmem:[#allocation2 + $0xb0] sm:$0xf] %v5545_v0  ;;  %v87_v17 = vld [vmem:[%s6059_s0 + $0x10] sm:$0xff]  ;;  %v88_v18 = vld [vmem:[%s6059_s0 + $0x18] sm:$0xff]  ;;  %v201_v39 = vadd.f32 %v4034_v3, %v195_v24  ;;  %v202_v40 = vadd.f32 %v4035_v4, %v196_v27 }
  0x1a   :  { %51 = vst [vmem:[#allocation2 + $0xc] sm:$0xf] %v5545_v0  ;;  %52 = vst [vmem:[#allocation2 + $0x1c] sm:$0xf] %v5545_v0  ;;  %v93_v19 = vmul.f32 %v87_v17, %v74_v10  ;;  %v94_v20 = vmul.f32 %v88_v18, %v75_v12  ;;  %v76_v21 = vld [vmem:[%s6060_s1 + $0x20] sm:$0xff]  ;;  %v77_v22 = vld [vmem:[%s6060_s1 + $0x28] sm:$0xff]  ;;  %v103_v23 = vpack.c.bf16 %v98_v15, %v97_v14 }
  0x1b   :  { %53 = vst [vmem:[#allocation2 + $0x2c] sm:$0xf] %v5545_v0  ;;  %54 = vst [vmem:[#allocation2 + $0x3c] sm:$0xf] %v5545_v0  ;;  %v4038_v25 = vld [vmem:[%s6060_s1 + $0x50] sm:$0xff]  ;;  %v89_v26 = vld [vmem:[%s6059_s0 + $0x20] sm:$0xff]  ;;  %v207_v47 = vpack.c.bf16 %v202_v40, %v201_v39 }
  0x1c   :  { %55 = vst [vmem:[#allocation2 + $0x4c] sm:$0xf] %v5545_v0  ;;  %56 = vst [vmem:[#allocation2 + $0x5c] sm:$0xf] %v5545_v0  ;;  %v99_v28 = vadd.f32 %v4036_v13, %v93_v19  ;;  %v100_v29 = vadd.f32 %v4037_v16, %v94_v20  ;;  %v4039_v30 = vld [vmem:[%s6060_s1 + $0x58] sm:$0xff]  ;;  %v90_v31 = vld [vmem:[%s6059_s0 + $0x28] sm:$0xff]  ;;  %v95_v32 = vmul.f32 %v89_v26, %v76_v21  ;;  %4517 = vmatpush3.bf16.msra.mxu1 %v103_v23 }
  0x1d   :  { %57 = vst [vmem:[#allocation2 + $0x6c] sm:$0xf] %v5545_v0  ;;  %58 = vst [vmem:[#allocation2 + $0x7c] sm:$0xf] %v5545_v0  ;;  %v4048_v33 = vld [vmem:[%s6059_s0 + $0x40] sm:$0xff]  ;;  %v96_v34 = vmul.f32 %v90_v31, %v77_v22  ;;  %4518 = vmatprep.subr.bf16.mxu1 %v5545_v0  ;;  %v4049_v36 = vld [vmem:[%s6059_s0 + $0x48] sm:$0xff] }
  0x1e   :  { %59 = vst [vmem:[#allocation2 + $0x8c] sm:$0xf] %v5545_v0  ;;  %60 = vst [vmem:[#allocation2 + $0x9c] sm:$0xf] %v5545_v0  ;;  %v104_v35 = vpack.c.bf16 %v100_v29, %v99_v28  ;;  %v101_v37 = vadd.f32 %v4038_v25, %v95_v32  ;;  %vm121_vm1 = vcmask 392192   ;;  %v4050_v41 = vld [vmem:[%s6059_s0 + $0x50] sm:$0xff]  ;;  %v197_v43 = vmul.f32 %v4048_v33, %v74_v10 }
  0x1f   :  { %61 = vst [vmem:[#allocation2 + $0xac] sm:$0xf] %v5545_v0  ;;  %62 = vst [vmem:[#allocation2 + $0xbc] sm:$0xf] %v5545_v0  ;;  %v102_v38 = vadd.f32 %v4039_v30, %v96_v34  ;;  %v4051_v42 = vld [vmem:[%s6059_s0 + $0x58] sm:$0xff]  ;;  %v198_v44 = vmul.f32 %v4049_v36, %v75_v12  ;;  %v5335_v46 = vld [vmem:[%s6061_s2] sm:$0xff]   ;;  %v199_v50 = vmul.f32 %v4050_v41, %v76_v21  ;;  %v273_v36 = vlaneseq }
  0x20   :  { %4519 = vmatpush3.bf16.msra.mxu1 %v104_v35  ;;  %v203_v48 = vadd.f32 %v4036_v13, %v197_v43  ;;  %v200_v51 = vmul.f32 %v4051_v42, %v77_v22  ;;  %v5336_v55 = vld [vmem:[%s6061_s2 + $0x8] sm:$0xff]   ;;  %v5337_v57 = vld [vmem:[%s6061_s2 + $0x10] sm:$0xff]   ;;  %v69_v58 = vld [vmem:[%s6062_s3] sm:$0xf]  ;;  %vm296_vm2 = vcmask 1043456   ;;  %vm277_vm3 = vcmask 64512  }
  0x21   :  { %v105_v45 = vpack.c.bf16 %v102_v38, %v101_v37  ;;  %4520 = vmatprep.subr.bf16.mxu1 %v5545_v0  ;;  %v204_v49 = vadd.f32 %v4037_v16, %v198_v44  ;;  %v205_v52 = vadd.f32 %v4038_v25, %v199_v50  ;;  %5326 = vmatprep.subr.msk.bf16.mxu0 %vm296_vm2, %v69_v58  ;;  %v298_v59 = vsel %vm296_vm2, %v69_v58, 0  ;;  %v5338_v60 = vld [vmem:[#allocation3 + $0x80] sm:$0xff]   ;;  %v5339_v61 = vld [vmem:[#allocation3 + $0x88] sm:$0xff]   ;;  %v5340_v62 = vld [vmem:[#allocation3 + $0x90] sm:$0xff]  }
  0x22   :  { %v206_v53 = vadd.f32 %v4039_v30, %v200_v51  ;;  %4553 = vmatpush3.bf16.msra.mxu0 %v298_v59  ;;  %v5341_v30 = vld [vmem:[#allocation3 + $0x98] sm:$0xff]   ;;  %v5342_v31 = vld [vmem:[#allocation3 + $0xa0] sm:$0xff]   ;;  %v5343_v32 = vld [vmem:[#allocation3 + $0xa8] sm:$0xff]   ;;  %v5738_v37 = vshrl.u32 %v273_v36, 7 }
  0x23   :  { %v208_v54 = vpack.c.bf16 %v204_v49, %v203_v48  ;;  %v5344_v33 = vld [vmem:[#allocation3 + $0xb0] sm:$0xff]   ;;  %v5345_v34 = vld [vmem:[#allocation3 + $0xb8] sm:$0xff]   ;;  %v5735_v35 = vld [vmem:[#allocation3 + $0x40] sm:$0xff]  }
  0x24   :  { %4521 = vmatpush3.bf16.msra.mxu1 %v105_v45  ;;  %v209_v56 = vpack.c.bf16 %v206_v53, %v205_v52  ;;  %v275_v38 = vsub.s32 0, %v5738_v37  ;;  %v5744_v39 = vld [vmem:[%s6064_s5] sm:$0xff]  ;;  %v383_v40 = vsub.s32 1, %v5738_v37  ;;  %v399_v42 = vsub.s32 2, %v5738_v37 }
  0x25   :  { %4534 = vmatprep.subr.bf16.mxu1 %v5545_v0 }
  0x26   :  { %v5750_v41 = vrot.slane %v5744_v39, %v275_v38  ;;  %v5756_v43 = vrot.slane %v5744_v39, %v383_v40 }
  0x27   :  { %4523 = vmatmul.mubr.msk.bf16.vlgmr.msra.gmra.mrb[0].mxu1 %vm121_vm1, %v5335_v46 }
  0x28   :  { %4526 = vmatprep.mubr.msk.bf16.mxu1 %vm5546_vm0, %v5545_v0  ;;  %4535 = vmatpush3.bf16.msra.mxu1 %v207_v47 }
  0x29   :  { %4536 = vmatprep.subr.bf16.mxu1 %v5545_v0 }
  0x2c   :  { %4537 = vmatpush3.bf16.msra.mxu1 %v208_v54 }
  0x2d   :  { %4538 = vmatprep.subr.bf16.mxu1 %v5545_v0 }
  0x2f   :  { %4527 = vmatmul.mubr.msk.bf16.gmra.mrb[4].mxu1 %vm121_vm1, %v5336_v55 }
  0x30   :  { %4530 = vmatprep.mubr.msk.bf16.mxu1 %vm5546_vm0, %v5545_v0  ;;  %4539 = vmatpush3.bf16.msra.mxu1 %v209_v56 }
  0x31   :  { %4566 = vmatprep.subr.bf16.mxu1 %v5338_v60 }
  0x37   :  { %4531 = vmatmul.mubr.msk.bf16.gmra.mrb[8].mxu1 %vm121_vm1, %v5337_v57 }
  0x38   :  { %4540 = vmatprep.mubr.msk.bf16.mxu1 %vm5546_vm0, %v5545_v0 }
  0x3f   :  { %4541 = vmatmul.mubr.msk.bf16.vlgmr.msra.gmra.mrb[12].mxu1 %vm121_vm1, %v5335_v46  ;;  %v5762_v46 = vrot.slane %v5744_v39, %v399_v42 }
  0x40   :  { %4544 = vmatprep.mubr.msk.bf16.mxu1 %vm5546_vm0, %v5545_v0  ;;  %4567 = vmatpush3.bf16.msra.mxu1 %v5338_v60 }
  0x41   :  { %4568 = vmatprep.subr.bf16.mxu1 %v5339_v61 }
  0x44   :  { %4569 = vmatpush3.bf16.msra.mxu1 %v5339_v61 }
  0x45   :  { %4570 = vmatprep.subr.bf16.mxu1 %v5340_v62 }
  0x47   :  { %4545 = vmatmul.mubr.msk.bf16.gmra.mrb[16].mxu1 %vm121_vm1, %v5336_v55 }
  0x48   :  { %4548 = vmatprep.mubr.msk.bf16.mxu1 %vm5546_vm0, %v5545_v0  ;;  %4571 = vmatpush3.bf16.msra.mxu1 %v5340_v62 }
  0x49   :  { %4572 = vmatprep.subr.bf16.mxu1 %v5341_v30 }
  0x4c   :  { %4573 = vmatpush3.bf16.msra.mxu1 %v5341_v30  ;;  %v5348_v30 = vld [vmem:[#allocation3 + $0x50] sm:$0xff]  }
  0x4d   :  { %4574 = vmatprep.subr.bf16.mxu1 %v5342_v31 }
  0x4f   :  { %4549 = vmatmul.mubr.msk.bf16.gmra.mrb[20].mxu1 %vm121_vm1, %v5337_v57 }
  0x50   :  { %4575 = vmatpush3.bf16.msra.mxu1 %v5342_v31 }
  0x51   :  { %4576 = vmatprep.subr.bf16.mxu1 %v5343_v32 }
  0x54   :  { %4577 = vmatpush3.bf16.msra.mxu1 %v5343_v32 }
  0x55   :  { %4578 = vmatprep.subr.bf16.mxu1 %v5344_v33 }
  0x58   :  { %4579 = vmatpush3.bf16.msra.mxu1 %v5344_v33 }
  0x59   :  { %4580 = vmatprep.subr.bf16.mxu1 %v5345_v34 }
  0x5c   :  { %4581 = vmatpush3.bf16.msra.mxu1 %v5345_v34  ;;  %v5349_v34 = vld [vmem:[#allocation3 + $0x58] sm:$0xff]  }
  0x5d   :  { %4594 = vmatprep.subr.bf16.mxu1 %v5735_v35 }
  0xfa   :  { %v165_v63 = vpop.f32.mrb[0].mxu1 }
  0xfb   :  { %v4524_v1 = vpop.f32.mrb[1].mxu1 }
  0xfc   :  { %v168_v2 = vpop.f32.mrb[2].mxu1 }
  0xfd   :  { %v267_v3 = vpack.c.bf16 %v168_v2, %v165_v63  ;;  %v4525_v4 = vpop.f32.mrb[3].mxu1 }
  0xff   :  { %4554 = vmatprep.mubr.msk.bf16.mxu0 %vm277_vm3, %v267_v3 }
 0x102   :  { %v173_v5 = vpop.f32.mrb[4].mxu1 }
 0x103   :  { %v4528_v6 = vpop.f32.mrb[5].mxu1 }
 0x104   :  { %v176_v7 = vpop.f32.mrb[6].mxu1 }
 0x105   :  { %v268_v8 = vpack.c.bf16 %v176_v7, %v173_v5  ;;  %v4529_v9 = vpop.f32.mrb[7].mxu1 }
 0x107   :  { %4555 = vmatmul.mubr.msk.bf16.vlgmr.msra.gmra.mrb[0].mxu0 %vm277_vm3, %v268_v8 }
 0x10a   :  { %v181_v10 = vpop.f32.mrb[8].mxu1 }
 0x10b   :  { %v4532_v11 = vpop.f32.mrb[9].mxu1 }
 0x10c   :  { %v184_v12 = vpop.f32.mrb[10].mxu1 }
 0x10d   :  { %v269_v13 = vpack.c.bf16 %v184_v12, %v181_v10  ;;  %v4533_v14 = vpop.f32.mrb[11].mxu1 }
 0x10f   :  { %4558 = vmatprep.mubr.msk.bf16.mxu0 %vm277_vm3, %v269_v13 }
 0x112   :  { %v244_v15 = vpop.f32.mrb[12].mxu1 }
 0x113   :  { %v4542_v16 = vpop.f32.mrb[13].mxu1 }
 0x114   :  { %v247_v17 = vpop.f32.mrb[14].mxu1 }
 0x115   :  { %v270_v18 = vpack.c.bf16 %v247_v17, %v244_v15  ;;  %v4543_v19 = vpop.f32.mrb[15].mxu1 }
 0x117   :  { %4559 = vmatmul.mubr.msk.bf16.gmra.mrb[4].mxu0 %vm277_vm3, %v270_v18 }
 0x11a   :  { %v252_v20 = vpop.f32.mrb[16].mxu1 }
 0x11b   :  { %v4546_v21 = vpop.f32.mrb[17].mxu1 }
 0x11c   :  { %v255_v22 = vpop.f32.mrb[18].mxu1 }
 0x11d   :  { %v271_v23 = vpack.c.bf16 %v255_v22, %v252_v20  ;;  %v4547_v24 = vpop.f32.mrb[19].mxu1  ;;  %v5347_v22 = vld [vmem:[#allocation3 + $0x48] sm:$0xff]  }
 0x11f   :  { %4562 = vmatprep.mubr.msk.bf16.mxu0 %vm277_vm3, %v271_v23 }
 0x122   :  { %v260_v25 = vpop.f32.mrb[20].mxu1 }
 0x123   :  { %v4550_v26 = vpop.f32.mrb[21].mxu1 }
 0x124   :  { %v263_v27 = vpop.f32.mrb[22].mxu1 }
 0x125   :  { %v272_v28 = vpack.c.bf16 %v263_v27, %v260_v25  ;;  %v4551_v29 = vpop.f32.mrb[23].mxu1 }
 0x127   :  { %4563 = vmatmul.mubr.msk.bf16.gmra.mrb[8].mxu0 %vm277_vm3, %v272_v28 }
 0x1da   :  { %v4556_v44 = vpop.f32.mrb[0].mxu0 }
 0x1db   :  { %v343_v45 = vadd.f32 %v4556_v44, %v5750_v41  ;;  %v334_v47 = vpop.f32.mrb[1].mxu0 }
 0x1dc   :  { %v335_v48 = vadd.f32 %v334_v47, %v5750_v41  ;;  %v4557_v49 = vpop.f32.mrb[2].mxu0 }
 0x1dd   :  { %v387_v50 = vmul.f32 %v5756_v43, %v343_v45  ;;  %v346_v51 = vadd.f32 %v4557_v49, %v5750_v41  ;;  %v337_v52 = vpop.f32.mrb[3].mxu0  ;;  %v5350_v45 = vld [vmem:[#allocation3 + $0x60] sm:$0xff]  }
 0x1de   :  { %v385_v53 = vmul.f32 %v5756_v43, %v335_v48  ;;  %v338_v54 = vadd.f32 %v337_v52, %v5750_v41 }
 0x1df   :  { %v403_v55 = vadd.f32 %v5762_v46, %v387_v50  ;;  %v388_v56 = vmul.f32 %v5756_v43, %v346_v51 }
 0x1e0   :  { %v401_v57 = vadd.f32 %v5762_v46, %v385_v53  ;;  %v386_v58 = vmul.f32 %v5756_v43, %v338_v54 }
 0x1e1   :  { %v415_v59 = vmax.f32 %v403_v55, 0.0  ;;  %v404_v60 = vadd.f32 %v5762_v46, %v388_v56 }
 0x1e2   :  { %v413_v61 = vmax.f32 %v401_v57, 0.0  ;;  %v402_v62 = vadd.f32 %v5762_v46, %v386_v58 }
 0x1e3   :  { %427 = vst [vmem:[#allocation2 + $0x24] sm:$0xff] %v415_v59  ;;  %v416_v63 = vmax.f32 %v404_v60, 0.0 }
 0x1e4   :  { %425 = vst [vmem:[#allocation2 + $0x4] sm:$0xff] %v413_v61  ;;  %v414_v1 = vmax.f32 %v402_v62, 0.0  ;;  %v5351_v62 = vld [vmem:[#allocation3 + $0x68] sm:$0xff]  }
 0x1e5   :  { %428 = vst [vmem:[#allocation2 + $0x34] sm:$0xff] %v416_v63  ;;  %v5775_v2 = vpack.c.bf16 %v416_v63, %v415_v59 }
 0x1e6   :  { %426 = vst [vmem:[#allocation2 + $0x14] sm:$0xff] %v414_v1  ;;  %v5777_v3 = vpack.c.bf16 %v414_v1, %v413_v61 }
 0x1ea   :  { %v4560_v4 = vpop.f32.mrb[4].mxu0  ;;  %v489_v18 = vld [vmem:[#allocation2 + $0x21] sm:$0xff] }
 0x1eb   :  { %v359_v5 = vadd.f32 %v4560_v4, %v5750_v41  ;;  %v350_v6 = vpop.f32.mrb[5].mxu0  ;;  %v487_v13 = vld [vmem:[#allocation2 + $0x1] sm:$0xff] }
 0x1ec   :  { %v351_v7 = vadd.f32 %v350_v6, %v5750_v41  ;;  %v4561_v8 = vpop.f32.mrb[6].mxu0  ;;  %v490_v9 = vld [vmem:[#allocation2 + $0x31] sm:$0xff] }
 0x1ed   :  { %v391_v10 = vmul.f32 %v5756_v43, %v359_v5  ;;  %v362_v11 = vadd.f32 %v4561_v8, %v5750_v41  ;;  %v353_v12 = vpop.f32.mrb[7].mxu0  ;;  %v488_v14 = vld [vmem:[#allocation2 + $0x11] sm:$0xff]  ;;  %v500_v21 = vpack.c.bf16 %v490_v9, %v489_v18 }
 0x1ee   :  { %v389_v15 = vmul.f32 %v5756_v43, %v351_v7  ;;  %v354_v16 = vadd.f32 %v353_v12, %v5750_v41  ;;  %v499_v17 = vpack.c.bf16 %v488_v14, %v487_v13  ;;  %v5352_v8 = vld [vmem:[#allocation3 + $0x70] sm:$0xff]   ;;  %v5354_v12 = vld [vmem:[#allocation3 + $0xc0] sm:$0xff]  }
 0x1ef   :  { %v407_v19 = vadd.f32 %v5762_v46, %v391_v10  ;;  %v392_v20 = vmul.f32 %v5756_v43, %v362_v11  ;;  %v5353_v11 = vld [vmem:[#allocation3 + $0x78] sm:$0xff]  }
 0x1f0   :  { %v405_v23 = vadd.f32 %v5762_v46, %v389_v15  ;;  %v390_v24 = vmul.f32 %v5756_v43, %v354_v16  ;;  %4582 = vmatprep.mubr.bf16.mxu1 %v499_v17  ;;  %v454_v15 = vld [vmem:[#allocation2 + $0x10] sm:$0xff] }
 0x1f1   :  { %v419_v25 = vmax.f32 %v407_v19, 0.0  ;;  %v408_v26 = vadd.f32 %v5762_v46, %v392_v20  ;;  %4583 = vmatmul.mubr.bf16.vlgmr.msra.gmra.mrb[24].mxu1 %v500_v21  ;;  %v453_v19 = vld [vmem:[#allocation2] sm:$0xff]  ;;  %v456_v21 = vld [vmem:[#allocation2 + $0x30] sm:$0xff] }
 0x1f2   :  { %v417_v27 = vmax.f32 %v405_v23, 0.0  ;;  %v406_v28 = vadd.f32 %v5762_v46, %v390_v24  ;;  %4595 = vmatpush3.bf16.msra.mxu1 %v5735_v35  ;;  %v465_v20 = vpack.c.bf16 %v454_v15, %v453_v19  ;;  %v455_v23 = vld [vmem:[#allocation2 + $0x20] sm:$0xff]  ;;  %v5369_v19 = vld [vmem:[#allocation3 + $0x138] sm:$0xff]  }
 0x1f3   :  { %431 = vst [vmem:[#allocation2 + $0x64] sm:$0xff] %v419_v25  ;;  %v420_v29 = vmax.f32 %v408_v26, 0.0  ;;  %4596 = vmatprep.subr.bf16.mxu1 %v5347_v22  ;;  %v466_v24 = vpack.c.bf16 %v456_v21, %v455_v23  ;;  %v5355_v26 = vld [vmem:[#allocation3 + $0xc8] sm:$0xff]   ;;  %v957_v21 = vld [vmem:[#allocation2 + $0x33] sm:$0xff] }
 0x1f4   :  { %429 = vst [vmem:[#allocation2 + $0x44] sm:$0xff] %v417_v27  ;;  %v418_v31 = vmax.f32 %v406_v28, 0.0  ;;  %v5356_v28 = vld [vmem:[#allocation3 + $0xd0] sm:$0xff]   ;;  %v954_v15 = vld [vmem:[#allocation2 + $0x3] sm:$0xff] }
 0x1f5   :  { %432 = vst [vmem:[#allocation2 + $0x74] sm:$0xff] %v420_v29  ;;  %v5792_v32 = vpack.c.bf16 %v420_v29, %v419_v25  ;;  %v956_v23 = vld [vmem:[#allocation2 + $0x23] sm:$0xff] }
 0x1f6   :  { %430 = vst [vmem:[#allocation2 + $0x54] sm:$0xff] %v418_v31  ;;  %4597 = vmatpush3.bf16.msra.mxu1 %v5347_v22  ;;  %v5794_v33 = vpack.c.bf16 %v418_v31, %v417_v27 }
 0x1f7   :  { %4598 = vmatprep.subr.bf16.mxu1 %v5348_v30 }
 0x1fa   :  { %v4564_v36 = vpop.f32.mrb[8].mxu0  ;;  %4599 = vmatpush3.bf16.msra.mxu1 %v5348_v30  ;;  %v493_v58 = vld [vmem:[#allocation2 + $0x61] sm:$0xff] }
 0x1fb   :  { %v375_v44 = vadd.f32 %v4564_v36, %v5750_v41  ;;  %v366_v35 = vpop.f32.mrb[9].mxu0  ;;  %4600 = vmatprep.subr.bf16.mxu1 %v5349_v34  ;;  %v491_v53 = vld [vmem:[#allocation2 + $0x41] sm:$0xff] }
 0x1fc   :  { %v367_v47 = vadd.f32 %v366_v35, %v5750_v41  ;;  %v4565_v48 = vpop.f32.mrb[10].mxu0  ;;  %v494_v49 = vld [vmem:[#allocation2 + $0x71] sm:$0xff]  ;;  %v457_v25 = vld [vmem:[#allocation2 + $0x40] sm:$0xff] }
 0x1fd   :  { %v395_v50 = vmul.f32 %v5756_v43, %v375_v44  ;;  %v378_v51 = vadd.f32 %v4565_v48, %v5750_v41  ;;  %v369_v52 = vpop.f32.mrb[11].mxu0  ;;  %v492_v54 = vld [vmem:[#allocation2 + $0x51] sm:$0xff]  ;;  %v502_v61 = vpack.c.bf16 %v494_v49, %v493_v58  ;;  %v459_v31 = vld [vmem:[#allocation2 + $0x60] sm:$0xff] }
 0x1fe   :  { %v393_v55 = vmul.f32 %v5756_v43, %v367_v47  ;;  %v370_v56 = vadd.f32 %v369_v52, %v5750_v41  ;;  %v501_v57 = vpack.c.bf16 %v492_v54, %v491_v53  ;;  %4601 = vmatpush3.bf16.msra.mxu1 %v5349_v34  ;;  %v458_v22 = vld [vmem:[#allocation2 + $0x50] sm:$0xff]  ;;  %v5357_v44 = vld [vmem:[#allocation3 + $0xd8] sm:$0xff]   ;;  %v5359_v52 = vld [vmem:[#allocation3 + $0xe8] sm:$0xff]  }
 0x1ff   :  { %v411_v59 = vadd.f32 %v5762_v46, %v395_v50  ;;  %v396_v60 = vmul.f32 %v5756_v43, %v378_v51  ;;  %4602 = vmatprep.subr.bf16.mxu1 %v5350_v45  ;;  %v467_v27 = vpack.c.bf16 %v458_v22, %v457_v25  ;;  %v460_v29 = vld [vmem:[#allocation2 + $0x70] sm:$0xff]  ;;  %v779_v51 = vld [vmem:[#allocation2 + $0x2] sm:$0xff] }
 0x200   :  { %v409_v63 = vadd.f32 %v5762_v46, %v393_v55  ;;  %v394_v1 = vmul.f32 %v5756_v43, %v370_v56  ;;  %4586 = vmatprep.mubr.bf16.mxu1 %v501_v57  ;;  %v468_v34 = vpack.c.bf16 %v460_v29, %v459_v31  ;;  %v780_v48 = vld [vmem:[#allocation2 + $0x12] sm:$0xff]  ;;  %v5362_v56 = vld [vmem:[#allocation3 + $0x100] sm:$0xff]  }
 0x201   :  { %v423_v4 = vmax.f32 %v411_v59, 0.0  ;;  %v412_v5 = vadd.f32 %v5762_v46, %v396_v60  ;;  %4587 = vmatmul.mubr.bf16.gmra.mrb[28].mxu1 %v502_v61  ;;  %v791_v53 = vpack.c.bf16 %v780_v48, %v779_v51  ;;  %v5360_v54 = vld [vmem:[#allocation3 + $0xf0] sm:$0xff]   ;;  %v5361_v55 = vld [vmem:[#allocation3 + $0xf8] sm:$0xff]   ;;  %v781_v59 = vld [vmem:[#allocation2 + $0x22] sm:$0xff] }
 0x202   :  { %v421_v41 = vmax.f32 %v409_v63, 0.0  ;;  %v410_v6 = vadd.f32 %v5762_v46, %v394_v1  ;;  %4603 = vmatpush3.bf16.msra.mxu1 %v5350_v45  ;;  %v5358_v45 = vld [vmem:[#allocation3 + $0xe0] sm:$0xff]   ;;  %v782_v57 = vld [vmem:[#allocation2 + $0x32] sm:$0xff] }
 0x203   :  { %435 = vst [vmem:[#allocation2 + $0xa4] sm:$0xff] %v423_v4  ;;  %v424_v7 = vmax.f32 %v412_v5, 0.0  ;;  %4604 = vmatprep.subr.bf16.mxu1 %v5351_v62  ;;  %v784_v58 = vld [vmem:[#allocation2 + $0x52] sm:$0xff]  ;;  %v792_v60 = vpack.c.bf16 %v782_v57, %v781_v59  ;;  %v783_v61 = vld [vmem:[#allocation2 + $0x42] sm:$0xff] }
 0x204   :  { %433 = vst [vmem:[#allocation2 + $0x84] sm:$0xff] %v421_v41  ;;  %v422_v9 = vmax.f32 %v410_v6, 0.0  ;;  %v793_v63 = vpack.c.bf16 %v784_v58, %v783_v61  ;;  %v5364_v1 = vld [vmem:[#allocation3 + $0x110] sm:$0xff]   ;;  %v958_v25 = vld [vmem:[#allocation2 + $0x43] sm:$0xff] }
 0x205   :  { %436 = vst [vmem:[#allocation2 + $0xb4] sm:$0xff] %v424_v7  ;;  %v5808_v10 = vpack.c.bf16 %v424_v7, %v423_v4  ;;  %v786_v4 = vld [vmem:[#allocation2 + $0x72] sm:$0xff]  ;;  %v960_v31 = vld [vmem:[#allocation2 + $0x63] sm:$0xff] }
 0x206   :  { %434 = vst [vmem:[#allocation2 + $0x94] sm:$0xff] %v422_v9  ;;  %4605 = vmatpush3.bf16.msra.mxu1 %v5351_v62  ;;  %v5810_v43 = vpack.c.bf16 %v422_v9, %v421_v41  ;;  %v5363_v62 = vld [vmem:[#allocation3 + $0x108] sm:$0xff]   ;;  %v959_v22 = vld [vmem:[#allocation2 + $0x53] sm:$0xff] }
 0x207   :  { %4606 = vmatprep.subr.bf16.mxu1 %v5352_v8  ;;  %v785_v41 = vld [vmem:[#allocation2 + $0x62] sm:$0xff]  ;;  %v961_v29 = vld [vmem:[#allocation2 + $0x73] sm:$0xff] }
 0x208   :  { %v794_v6 = vpack.c.bf16 %v786_v4, %v785_v41  ;;  %v5376_v51 = vld [vmem:[#allocation3 + $0x170] sm:$0xff]   ;;  %v1304_v58 = vld [vmem:[#allocation2 + $0x5] sm:$0xff] }
 0x209   :  { %v1305_v57 = vld [vmem:[#allocation2 + $0x15] sm:$0xff]  ;;  %v5414_v4 = vld [vmem:[#allocation3 + $0x20] sm:$0xff]  }
 0x20a   :  { %4607 = vmatpush3.bf16.msra.mxu1 %v5352_v8  ;;  %v497_v17 = vld [vmem:[#allocation2 + $0xa1] sm:$0xff]  ;;  %v5365_v8 = vld [vmem:[#allocation3 + $0x118] sm:$0xff]   ;;  %v1316_v59 = vpack.c.bf16 %v1305_v57, %v1304_v58  ;;  %v5384_v61 = vld [vmem:[#allocation3 + $0x1b0] sm:$0xff]  }
 0x20b   :  { %4608 = vmatprep.subr.bf16.mxu1 %v5353_v11  ;;  %v495_v13 = vld [vmem:[#allocation2 + $0x81] sm:$0xff] }
 0x20c   :  { %v498_v46 = vld [vmem:[#allocation2 + $0xb1] sm:$0xff]  ;;  %v461_v36 = vld [vmem:[#allocation2 + $0x80] sm:$0xff]  ;;  %v5399_v58 = vld [vmem:[#allocation3 + $0x228] sm:$0xff]  }
 0x20d   :  { %v496_v14 = vld [vmem:[#allocation2 + $0x91] sm:$0xff]  ;;  %v504_v18 = vpack.c.bf16 %v498_v46, %v497_v17  ;;  %v463_v49 = vld [vmem:[#allocation2 + $0xa0] sm:$0xff] }
 0x20e   :  { %v503_v16 = vpack.c.bf16 %v496_v14, %v495_v13  ;;  %4609 = vmatpush3.bf16.msra.mxu1 %v5353_v11  ;;  %v462_v30 = vld [vmem:[#allocation2 + $0x90] sm:$0xff]  ;;  %v787_v7 = vld [vmem:[#allocation2 + $0x82] sm:$0xff] }
 0x20f   :  { %4622 = vmatprep.subr.bf16.mxu1 %v5354_v12  ;;  %v469_v35 = vpack.c.bf16 %v462_v30, %v461_v36  ;;  %v464_v47 = vld [vmem:[#allocation2 + $0xb0] sm:$0xff]  ;;  %v5366_v11 = vld [vmem:[#allocation3 + $0x120] sm:$0xff]  }
 0x210   :  { %4590 = vmatprep.mubr.bf16.mxu1 %v503_v16  ;;  %v470_v50 = vpack.c.bf16 %v464_v47, %v463_v49  ;;  %v788_v5 = vld [vmem:[#allocation2 + $0x92] sm:$0xff]  ;;  %v789_v13 = vld [vmem:[#allocation2 + $0xa2] sm:$0xff] }
 0x211   :  { %4591 = vmatmul.mubr.bf16.gmra.mrb[32].mxu1 %v504_v18  ;;  %v795_v9 = vpack.c.bf16 %v788_v5, %v787_v7  ;;  %v955_v46 = vld [vmem:[#allocation2 + $0x13] sm:$0xff]  ;;  %v5367_v16 = vld [vmem:[#allocation3 + $0x128] sm:$0xff]  }
 0x212   :  { %4610 = vmatprep.mubr.bf16.mxu1 %v465_v20  ;;  %v966_v17 = vpack.c.bf16 %v955_v46, %v954_v15  ;;  %v5368_v18 = vld [vmem:[#allocation3 + $0x130] sm:$0xff]   ;;  %v5370_v20 = vld [vmem:[#allocation3 + $0x140] sm:$0xff]   ;;  %v5387_v7 = vld [vmem:[#allocation3 + $0x1c8] sm:$0xff]  }
 0x213   :  { %v963_v30 = vld [vmem:[#allocation2 + $0x93] sm:$0xff]  ;;  %v962_v36 = vld [vmem:[#allocation2 + $0x83] sm:$0xff] }
 0x214   :  { %v965_v47 = vld [vmem:[#allocation2 + $0xb3] sm:$0xff]  ;;  %v964_v48 = vld [vmem:[#allocation2 + $0xa3] sm:$0xff] }
 0x215   :  { %v971_v49 = vpack.c.bf16 %v965_v47, %v964_v48  ;;  %v1306_v5 = vld [vmem:[#allocation2 + $0x25] sm:$0xff]  ;;  %v5389_v15 = vld [vmem:[#allocation3 + $0x1d8] sm:$0xff]  }
 0x216   :  { %v1310_v46 = vld [vmem:[#allocation2 + $0x65] sm:$0xff]  ;;  %v1488_v47 = vld [vmem:[#allocation2 + $0x96] sm:$0xff] }
 0x217   :  { %v1485_v48 = vld [vmem:[#allocation2 + $0x66] sm:$0xff] }
 0x218   :  { %v1654_v57 = vld [vmem:[#allocation2 + $0x7] sm:$0xff] }
 0x219   :  { %4611 = vmatmul.mubr.bf16.vlgmr.msra.gmra.mrb[24].mxu1 %v466_v24  ;;  %v967_v24 = vpack.c.bf16 %v957_v21, %v956_v23  ;;  %v5391_v23 = vld [vmem:[#allocation3 + $0x1e8] sm:$0xff]  }
 0x21a   :  { %4623 = vmatpush3.bf16.msra.mxu1 %v5354_v12  ;;  %4614 = vmatprep.mubr.bf16.mxu1 %v467_v27  ;;  %v790_v12 = vld [vmem:[#allocation2 + $0xb2] sm:$0xff]  ;;  %v968_v27 = vpack.c.bf16 %v959_v22, %v958_v25  ;;  %v1479_v22 = vld [vmem:[#allocation2 + $0x6] sm:$0xff] }
 0x21b   :  { %4624 = vmatprep.subr.bf16.mxu1 %v5355_v26  ;;  %v796_v14 = vpack.c.bf16 %v790_v12, %v789_v13  ;;  %v1313_v12 = vld [vmem:[#allocation2 + $0x95] sm:$0xff] }
 0x21c   :  { %v5392_v25 = vld [vmem:[#allocation3 + $0x1f0] sm:$0xff]  }
 0x21e   :  { %4625 = vmatpush3.bf16.msra.mxu1 %v5355_v26  ;;  %v5371_v26 = vld [vmem:[#allocation3 + $0x148] sm:$0xff]  }
 0x21f   :  { %4626 = vmatprep.subr.bf16.mxu1 %v5356_v28 }
 0x221   :  { %4615 = vmatmul.mubr.bf16.gmra.mrb[28].mxu1 %v468_v34  ;;  %v969_v34 = vpack.c.bf16 %v961_v29, %v960_v31  ;;  %v1484_v29 = vld [vmem:[#allocation2 + $0x56] sm:$0xff] }
 0x222   :  { %4627 = vmatpush3.bf16.msra.mxu1 %v5356_v28  ;;  %4618 = vmatprep.mubr.bf16.mxu1 %v469_v35  ;;  %v5372_v28 = vld [vmem:[#allocation3 + $0x150] sm:$0xff]   ;;  %v970_v35 = vpack.c.bf16 %v963_v30, %v962_v36  ;;  %v1481_v30 = vld [vmem:[#allocation2 + $0x26] sm:$0xff] }
 0x223   :  { %4628 = vmatprep.subr.bf16.mxu1 %v5357_v44  ;;  %v5395_v36 = vld [vmem:[#allocation3 + $0x208] sm:$0xff]  }
 0x226   :  { %4629 = vmatpush3.bf16.msra.mxu1 %v5357_v44  ;;  %v5373_v44 = vld [vmem:[#allocation3 + $0x158] sm:$0xff]  }
 0x227   :  { %4630 = vmatprep.subr.bf16.mxu1 %v5358_v45 }
 0x229   :  { %4619 = vmatmul.mubr.bf16.gmra.mrb[32].mxu1 %v470_v50  ;;  %v5375_v50 = vld [vmem:[#allocation3 + $0x168] sm:$0xff]  }
 0x22a   :  { %4631 = vmatpush3.bf16.msra.mxu1 %v5358_v45  ;;  %4638 = vmatprep.mubr.bf16.mxu1 %v791_v53  ;;  %v5374_v45 = vld [vmem:[#allocation3 + $0x160] sm:$0xff]  }
 0x22b   :  { %4632 = vmatprep.subr.bf16.mxu1 %v5359_v52  ;;  %v5378_v53 = vld [vmem:[#allocation3 + $0x180] sm:$0xff]  }
 0x22e   :  { %4633 = vmatpush3.bf16.msra.mxu1 %v5359_v52  ;;  %v5377_v52 = vld [vmem:[#allocation3 + $0x178] sm:$0xff]  }
 0x22f   :  { %4634 = vmatprep.subr.bf16.mxu1 %v5360_v54 }
 0x232   :  { %4635 = vmatpush3.bf16.msra.mxu1 %v5360_v54  ;;  %v5379_v54 = vld [vmem:[#allocation3 + $0x188] sm:$0xff]  }
 0x233   :  { %4636 = vmatprep.subr.bf16.mxu1 %v5361_v55 }
 0x236   :  { %4637 = vmatpush3.bf16.msra.mxu1 %v5361_v55  ;;  %v5380_v55 = vld [vmem:[#allocation3 + $0x190] sm:$0xff]  }
 0x237   :  { %4650 = vmatprep.subr.bf16.mxu1 %v5362_v56 }
 0x239   :  { %4639 = vmatmul.mubr.bf16.vlgmr.msra.gmra.mrb[24].mxu1 %v792_v60  ;;  %v5411_v60 = vld [vmem:[#allocation3 + $0x8] sm:$0xff]  }
 0x23a   :  { %4642 = vmatprep.mubr.bf16.mxu1 %v793_v63  ;;  %4651 = vmatpush3.bf16.msra.mxu1 %v5362_v56  ;;  %v5382_v56 = vld [vmem:[#allocation3 + $0x1a0] sm:$0xff]  }
 0x23b   :  { %4652 = vmatprep.subr.bf16.mxu1 %v5363_v62  ;;  %v5386_v63 = vld [vmem:[#allocation3 + $0x1c0] sm:$0xff]  }
 0x23e   :  { %4653 = vmatpush3.bf16.msra.mxu1 %v5363_v62  ;;  %v5413_v62 = vld [vmem:[#allocation3 + $0x18] sm:$0xff]  }
 0x23f   :  { %4654 = vmatprep.subr.bf16.mxu1 %v5364_v1 }
 0x241   :  { %4643 = vmatmul.mubr.bf16.gmra.mrb[28].mxu1 %v794_v6  ;;  %v1308_v6 = vld [vmem:[#allocation2 + $0x45] sm:$0xff] }
 0x242   :  { %4646 = vmatprep.mubr.bf16.mxu1 %v795_v9  ;;  %4655 = vmatpush3.bf16.msra.mxu1 %v5364_v1  ;;  %v1309_v1 = vld [vmem:[#allocation2 + $0x55] sm:$0xff] }
 0x243   :  { %4656 = vmatprep.subr.bf16.mxu1 %v5365_v8  ;;  %v5388_v9 = vld [vmem:[#allocation3 + $0x1d0] sm:$0xff]  }
 0x246   :  { %4657 = vmatpush3.bf16.msra.mxu1 %v5365_v8  ;;  %v1318_v8 = vpack.c.bf16 %v1309_v1, %v1308_v6  ;;  %v1660_v6 = vld [vmem:[#allocation2 + $0x67] sm:$0xff] }
 0x247   :  { %4658 = vmatprep.subr.bf16.mxu1 %v5366_v11 }
 0x249   :  { %4647 = vmatmul.mubr.bf16.gmra.mrb[32].mxu1 %v796_v14  ;;  %v1312_v14 = vld [vmem:[#allocation2 + $0x85] sm:$0xff] }
 0x24a   :  { %4659 = vmatpush3.bf16.msra.mxu1 %v5366_v11  ;;  %4666 = vmatprep.mubr.bf16.mxu1 %v966_v17  ;;  %v1311_v11 = vld [vmem:[#allocation2 + $0x75] sm:$0xff]  ;;  %v5390_v17 = vld [vmem:[#allocation3 + $0x1e0] sm:$0xff]  }
 0x24b   :  { %4660 = vmatprep.subr.bf16.mxu1 %v5367_v16  ;;  %v1319_v13 = vpack.c.bf16 %v1311_v11, %v1310_v46  ;;  %v1665_v46 = vld [vmem:[#allocation2 + $0xb7] sm:$0xff] }
 0x24e   :  { %4661 = vmatpush3.bf16.msra.mxu1 %v5367_v16  ;;  %v1320_v16 = vpack.c.bf16 %v1313_v12, %v1312_v14  ;;  %v5406_v12 = vld [vmem:[#allocation3 + $0x260] sm:$0xff]  }
 0x24f   :  { %4662 = vmatprep.subr.bf16.mxu1 %v5368_v18  ;;  %v1664_v14 = vld [vmem:[#allocation2 + $0xa7] sm:$0xff] }
 0x252   :  { %4663 = vmatpush3.bf16.msra.mxu1 %v5368_v18  ;;  %v1315_v18 = vld [vmem:[#allocation2 + $0xb5] sm:$0xff] }
 0x253   :  { %4664 = vmatprep.subr.bf16.mxu1 %v5369_v19 }
 0x256   :  { %4665 = vmatpush3.bf16.msra.mxu1 %v5369_v19  ;;  %v1480_v19 = vld [vmem:[#allocation2 + $0x16] sm:$0xff] }
 0x257   :  { %4678 = vmatprep.subr.bf16.mxu1 %v5370_v20 }
 0x259   :  { %4667 = vmatmul.mubr.bf16.vlgmr.msra.gmra.mrb[24].mxu1 %v967_v24  ;;  %v1491_v24 = vpack.c.bf16 %v1480_v19, %v1479_v22  ;;  %v5408_v19 = vld [vmem:[#allocation3 + $0x270] sm:$0xff]   ;;  %v1834_v22 = vld [vmem:[#allocation2 + $0x58] sm:$0xff] }
 0x25a   :  { %4670 = vmatprep.mubr.bf16.mxu1 %v968_v27  ;;  %4679 = vmatpush3.bf16.msra.mxu1 %v5370_v20  ;;  %v1314_v20 = vld [vmem:[#allocation2 + $0xa5] sm:$0xff] }
 0x25b   :  { %4680 = vmatprep.subr.bf16.mxu1 %v5371_v26  ;;  %v1321_v21 = vpack.c.bf16 %v1315_v18, %v1314_v20  ;;  %v5394_v27 = vld [vmem:[#allocation3 + $0x200] sm:$0xff]   ;;  %v5409_v20 = vld [vmem:[#allocation3 + $0x278] sm:$0xff]  }
 0x25e   :  { %4681 = vmatpush3.bf16.msra.mxu1 %v5371_v26  ;;  %v5393_v26 = vld [vmem:[#allocation3 + $0x1f8] sm:$0xff]  }
 0x25f   :  { %4682 = vmatprep.subr.bf16.mxu1 %v5372_v28 }
 0x261   :  { %4671 = vmatmul.mubr.bf16.gmra.mrb[28].mxu1 %v969_v34  ;;  %v1483_v34 = vld [vmem:[#allocation2 + $0x46] sm:$0xff] }
 0x262   :  { %4674 = vmatprep.mubr.bf16.mxu1 %v970_v35  ;;  %4683 = vmatpush3.bf16.msra.mxu1 %v5372_v28  ;;  %v1482_v28 = vld [vmem:[#allocation2 + $0x36] sm:$0xff] }
 0x263   :  { %4684 = vmatprep.subr.bf16.mxu1 %v5373_v44  ;;  %v1492_v31 = vpack.c.bf16 %v1482_v28, %v1481_v30  ;;  %v5396_v35 = vld [vmem:[#allocation3 + $0x210] sm:$0xff]   ;;  %v1838_v28 = vld [vmem:[#allocation2 + $0x98] sm:$0xff] }
 0x266   :  { %4685 = vmatpush3.bf16.msra.mxu1 %v5373_v44  ;;  %v1493_v44 = vpack.c.bf16 %v1484_v29, %v1483_v34  ;;  %v1835_v29 = vld [vmem:[#allocation2 + $0x68] sm:$0xff] }
 0x267   :  { %4686 = vmatprep.subr.bf16.mxu1 %v5374_v45 }
 0x269   :  { %4675 = vmatmul.mubr.bf16.gmra.mrb[32].mxu1 %v971_v49 }
 0x26a   :  { %4687 = vmatpush3.bf16.msra.mxu1 %v5374_v45  ;;  %4694 = vmatprep.mubr.bf16.mxu1 %v5777_v3  ;;  %v5381_v3 = vld [vmem:[#allocation3 + $0x198] sm:$0xff]  }
 0x26b   :  { %4688 = vmatprep.subr.bf16.mxu1 %v5375_v50  ;;  %v1486_v45 = vld [vmem:[#allocation2 + $0x76] sm:$0xff] }
 0x26c   :  { %v1494_v49 = vpack.c.bf16 %v1486_v45, %v1485_v48  ;;  %v5415_v45 = vld [vmem:[#allocation3 + $0x28] sm:$0xff]   ;;  %v5417_v48 = vld [vmem:[#allocation3 + $0x38] sm:$0xff]  }
 0x26e   :  { %4689 = vmatpush3.bf16.msra.mxu1 %v5375_v50  ;;  %v1487_v50 = vld [vmem:[#allocation2 + $0x86] sm:$0xff] }
 0x26f   :  { %4690 = vmatprep.subr.bf16.mxu1 %v5376_v51 }
 0x272   :  { %4691 = vmatpush3.bf16.msra.mxu1 %v5376_v51  ;;  %v5397_v51 = vld [vmem:[#allocation3 + $0x218] sm:$0xff]  }
 0x273   :  { %4692 = vmatprep.subr.bf16.mxu1 %v5377_v52 }
 0x276   :  { %4693 = vmatpush3.bf16.msra.mxu1 %v5377_v52  ;;  %v1495_v52 = vpack.c.bf16 %v1488_v47, %v1487_v50  ;;  %v5416_v47 = vld [vmem:[#allocation3 + $0x30] sm:$0xff]   ;;  %v2006_v50 = vsub.s32 4, %v5738_v37 }
 0x277   :  { %4706 = vmatprep.subr.bf16.mxu1 %v5378_v53 }
 0x279   :  { %4695 = vmatmul.mubr.bf16.vlgmr.msra.gmra.mrb[24].mxu1 %v5775_v2  ;;  %v5383_v2 = vld [vmem:[#allocation3 + $0x1a8] sm:$0xff]  }
 0x27a   :  { %4698 = vmatprep.mubr.bf16.mxu1 %v5794_v33  ;;  %4707 = vmatpush3.bf16.msra.mxu1 %v5378_v53  ;;  %v5410_v33 = vld [vmem:[#allocation3] sm:$0xff]  }
 0x27b   :  { %4708 = vmatprep.subr.bf16.mxu1 %v5379_v54  ;;  %4818 = vmatprep.subr.bf16.mxu0 %v5410_v33  ;;  %v5398_v53 = vld [vmem:[#allocation3 + $0x220] sm:$0xff]  }
 0x27c   :  { %4819 = vmatpush3.bf16.msra.mxu0 %v5410_v33  ;;  %v5401_v33 = vld [vmem:[#allocation3 + $0x238] sm:$0xff]  }
 0x27d   :  { %4820 = vmatprep.subr.bf16.mxu0 %v5411_v60 }
 0x27e   :  { %4709 = vmatpush3.bf16.msra.mxu1 %v5379_v54  ;;  %v1490_v54 = vld [vmem:[#allocation2 + $0xb6] sm:$0xff] }
 0x27f   :  { %4710 = vmatprep.subr.bf16.mxu1 %v5380_v55 }
 0x280   :  { %4821 = vmatpush3.bf16.msra.mxu0 %v5411_v60  ;;  %v5402_v60 = vld [vmem:[#allocation3 + $0x240] sm:$0xff]  }
 0x281   :  { %4699 = vmatmul.mubr.bf16.gmra.mrb[28].mxu1 %v5792_v32  ;;  %v5412_v32 = vld [vmem:[#allocation3 + $0x10] sm:$0xff]  }
 0x282   :  { %4702 = vmatprep.mubr.bf16.mxu1 %v5810_v43  ;;  %4711 = vmatpush3.bf16.msra.mxu1 %v5380_v55  ;;  %v5385_v43 = vld [vmem:[#allocation3 + $0x1b8] sm:$0xff]  }
 0x283   :  { %4712 = vmatprep.subr.bf16.mxu1 %v5381_v3  ;;  %4822 = vmatprep.subr.bf16.mxu0 %v5412_v32  ;;  %v1655_v55 = vld [vmem:[#allocation2 + $0x17] sm:$0xff] }
 0x284   :  { %4823 = vmatpush3.bf16.msra.mxu0 %v5412_v32  ;;  %v1659_v32 = vld [vmem:[#allocation2 + $0x57] sm:$0xff] }
 0x285   :  { %4824 = vmatprep.subr.bf16.mxu0 %v5413_v62 }
 0x286   :  { %4713 = vmatpush3.bf16.msra.mxu1 %v5381_v3  ;;  %v1489_v3 = vld [vmem:[#allocation2 + $0xa6] sm:$0xff] }
 0x287   :  { %4714 = vmatprep.subr.bf16.mxu1 %v5382_v56 }
 0x288   :  { %4825 = vmatpush3.bf16.msra.mxu0 %v5413_v62 }
 0x289   :  { %4703 = vmatmul.mubr.bf16.gmra.mrb[32].mxu1 %v5808_v10  ;;  %v1307_v10 = vld [vmem:[#allocation2 + $0x35] sm:$0xff]  ;;  %4826 = vmatprep.subr.bf16.mxu0 %v5414_v4 }
 0x28a   :  { %4715 = vmatpush3.bf16.msra.mxu1 %v5382_v56  ;;  %4722 = vmatprep.mubr.bf16.mxu1 %v1316_v59  ;;  %v1317_v41 = vpack.c.bf16 %v1307_v10, %v1306_v5  ;;  %v1496_v56 = vpack.c.bf16 %v1490_v54, %v1489_v3  ;;  %v5400_v59 = vld [vmem:[#allocation3 + $0x230] sm:$0xff]   ;;  %v5403_v10 = vld [vmem:[#allocation3 + $0x248] sm:$0xff]  }
 0x28b   :  { %4716 = vmatprep.subr.bf16.mxu1 %v5383_v2  ;;  %v1661_v5 = vld [vmem:[#allocation2 + $0x77] sm:$0xff] }
 0x28c   :  { %4827 = vmatpush3.bf16.msra.mxu0 %v5414_v4  ;;  %v5404_v4 = vld [vmem:[#allocation3 + $0x250] sm:$0xff]  }
 0x28d   :  { %4828 = vmatprep.subr.bf16.mxu0 %v5415_v45 }
 0x28e   :  { %4717 = vmatpush3.bf16.msra.mxu1 %v5383_v2  ;;  %v1666_v2 = vpack.c.bf16 %v1655_v55, %v1654_v57 }
 0x28f   :  { %4718 = vmatprep.subr.bf16.mxu1 %v5384_v61 }
 0x290   :  { %4829 = vmatpush3.bf16.msra.mxu0 %v5415_v45 }
 0x291   :  { %4830 = vmatprep.subr.bf16.mxu0 %v5416_v47 }
 0x292   :  { %4719 = vmatpush3.bf16.msra.mxu1 %v5384_v61  ;;  %v1657_v61 = vld [vmem:[#allocation2 + $0x37] sm:$0xff] }
 0x293   :  { %4720 = vmatprep.subr.bf16.mxu1 %v5385_v43 }
 0x294   :  { %4831 = vmatpush3.bf16.msra.mxu0 %v5416_v47 }
 0x295   :  { %4832 = vmatprep.subr.bf16.mxu0 %v5417_v48 }
 0x296   :  { %4721 = vmatpush3.bf16.msra.mxu1 %v5385_v43  ;;  %v1656_v43 = vld [vmem:[#allocation2 + $0x27] sm:$0xff] }
 0x297   :  { %4734 = vmatprep.subr.bf16.mxu1 %v5386_v63  ;;  %v1667_v62 = vpack.c.bf16 %v1657_v61, %v1656_v43 }
 0x298   :  { %4833 = vmatpush3.bf16.msra.mxu0 %v5417_v48 }
 0x299   :  { %4723 = vmatmul.mubr.bf16.vlgmr.msra.gmra.mrb[24].mxu1 %v1317_v41  ;;  %v1663_v41 = vld [vmem:[#allocation2 + $0x97] sm:$0xff]  ;;  %4864 = vmatprep.subr.bf16.mxu0 %v5545_v0 }
 0x29a   :  { %4726 = vmatprep.mubr.bf16.mxu1 %v1318_v8  ;;  %4735 = vmatpush3.bf16.msra.mxu1 %v5386_v63  ;;  %v1658_v63 = vld [vmem:[#allocation2 + $0x47] sm:$0xff] }
 0x29b   :  { %4736 = vmatprep.subr.bf16.mxu1 %v5387_v7  ;;  %v1668_v1 = vpack.c.bf16 %v1659_v32, %v1658_v63  ;;  %v1662_v8 = vld [vmem:[#allocation2 + $0x87] sm:$0xff] }
 0x29c   :  { %v1670_v11 = vpack.c.bf16 %v1663_v41, %v1662_v8 }
 0x29e   :  { %4737 = vmatpush3.bf16.msra.mxu1 %v5387_v7  ;;  %v1669_v7 = vpack.c.bf16 %v1661_v5, %v1660_v6 }
 0x29f   :  { %4738 = vmatprep.subr.bf16.mxu1 %v5388_v9 }
 0x2a1   :  { %4727 = vmatmul.mubr.bf16.gmra.mrb[28].mxu1 %v1319_v13  ;;  %v1830_v13 = vld [vmem:[#allocation2 + $0x18] sm:$0xff] }
 0x2a2   :  { %4730 = vmatprep.mubr.bf16.mxu1 %v1320_v16  ;;  %4739 = vmatpush3.bf16.msra.mxu1 %v5388_v9  ;;  %v5405_v9 = vld [vmem:[#allocation3 + $0x258] sm:$0xff]   ;;  %v1829_v16 = vld [vmem:[#allocation2 + $0x8] sm:$0xff] }
 0x2a3   :  { %4740 = vmatprep.subr.bf16.mxu1 %v5389_v15  ;;  %v1841_v18 = vpack.c.bf16 %v1830_v13, %v1829_v16 }
 0x2a6   :  { %4741 = vmatpush3.bf16.msra.mxu1 %v5389_v15  ;;  %v1671_v15 = vpack.c.bf16 %v1665_v46, %v1664_v14 }
 0x2a7   :  { %4742 = vmatprep.subr.bf16.mxu1 %v5390_v17 }
 0x2a9   :  { %4731 = vmatmul.mubr.bf16.gmra.mrb[32].mxu1 %v1321_v21  ;;  %v1832_v21 = vld [vmem:[#allocation2 + $0x38] sm:$0xff] }
 0x2aa   :  { %4743 = vmatpush3.bf16.msra.mxu1 %v5390_v17  ;;  %4750 = vmatprep.mubr.bf16.mxu1 %v1491_v24  ;;  %v5407_v17 = vld [vmem:[#allocation3 + $0x268] sm:$0xff]  }
 0x2ab   :  { %4744 = vmatprep.subr.bf16.mxu1 %v5391_v23 }
 0x2ae   :  { %4745 = vmatpush3.bf16.msra.mxu1 %v5391_v23  ;;  %v1831_v23 = vld [vmem:[#allocation2 + $0x28] sm:$0xff] }
 0x2af   :  { %4746 = vmatprep.subr.bf16.mxu1 %v5392_v25  ;;  %v1842_v24 = vpack.c.bf16 %v1832_v21, %v1831_v23 }
 0x2b2   :  { %4747 = vmatpush3.bf16.msra.mxu1 %v5392_v25  ;;  %v1833_v25 = vld [vmem:[#allocation2 + $0x48] sm:$0xff] }
 0x2b3   :  { %4748 = vmatprep.subr.bf16.mxu1 %v5393_v26 }
 0x2b6   :  { %4749 = vmatpush3.bf16.msra.mxu1 %v5393_v26  ;;  %v1843_v26 = vpack.c.bf16 %v1834_v22, %v1833_v25 }
 0x2b7   :  { %4762 = vmatprep.subr.bf16.mxu1 %v5394_v27 }
 0x2b9   :  { %4751 = vmatmul.mubr.bf16.vlgmr.msra.gmra.mrb[24].mxu1 %v1492_v31  ;;  %v1837_v31 = vld [vmem:[#allocation2 + $0x88] sm:$0xff] }
 0x2ba   :  { %4754 = vmatprep.mubr.bf16.mxu1 %v1493_v44  ;;  %4763 = vmatpush3.bf16.msra.mxu1 %v5394_v27  ;;  %v1836_v27 = vld [vmem:[#allocation2 + $0x78] sm:$0xff]  ;;  %v1845_v34 = vpack.c.bf16 %v1838_v28, %v1837_v31  ;;  %v1839_v44 = vld [vmem:[#allocation2 + $0xa8] sm:$0xff] }
 0x2bb   :  { %4764 = vmatprep.subr.bf16.mxu1 %v5395_v36  ;;  %v1844_v30 = vpack.c.bf16 %v1836_v27, %v1835_v29 }
 0x2be   :  { %4765 = vmatpush3.bf16.msra.mxu1 %v5395_v36  ;;  %v1840_v36 = vld [vmem:[#allocation2 + $0xb8] sm:$0xff] }
 0x2bf   :  { %4766 = vmatprep.subr.bf16.mxu1 %v5396_v35 }
 0x2c1   :  { %4755 = vmatmul.mubr.bf16.gmra.mrb[28].mxu1 %v1494_v49  ;;  %v1990_v49 = vsub.s32 3, %v5738_v37 }
 0x2c2   :  { %4758 = vmatprep.mubr.bf16.mxu1 %v1495_v52  ;;  %4767 = vmatpush3.bf16.msra.mxu1 %v5396_v35  ;;  %v1846_v35 = vpack.c.bf16 %v1840_v36, %v1839_v44  ;;  %v2022_v52 = vsub.s32 5, %v5738_v37 }
 0x2c3   :  { %4768 = vmatprep.subr.bf16.mxu1 %v5397_v51 }
 0x2c6   :  { %4769 = vmatpush3.bf16.msra.mxu1 %v5397_v51  ;;  %v1991_v51 = vrot.slane %v5744_v39, %v1990_v49 }
 0x2c7   :  { %4770 = vmatprep.subr.bf16.mxu1 %v5398_v53 }
 0x2c9   :  { %4759 = vmatmul.mubr.bf16.gmra.mrb[32].mxu1 %v1496_v56  ;;  %v2023_v56 = vrot.slane %v5744_v39, %v2022_v52 }
 0x2ca   :  { %4771 = vmatpush3.bf16.msra.mxu1 %v5398_v53  ;;  %4778 = vmatprep.mubr.bf16.mxu1 %v1666_v2  ;;  %v2007_v53 = vrot.slane %v5744_v39, %v2006_v50 }
 0x2cb   :  { %4772 = vmatprep.subr.bf16.mxu1 %v5399_v58 }
 0x2ce   :  { %4773 = vmatpush3.bf16.msra.mxu1 %v5399_v58 }
 0x2cf   :  { %4774 = vmatprep.subr.bf16.mxu1 %v5400_v59 }
 0x2d2   :  { %4775 = vmatpush3.bf16.msra.mxu1 %v5400_v59 }
 0x2d3   :  { %4776 = vmatprep.subr.bf16.mxu1 %v5401_v33 }
 0x2d6   :  { %4777 = vmatpush3.bf16.msra.mxu1 %v5401_v33 }
 0x2d7   :  { %4790 = vmatprep.subr.bf16.mxu1 %v5402_v60 }
 0x2d9   :  { %4779 = vmatmul.mubr.bf16.vlgmr.msra.gmra.mrb[24].mxu1 %v1667_v62 }
 0x2da   :  { %4782 = vmatprep.mubr.bf16.mxu1 %v1668_v1  ;;  %4791 = vmatpush3.bf16.msra.mxu1 %v5402_v60 }
 0x2db   :  { %4792 = vmatprep.subr.bf16.mxu1 %v5403_v10 }
 0x2de   :  { %4793 = vmatpush3.bf16.msra.mxu1 %v5403_v10 }
 0x2df   :  { %4794 = vmatprep.subr.bf16.mxu1 %v5404_v4 }
 0x2e1   :  { %4783 = vmatmul.mubr.bf16.gmra.mrb[28].mxu1 %v1669_v7 }
 0x2e2   :  { %4786 = vmatprep.mubr.bf16.mxu1 %v1670_v11  ;;  %4795 = vmatpush3.bf16.msra.mxu1 %v5404_v4 }
 0x2e3   :  { %4796 = vmatprep.subr.bf16.mxu1 %v5405_v9 }
 0x2e6   :  { %4797 = vmatpush3.bf16.msra.mxu1 %v5405_v9 }
 0x2e7   :  { %4798 = vmatprep.subr.bf16.mxu1 %v5406_v12 }
 0x2e9   :  { %4787 = vmatmul.mubr.bf16.gmra.mrb[32].mxu1 %v1671_v15 }
 0x2ea   :  { %4799 = vmatpush3.bf16.msra.mxu1 %v5406_v12  ;;  %4806 = vmatprep.mubr.bf16.mxu1 %v1841_v18 }
 0x2eb   :  { %4800 = vmatprep.subr.bf16.mxu1 %v5407_v17 }
 0x2ee   :  { %4801 = vmatpush3.bf16.msra.mxu1 %v5407_v17 }
 0x2ef   :  { %4802 = vmatprep.subr.bf16.mxu1 %v5408_v19 }
 0x2f2   :  { %4803 = vmatpush3.bf16.msra.mxu1 %v5408_v19 }
 0x2f3   :  { %4804 = vmatprep.subr.bf16.mxu1 %v5409_v20 }
 0x2f6   :  { %4805 = vmatpush3.bf16.msra.mxu1 %v5409_v20 }
 0x2f7   :  { %4846 = vmatprep.subr.bf16.mxu1 %v5545_v0 }
 0x2f9   :  { %4807 = vmatmul.mubr.bf16.vlgmr.msra.gmra.mrb[24].mxu1 %v1842_v24 }
 0x2fa   :  { %4810 = vmatprep.mubr.bf16.mxu1 %v1843_v26 }
 0x301   :  { %4811 = vmatmul.mubr.bf16.gmra.mrb[28].mxu1 %v1844_v30 }
 0x302   :  { %4814 = vmatprep.mubr.bf16.mxu1 %v1845_v34 }
 0x309   :  { %4815 = vmatmul.mubr.bf16.gmra.mrb[32].mxu1 %v1846_v35 }
 0x30a   :  { %4852 = vmatprep.mubr.msk.bf16.mxu1 %vm5546_vm0, %v5545_v0 }
 0x3cc   :  { %v4808_v54 = vpop.f32.mrb[24].mxu1 }
 0x3cd   :  { %v1994_v55 = vadd.f32 %v4808_v54, %v1991_v51  ;;  %v1929_v3 = vpop.f32.mrb[25].mxu1 }
 0x3ce   :  { %v1992_v57 = vadd.f32 %v1991_v51, %v1929_v3  ;;  %v4809_v58 = vpop.f32.mrb[26].mxu1 }
 0x3cf   :  { %v2010_v2 = vmul.f32 %v2007_v53, %v1994_v55  ;;  %v1995_v59 = vadd.f32 %v4809_v58, %v1991_v51  ;;  %v1932_v33 = vpop.f32.mrb[27].mxu1 }
 0x3d0   :  { %v2008_v60 = vmul.f32 %v2007_v53, %v1992_v57  ;;  %v1993_v61 = vadd.f32 %v1991_v51, %v1932_v33 }
 0x3d1   :  { %v2011_v32 = vmul.f32 %v2007_v53, %v1995_v59  ;;  %v5832_v63 = vadd.f32 %v2023_v56, %v2010_v2 }
 0x3d2   :  { %v5830_v43 = vadd.f32 %v2023_v56, %v2008_v60  ;;  %v2009_v62 = vmul.f32 %v2007_v53, %v1993_v61  ;;  %v5896_v61 = vld [vmem:[%s6064_s5] sm:$0xff] }
 0x3d3   :  { %v5834_v10 = vadd.f32 %v2023_v56, %v2011_v32  ;;  %v2038_v11 = vmax.f32 %v5832_v63, 0.0 }
 0x3d4   :  { %v5836_v1 = vadd.f32 %v2023_v56, %v2009_v62  ;;  %v4812_v4 = vpop.f32.mrb[28].mxu1  ;;  %v2036_v6 = vmax.f32 %v5830_v43, 0.0 }
 0x3d5   :  { %v2039_v39 = vmax.f32 %v5834_v10, 0.0  ;;  %v1998_v5 = vadd.f32 %v4812_v4, %v1991_v51  ;;  %v1945_v41 = vpop.f32.mrb[29].mxu1 }
 0x3d6   :  { %v2037_v7 = vmax.f32 %v5836_v1, 0.0  ;;  %v1996_v8 = vadd.f32 %v1991_v51, %v1945_v41  ;;  %v4813_v9 = vpop.f32.mrb[30].mxu1 }
 0x3d7   :  { %v2014_v12 = vmul.f32 %v2007_v53, %v1998_v5  ;;  %v1999_v46 = vadd.f32 %v4813_v9, %v1991_v51  ;;  %v1948_v13 = vpop.f32.mrb[31].mxu1  ;;  %v2065_v17 = vpack.c.bf16 %v2039_v39, %v2038_v11 }
 0x3d8   :  { %v2012_v14 = vmul.f32 %v2007_v53, %v1996_v8  ;;  %v1997_v15 = vadd.f32 %v1991_v51, %v1948_v13  ;;  %v2064_v16 = vpack.c.bf16 %v2037_v7, %v2036_v6 }
 0x3d9   :  { %v2015_v18 = vmul.f32 %v2007_v53, %v1999_v46  ;;  %v5852_v21 = vadd.f32 %v2023_v56, %v2014_v12 }
 0x3da   :  { %v5850_v19 = vadd.f32 %v2023_v56, %v2012_v14  ;;  %v2013_v20 = vmul.f32 %v2007_v53, %v1997_v15  ;;  %4834 = vmatprep.mubr.bf16.mxu0 %v2064_v16 }
 0x3db   :  { %v5854_v22 = vadd.f32 %v2023_v56, %v2015_v18  ;;  %4835 = vmatmul.mubr.bf16.vlgmr.msra.gmra.mrb[12].mxu0 %v2065_v17  ;;  %v2042_v34 = vmax.f32 %v5852_v21, 0.0 }
 0x3dc   :  { %v5856_v23 = vadd.f32 %v2023_v56, %v2013_v20  ;;  %v4816_v24 = vpop.f32.mrb[32].mxu1  ;;  %v2040_v28 = vmax.f32 %v5850_v19, 0.0 }
 0x3dd   :  { %v2043_v25 = vmax.f32 %v5854_v22, 0.0  ;;  %v2002_v26 = vadd.f32 %v4816_v24, %v1991_v51  ;;  %v1961_v27 = vpop.f32.mrb[33].mxu1 }
 0x3de   :  { %v2041_v29 = vmax.f32 %v5856_v23, 0.0  ;;  %v2000_v30 = vadd.f32 %v1991_v51, %v1961_v27  ;;  %v4817_v31 = vpop.f32.mrb[34].mxu1 }
 0x3df   :  { %v2018_v36 = vmul.f32 %v2007_v53, %v2002_v26  ;;  %v2003_v44 = vadd.f32 %v4817_v31, %v1991_v51  ;;  %v1964_v35 = vpop.f32.mrb[35].mxu1  ;;  %v2067_v52 = vpack.c.bf16 %v2043_v25, %v2042_v34 }
 0x3e0   :  { %v2016_v45 = vmul.f32 %v2007_v53, %v2000_v30  ;;  %v2001_v47 = vadd.f32 %v1991_v51, %v1964_v35  ;;  %v2066_v48 = vpack.c.bf16 %v2041_v29, %v2040_v28 }
 0x3e1   :  { %v2019_v50 = vmul.f32 %v2007_v53, %v2003_v44  ;;  %v5872_v3 = vadd.f32 %v2023_v56, %v2018_v36 }
 0x3e2   :  { %v5870_v54 = vadd.f32 %v2023_v56, %v2016_v45  ;;  %v2017_v55 = vmul.f32 %v2007_v53, %v2001_v47  ;;  %4838 = vmatprep.mubr.bf16.mxu0 %v2066_v48 }
 0x3e3   :  { %v5874_v57 = vadd.f32 %v2023_v56, %v2019_v50  ;;  %4839 = vmatmul.mubr.bf16.gmra.mrb[16].mxu0 %v2067_v52  ;;  %v2046_v33 = vmax.f32 %v5872_v3, 0.0  ;;  %v5491_v50 = vld [vmem:[%s6061_s2] sm:$0xff]  }
 0x3e4   :  { %v5876_v51 = vadd.f32 %v2023_v56, %v2017_v55  ;;  %v2044_v2 = vmax.f32 %v5870_v54, 0.0  ;;  %v2072_v56 = vsub.s32 6, %v5738_v37 }
 0x3e5   :  { %v2047_v58 = vmax.f32 %v5874_v57, 0.0 }
 0x3e6   :  { %v2045_v59 = vmax.f32 %v5876_v51, 0.0  ;;  %v2073_v32 = vrot.slane %v5896_v61, %v2072_v56  ;;  %v5418_v56 = vld [vmem:[#allocation3 + $0x2c0] sm:$0xff]  }
 0x3e7   :  { %v2069_v60 = vpack.c.bf16 %v2047_v58, %v2046_v33 }
 0x3e8   :  { %v2068_v53 = vpack.c.bf16 %v2045_v59, %v2044_v2 }
 0x3ea   :  { %4842 = vmatprep.mubr.bf16.mxu0 %v2068_v53 }
 0x3eb   :  { %4843 = vmatmul.mubr.bf16.gmra.mrb[20].mxu0 %v2069_v60 }
 0x3ec   :  { %4870 = vmatprep.mubr.msk.bf16.mxu0 %vm5546_vm0, %v5545_v0 }
 0x4ae   :  { %v4836_v62 = vpop.f32.mrb[12].mxu0 }
 0x4af   :  { %v2156_v4 = vpop.f32.mrb[13].mxu0  ;;  %v2165_v41 = vadd.f32 %v4836_v62, %v2073_v32  ;;  %v5492_v62 = vld [vmem:[%s6061_s2 + $0x8] sm:$0xff]  }
 0x4b0   :  { %v4837_v5 = vpop.f32.mrb[14].mxu0  ;;  %v2157_v12 = vadd.f32 %v2156_v4, %v2073_v32  ;;  %v5420_v4 = vld [vmem:[#allocation3 + $0x2d0] sm:$0xff]  }
 0x4b1   :  { %v2168_v8 = vadd.f32 %v4837_v5, %v2073_v32  ;;  %v2159_v9 = vpop.f32.mrb[15].mxu0  ;;  %v5493_v5 = vld [vmem:[%s6061_s2 + $0x10] sm:$0xff]  }
 0x4b2   :  { %v2160_v46 = vadd.f32 %v2159_v9, %v2073_v32  ;;  %v5423_v9 = vld [vmem:[#allocation3 + $0x2e8] sm:$0xff]  }
 0x4b3   :  { %v2204_v13 = vpack.c.bf16 %v2168_v8, %v2165_v41  ;;  %v5421_v41 = vld [vmem:[#allocation3 + $0x2d8] sm:$0xff]   ;;  %v5422_v8 = vld [vmem:[#allocation3 + $0x2e0] sm:$0xff]  }
 0x4b4   :  { %v2203_v14 = vpack.c.bf16 %v2160_v46, %v2157_v12  ;;  %v5424_v12 = vld [vmem:[#allocation3 + $0x2f0] sm:$0xff]   ;;  %v5425_v46 = vld [vmem:[#allocation3 + $0x2f8] sm:$0xff]  }
 0x4b6   :  { %v4840_v15 = vpop.f32.mrb[16].mxu0  ;;  %4847 = vmatpush3.bf16.msra.mxu1 %v2203_v14  ;;  %v5933_v14 = vld [vmem:[%s6064_s5 + $0x8] sm:$0xff]  ;;  %s5547_s5 = smov [#allocation6]  }
 0x4b7   :  { %v2172_v16 = vpop.f32.mrb[17].mxu0  ;;  %4848 = vmatprep.subr.bf16.mxu1 %v5545_v0  ;;  %v2181_v18 = vadd.f32 %v4840_v15, %v2073_v32  ;;  %s4022_s24 = sshll.u32 %s5547_s5, 4  ;;  %s4023_s24 = int_to_ptr.vmem [resolvable:$true] %s4022_s24 }
 0x4b8   :  { %v4841_v17 = vpop.f32.mrb[18].mxu0  ;;  %v2173_v26 = vadd.f32 %v2172_v16, %v2073_v32  ;;  %v5941_v16 = vrot.slane %v5933_v14, %v275_v38  ;;  %s5516_s25 = scalar_lea.vmem %s4023_s24, 512  ;;  %p5521_p9 = scmp.lt.s32.totalorder %s4023_s24, %s4023_s24 }
 0x4b9   :  { %v2184_v20 = vadd.f32 %v4841_v17, %v2073_v32  ;;  %v2175_v24 = vpop.f32.mrb[19].mxu0  ;;  %p5517_p8 = scmp.ne.s32.totalorder %s4023_s24, %s5516_s25  ;;  %p5522_p10 = scmp.lt.s32.totalorder %s5516_s25, %s5516_s25 }
 0x4ba   :  { %v2176_v27 = vadd.f32 %v2175_v24, %v2073_v32  ;;  %4849 = vmatpush3.bf16.msra.mxu1 %v2204_v13  ;;  %v5926_v13 = vld [vmem:[#allocation3 + $0x280] sm:$0xff]  }
 0x4bb   :  { %v2206_v30 = vpack.c.bf16 %v2184_v20, %v2181_v18  ;;  %4850 = vmatprep.subr.bf16.mxu1 %v5545_v0  ;;  %p5523_p11 = por %p5522_p10, %p5521_p9 }
 0x4bc   :  { %v2205_v31 = vpack.c.bf16 %v2176_v27, %v2173_v26 }
 0x4bd   :  { %4865 = vmatpush3.bf16.msra.mxu0 %v2206_v30  ;;  %p5524_p12 = pnand %p5523_p11, %p5517_p8 }
 0x4be   :  { %v4844_v36 = vpop.f32.mrb[20].mxu0  ;;  %4851 = vmatpush3.bf16.msra.mxu1 %v2205_v31  ;;  %4866 = vmatprep.subr.bf16.mxu0 %v5545_v0 }
 0x4bf   :  { %v2188_v44 = vpop.f32.mrb[21].mxu0  ;;  %v2197_v45 = vadd.f32 %v4844_v36, %v2073_v32 }
 0x4c0   :  { %v4845_v35 = vpop.f32.mrb[22].mxu0  ;;  %v2189_v52 = vadd.f32 %v2188_v44, %v2073_v32 }
 0x4c1   :  { %v2200_v47 = vadd.f32 %v4845_v35, %v2073_v32  ;;  %v2191_v48 = vpop.f32.mrb[23].mxu0  ;;  %4853 = vmatmul.mubr.msk.bf16.vlgmr.msra.gmra.mrb[36].mxu1 %vm121_vm1, %v5491_v50 }
 0x4c2   :  { %v2192_v55 = vadd.f32 %v2191_v48, %v2073_v32  ;;  %4856 = vmatprep.mubr.msk.bf16.mxu1 %vm5546_vm0, %v5545_v0  ;;  %v5419_v32 = vld [vmem:[#allocation3 + $0x2c8] sm:$0xff]  }
 0x4c3   :  { %v2208_v53 = vpack.c.bf16 %v2200_v47, %v2197_v45 }
 0x4c4   :  { %v2207_v60 = vpack.c.bf16 %v2192_v55, %v2189_v52 }
 0x4c6   :  { %4867 = vmatpush3.bf16.msra.mxu0 %v2207_v60 }
 0x4c7   :  { %4868 = vmatprep.subr.bf16.mxu0 %v5545_v0 }
 0x4c9   :  { %4857 = vmatmul.mubr.msk.bf16.gmra.mrb[40].mxu1 %vm121_vm1, %v5492_v62 }
 0x4ca   :  { %4869 = vmatpush3.bf16.msra.mxu0 %v2208_v53  ;;  %4860 = vmatprep.mubr.msk.bf16.mxu1 %vm5546_vm0, %v5545_v0 }
 0x4cb   :  { %4882 = vmatprep.subr.bf16.mxu0 %v5418_v56 }
 0x4cd   :  { %4871 = vmatmul.mubr.msk.bf16.vlgmr.msra.gmra.mrb[24].mxu0 %vm121_vm1, %v5491_v50 }
 0x4ce   :  { %4874 = vmatprep.mubr.msk.bf16.mxu0 %vm5546_vm0, %v5545_v0  ;;  %4883 = vmatpush3.bf16.msra.mxu0 %v5418_v56 }
 0x4cf   :  { %4884 = vmatprep.subr.bf16.mxu0 %v5419_v32 }
 0x4d1   :  { %4861 = vmatmul.mubr.msk.bf16.gmra.mrb[44].mxu1 %vm121_vm1, %v5493_v5 }
 0x4d2   :  { %4885 = vmatpush3.bf16.msra.mxu0 %v5419_v32 }
 0x4d3   :  { %4886 = vmatprep.subr.bf16.mxu0 %v5420_v4 }
 0x4d5   :  { %4875 = vmatmul.mubr.msk.bf16.gmra.mrb[28].mxu0 %vm121_vm1, %v5492_v62 }
 0x4d6   :  { %4878 = vmatprep.mubr.msk.bf16.mxu0 %vm5546_vm0, %v5545_v0  ;;  %4887 = vmatpush3.bf16.msra.mxu0 %v5420_v4  ;;  %v2325_v0 = vsub.s32 7, %v5738_v37 }
 0x4d7   :  { %4888 = vmatprep.subr.bf16.mxu0 %v5421_v41 }
 0x4d8   :  { %v5936_v15 = vrot.slane %v5896_v61, %v2325_v0 }
 0x4da   :  { %4889 = vmatpush3.bf16.msra.mxu0 %v5421_v41 }
 0x4db   :  { %4890 = vmatprep.subr.bf16.mxu0 %v5422_v8 }
 0x4dd   :  { %4879 = vmatmul.mubr.msk.bf16.gmra.mrb[32].mxu0 %vm121_vm1, %v5493_v5 }
 0x4de   :  { %4891 = vmatpush3.bf16.msra.mxu0 %v5422_v8 }
 0x4df   :  { %4892 = vmatprep.subr.bf16.mxu0 %v5423_v9 }
 0x4e2   :  { %4893 = vmatpush3.bf16.msra.mxu0 %v5423_v9 }
 0x4e3   :  { %4894 = vmatprep.subr.bf16.mxu0 %v5424_v12 }
 0x4e6   :  { %4895 = vmatpush3.bf16.msra.mxu0 %v5424_v12 }
 0x4e7   :  { %4896 = vmatprep.subr.bf16.mxu0 %v5425_v46 }
 0x4ea   :  { %4897 = vmatpush3.bf16.msra.mxu0 %v5425_v46 }
 0x4eb   :  { %4910 = vmatprep.subr.bf16.mxu0 %v5926_v13 }
 0x594   :  { %v2243_v17 = vpop.f32.mrb[36].mxu1 }
 0x595   :  { %v2327_v18 = vmul.f32 %v5936_v15, %v2243_v17  ;;  %v4854_v20 = vpop.f32.mrb[37].mxu1 }
 0x596   :  { %v2246_v24 = vpop.f32.mrb[38].mxu1 }
 0x597   :  { %v2343_v26 = vadd.f32 %v5941_v16, %v2327_v18  ;;  %v2328_v27 = vmul.f32 %v5936_v15, %v2246_v24  ;;  %v4855_v30 = vpop.f32.mrb[39].mxu1 }
 0x599   :  { %v2355_v31 = vmax.f32 %v2343_v26, 0.0  ;;  %v2344_v36 = vadd.f32 %v5941_v16, %v2328_v27 }
 0x59b   :  { %2367 = vst [vmem:[#allocation2 + $0x4] sm:$0xff] %v2355_v31  ;;  %v2356_v61 = vmax.f32 %v2344_v36, 0.0 }
 0x59c   :  { %v2251_v44 = vpop.f32.mrb[40].mxu1 }
 0x59d   :  { %2368 = vst [vmem:[#allocation2 + $0x14] sm:$0xff] %v2356_v61  ;;  %v2329_v38 = vmul.f32 %v5936_v15, %v2251_v44  ;;  %v4858_v35 = vpop.f32.mrb[41].mxu1  ;;  %v5948_v45 = vpack.c.bf16 %v2356_v61, %v2355_v31 }
 0x59e   :  { %v2254_v47 = vpop.f32.mrb[42].mxu1 }
 0x59f   :  { %v2345_v48 = vadd.f32 %v5941_v16, %v2329_v38  ;;  %v2330_v50 = vmul.f32 %v5936_v15, %v2254_v47  ;;  %v4859_v52 = vpop.f32.mrb[43].mxu1 }
 0x5a0   :  { %v2300_v55 = vpop.f32.mrb[24].mxu0 }
 0x5a1   :  { %v2357_v53 = vmax.f32 %v2345_v48, 0.0  ;;  %v2346_v60 = vadd.f32 %v5941_v16, %v2330_v50  ;;  %v2333_v56 = vmul.f32 %v5936_v15, %v2300_v55  ;;  %v4872_v62 = vpop.f32.mrb[25].mxu0 }
 0x5a2   :  { %v2303_v32 = vpop.f32.mrb[26].mxu0  ;;  %v2429_v12 = vld [vmem:[#allocation2 + $0x1] sm:$0xff] }
 0x5a3   :  { %2369 = vst [vmem:[#allocation2 + $0x24] sm:$0xff] %v2357_v53  ;;  %v2358_v4 = vmax.f32 %v2346_v60, 0.0  ;;  %v2349_v5 = vadd.f32 %v5941_v16, %v2333_v56  ;;  %v2334_v41 = vmul.f32 %v5936_v15, %v2303_v32  ;;  %v4873_v8 = vpop.f32.mrb[27].mxu0 }
 0x5a4   :  { %v2259_v9 = vpop.f32.mrb[44].mxu1  ;;  %v2430_v46 = vld [vmem:[#allocation2 + $0x11] sm:$0xff]  ;;  %v5427_v8 = vld [vmem:[#allocation3 + $0x288] sm:$0xff]  }
 0x5a5   :  { %2370 = vst [vmem:[#allocation2 + $0x34] sm:$0xff] %v2358_v4  ;;  %v2331_v0 = vmul.f32 %v5936_v15, %v2259_v9  ;;  %v4862_v17 = vpop.f32.mrb[45].mxu1  ;;  %v2361_v18 = vmax.f32 %v2349_v5, 0.0  ;;  %v2350_v20 = vadd.f32 %v5941_v16, %v2334_v41  ;;  %v2441_v24 = vpack.c.bf16 %v2430_v46, %v2429_v12 }
 0x5a6   :  { %v2262_v26 = vpop.f32.mrb[46].mxu1  ;;  %v5958_v27 = vpack.c.bf16 %v2358_v4, %v2357_v53 }
 0x5a7   :  { %v2347_v30 = vadd.f32 %v5941_v16, %v2331_v0  ;;  %2373 = vst [vmem:[#allocation2 + $0x64] sm:$0xff] %v2361_v18  ;;  %v2332_v31 = vmul.f32 %v5936_v15, %v2262_v26  ;;  %v2362_v36 = vmax.f32 %v2350_v20, 0.0  ;;  %4898 = vmatprep.mubr.bf16.mxu0 %v2441_v24  ;;  %v4863_v61 = vpop.f32.mrb[47].mxu1 }
 0x5a8   :  { %v2308_v44 = vpop.f32.mrb[28].mxu0 }
 0x5a9   :  { %v2359_v38 = vmax.f32 %v2347_v30, 0.0  ;;  %v2348_v35 = vadd.f32 %v5941_v16, %v2332_v31  ;;  %2374 = vst [vmem:[#allocation2 + $0x74] sm:$0xff] %v2362_v36  ;;  %v2335_v47 = vmul.f32 %v5936_v15, %v2308_v44  ;;  %v4876_v48 = vpop.f32.mrb[29].mxu0  ;;  %v5964_v50 = vpack.c.bf16 %v2362_v36, %v2361_v18  ;;  %v5428_v18 = vld [vmem:[#allocation3 + $0x290] sm:$0xff]  }
 0x5aa   :  { %v2311_v52 = vpop.f32.mrb[30].mxu0  ;;  %v2431_v62 = vld [vmem:[#allocation2 + $0x21] sm:$0xff]  ;;  %v5429_v48 = vld [vmem:[#allocation3 + $0x298] sm:$0xff]  }
 0x5ab   :  { %2371 = vst [vmem:[#allocation2 + $0x44] sm:$0xff] %v2359_v38  ;;  %v2360_v55 = vmax.f32 %v2348_v35, 0.0  ;;  %v2351_v53 = vadd.f32 %v5941_v16, %v2335_v47  ;;  %v2336_v60 = vmul.f32 %v5936_v15, %v2311_v52  ;;  %v4877_v56 = vpop.f32.mrb[31].mxu0 }
 0x5ac   :  { %v2432_v32 = vld [vmem:[#allocation2 + $0x31] sm:$0xff] }
 0x5ad   :  { %2372 = vst [vmem:[#allocation2 + $0x54] sm:$0xff] %v2360_v55  ;;  %v2363_v4 = vmax.f32 %v2351_v53, 0.0  ;;  %v2352_v5 = vadd.f32 %v5941_v16, %v2336_v60  ;;  %v2442_v41 = vpack.c.bf16 %v2432_v32, %v2431_v62  ;;  %v5969_v9 = vpack.c.bf16 %v2360_v55, %v2359_v38 }
 0x5ae   :  { %v2435_v44 = vld [vmem:[#allocation2 + $0x61] sm:$0xff] }
 0x5af   :  { %2375 = vst [vmem:[#allocation2 + $0x84] sm:$0xff] %v2363_v4  ;;  %v2364_v12 = vmax.f32 %v2352_v5, 0.0  ;;  %4899 = vmatmul.mubr.bf16.vlgmr.msra.gmra.mrb[36].mxu0 %v2442_v41 }
 0x5b0   :  { %4911 = vmatpush3.bf16.msra.mxu0 %v5926_v13  ;;  %v2316_v46 = vpop.f32.mrb[32].mxu0  ;;  %v2436_v13 = vld [vmem:[#allocation2 + $0x71] sm:$0xff] }
 0x5b1   :  { %2376 = vst [vmem:[#allocation2 + $0x94] sm:$0xff] %v2364_v12  ;;  %v2337_v0 = vmul.f32 %v5936_v15, %v2316_v46  ;;  %v4880_v17 = vpop.f32.mrb[33].mxu0  ;;  %4912 = vmatprep.subr.bf16.mxu0 %v5427_v8  ;;  %v5973_v26 = vpack.c.bf16 %v2364_v12, %v2363_v4  ;;  %v2444_v53 = vpack.c.bf16 %v2436_v13, %v2435_v44  ;;  %v2396_v4 = vld [vmem:[#allocation2 + $0x10] sm:$0xff]  ;;  %v2401_v13 = vld [vmem:[#allocation2 + $0x60] sm:$0xff] }
 0x5b2   :  { %v2319_v20 = vpop.f32.mrb[34].mxu0  ;;  %v2433_v24 = vld [vmem:[#allocation2 + $0x41] sm:$0xff]  ;;  %v5432_v12 = vld [vmem:[#allocation3 + $0x2b0] sm:$0xff]  }
 0x5b3   :  { %v2353_v30 = vadd.f32 %v5941_v16, %v2337_v0  ;;  %v2338_v31 = vmul.f32 %v5936_v15, %v2319_v20  ;;  %v4881_v36 = vpop.f32.mrb[35].mxu0  ;;  %v5430_v15 = vld [vmem:[#allocation3 + $0x2a0] sm:$0xff]   ;;  %v5433_v0 = vld [vmem:[#allocation3 + $0x2b8] sm:$0xff]   ;;  %v5436_v44 = vld [vmem:[#allocation3 + $0x310] sm:$0xff]  }
 0x5b4   :  { %4913 = vmatpush3.bf16.msra.mxu0 %v5427_v8  ;;  %v2434_v61 = vld [vmem:[#allocation2 + $0x51] sm:$0xff]  ;;  %v2395_v8 = vld [vmem:[#allocation2] sm:$0xff]  ;;  %v5435_v36 = vld [vmem:[#allocation3 + $0x308] sm:$0xff]  }
 0x5b5   :  { %v2365_v38 = vmax.f32 %v2353_v30, 0.0  ;;  %v2354_v35 = vadd.f32 %v5941_v16, %v2338_v31  ;;  %4914 = vmatprep.subr.bf16.mxu0 %v5428_v18  ;;  %v2443_v47 = vpack.c.bf16 %v2434_v61, %v2433_v24  ;;  %v5431_v16 = vld [vmem:[#allocation3 + $0x2a8] sm:$0xff]   ;;  %v2407_v46 = vpack.c.bf16 %v2396_v4, %v2395_v8  ;;  %v5434_v17 = vld [vmem:[#allocation3 + $0x300] sm:$0xff]   ;;  %v2400_v24 = vld [vmem:[#allocation2 + $0x50] sm:$0xff] }
 0x5b6   :  { %v2437_v52 = vld [vmem:[#allocation2 + $0x81] sm:$0xff]  ;;  %v5441_v8 = vld [vmem:[#allocation3 + $0x338] sm:$0xff]  }
 0x5b7   :  { %2377 = vst [vmem:[#allocation2 + $0xa4] sm:$0xff] %v2365_v38  ;;  %v2366_v55 = vmax.f32 %v2354_v35, 0.0  ;;  %4902 = vmatprep.mubr.bf16.mxu0 %v2443_v47  ;;  %v2399_v20 = vld [vmem:[#allocation2 + $0x40] sm:$0xff]  ;;  %v5439_v4 = vld [vmem:[#allocation3 + $0x328] sm:$0xff]  }
 0x5b8   :  { %4915 = vmatpush3.bf16.msra.mxu0 %v5428_v18  ;;  %v2438_v60 = vld [vmem:[#allocation2 + $0x91] sm:$0xff]  ;;  %v2397_v30 = vld [vmem:[#allocation2 + $0x20] sm:$0xff]  ;;  %v2409_v61 = vpack.c.bf16 %v2400_v24, %v2399_v20  ;;  %v5443_v24 = vld [vmem:[#allocation3 + $0x348] sm:$0xff]  }
 0x5b9   :  { %2378 = vst [vmem:[#allocation2 + $0xb4] sm:$0xff] %v2366_v55  ;;  %4916 = vmatprep.subr.bf16.mxu0 %v5429_v48  ;;  %4903 = vmatmul.mubr.bf16.gmra.mrb[40].mxu0 %v2444_v53  ;;  %v2445_v56 = vpack.c.bf16 %v2438_v60, %v2437_v52  ;;  %v5978_v62 = vpack.c.bf16 %v2366_v55, %v2365_v38  ;;  %v2398_v18 = vld [vmem:[#allocation2 + $0x30] sm:$0xff]  ;;  %v2403_v35 = vld [vmem:[#allocation2 + $0x80] sm:$0xff]  ;;  %v5437_v52 = vld [vmem:[#allocation3 + $0x318] sm:$0xff]  }
 0x5ba   :  { %v2408_v31 = vpack.c.bf16 %v2398_v18, %v2397_v30  ;;  %v2402_v38 = vld [vmem:[#allocation2 + $0x70] sm:$0xff]  ;;  %v5438_v53 = vld [vmem:[#allocation3 + $0x320] sm:$0xff]  }
 0x5bb   :  { %4906 = vmatprep.mubr.bf16.mxu0 %v2445_v56  ;;  %v2404_v47 = vld [vmem:[#allocation2 + $0x90] sm:$0xff]  ;;  %v2723_v18 = vld [vmem:[#allocation2 + $0x22] sm:$0xff] }
 0x5bc   :  { %4917 = vmatpush3.bf16.msra.mxu0 %v5429_v48  ;;  %v2410_v48 = vpack.c.bf16 %v2402_v38, %v2401_v13  ;;  %v2411_v55 = vpack.c.bf16 %v2404_v47, %v2403_v35  ;;  %v2722_v56 = vld [vmem:[#allocation2 + $0x12] sm:$0xff] }
 0x5bd   :  { %4918 = vmatprep.subr.bf16.mxu0 %v5430_v15  ;;  %v2730_v13 = vld [vmem:[#allocation2 + $0x92] sm:$0xff] }
 0x5be   :  { %v2439_v32 = vld [vmem:[#allocation2 + $0xa1] sm:$0xff]  ;;  %v5445_v35 = vld [vmem:[#allocation3 + $0x358] sm:$0xff]  }
 0x5bf   :  { %v2405_v60 = vld [vmem:[#allocation2 + $0xa0] sm:$0xff] }
 0x5c0   :  { %4919 = vmatpush3.bf16.msra.mxu0 %v5430_v15  ;;  %v2440_v5 = vld [vmem:[#allocation2 + $0xb1] sm:$0xff] }
 0x5c1   :  { %4920 = vmatprep.subr.bf16.mxu0 %v5431_v16  ;;  %v2446_v41 = vpack.c.bf16 %v2440_v5, %v2439_v32  ;;  %v2406_v15 = vld [vmem:[#allocation2 + $0xb0] sm:$0xff]  ;;  %v2721_v32 = vld [vmem:[#allocation2 + $0x2] sm:$0xff] }
 0x5c2   :  { %v2733_v5 = vpack.c.bf16 %v2722_v56, %v2721_v32  ;;  %v5447_v56 = vld [vmem:[#allocation3 + $0x368] sm:$0xff]   ;;  %v5448_v32 = vld [vmem:[#allocation3 + $0x370] sm:$0xff]  }
 0x5c3   :  { %4907 = vmatmul.mubr.bf16.gmra.mrb[44].mxu0 %v2446_v41  ;;  %v5440_v41 = vld [vmem:[#allocation3 + $0x330] sm:$0xff]  }
 0x5c4   :  { %4921 = vmatpush3.bf16.msra.mxu0 %v5431_v16  ;;  %4926 = vmatprep.mubr.bf16.mxu0 %v2407_v46  ;;  %v2412_v16 = vpack.c.bf16 %v2406_v15, %v2405_v60  ;;  %v2724_v46 = vld [vmem:[#allocation2 + $0x32] sm:$0xff]  ;;  %v2896_v15 = vld [vmem:[#allocation2 + $0x3] sm:$0xff] }
 0x5c5   :  { %4922 = vmatprep.subr.bf16.mxu0 %v5432_v12  ;;  %v2734_v20 = vpack.c.bf16 %v2724_v46, %v2723_v18  ;;  %v2898_v46 = vld [vmem:[#allocation2 + $0x23] sm:$0xff] }
 0x5c8   :  { %4923 = vmatpush3.bf16.msra.mxu0 %v5432_v12  ;;  %v5442_v12 = vld [vmem:[#allocation3 + $0x340] sm:$0xff]  }
 0x5c9   :  { %4924 = vmatprep.subr.bf16.mxu0 %v5433_v0 }
 0x5cc   :  { %4925 = vmatpush3.bf16.msra.mxu0 %v5433_v0  ;;  %v2725_v0 = vld [vmem:[#allocation2 + $0x42] sm:$0xff] }
 0x5cd   :  { %4938 = vmatprep.subr.bf16.mxu0 %v5434_v17 }
 0x5cf   :  { %4927 = vmatmul.mubr.bf16.vlgmr.msra.gmra.mrb[36].mxu0 %v2408_v31  ;;  %v5444_v31 = vld [vmem:[#allocation3 + $0x350] sm:$0xff]  }
 0x5d0   :  { %4930 = vmatprep.mubr.bf16.mxu0 %v2409_v61  ;;  %4939 = vmatpush3.bf16.msra.mxu0 %v5434_v17  ;;  %v2726_v17 = vld [vmem:[#allocation2 + $0x52] sm:$0xff] }
 0x5d1   :  { %4940 = vmatprep.subr.bf16.mxu0 %v5435_v36  ;;  %v2735_v30 = vpack.c.bf16 %v2726_v17, %v2725_v0  ;;  %v2728_v61 = vld [vmem:[#allocation2 + $0x72] sm:$0xff]  ;;  %v5451_v17 = vld [vmem:[#allocation3 + $0x388] sm:$0xff]  }
 0x5d4   :  { %4941 = vmatpush3.bf16.msra.mxu0 %v5435_v36  ;;  %v2727_v36 = vld [vmem:[#allocation2 + $0x62] sm:$0xff] }
 0x5d5   :  { %4942 = vmatprep.subr.bf16.mxu0 %v5436_v44  ;;  %v2736_v38 = vpack.c.bf16 %v2728_v61, %v2727_v36  ;;  %v2905_v36 = vld [vmem:[#allocation2 + $0x93] sm:$0xff] }
 0x5d7   :  { %4931 = vmatmul.mubr.bf16.gmra.mrb[40].mxu0 %v2410_v48  ;;  %v5446_v48 = vld [vmem:[#allocation3 + $0x360] sm:$0xff]  }
 0x5d8   :  { %4934 = vmatprep.mubr.bf16.mxu0 %v2411_v55  ;;  %4943 = vmatpush3.bf16.msra.mxu0 %v5436_v44  ;;  %v2729_v44 = vld [vmem:[#allocation2 + $0x82] sm:$0xff]  ;;  %v2732_v55 = vld [vmem:[#allocation2 + $0xb2] sm:$0xff] }
 0x5d9   :  { %4944 = vmatprep.subr.bf16.mxu0 %v5437_v52  ;;  %v2737_v47 = vpack.c.bf16 %v2730_v13, %v2729_v44  ;;  %v5453_v44 = vld [vmem:[#allocation3 + $0x398] sm:$0xff]  }
 0x5dc   :  { %4945 = vmatpush3.bf16.msra.mxu0 %v5437_v52  ;;  %v2731_v52 = vld [vmem:[#allocation2 + $0xa2] sm:$0xff] }
 0x5dd   :  { %4946 = vmatprep.subr.bf16.mxu0 %v5438_v53  ;;  %v2738_v60 = vpack.c.bf16 %v2732_v55, %v2731_v52  ;;  %v5455_v52 = vld [vmem:[#allocation3 + $0x3a8] sm:$0xff]   ;;  %v5456_v55 = vld [vmem:[#allocation3 + $0x3b0] sm:$0xff]  }
 0x5df   :  { %4935 = vmatmul.mubr.bf16.gmra.mrb[44].mxu0 %v2412_v16 }
 0x5e0   :  { %4947 = vmatpush3.bf16.msra.mxu0 %v5438_v53  ;;  %4954 = vmatprep.mubr.bf16.mxu0 %v2733_v5  ;;  %v2897_v53 = vld [vmem:[#allocation2 + $0x13] sm:$0xff]  ;;  %v5450_v5 = vld [vmem:[#allocation3 + $0x380] sm:$0xff]  }
 0x5e1   :  { %4948 = vmatprep.subr.bf16.mxu0 %v5439_v4  ;;  %v2908_v16 = vpack.c.bf16 %v2897_v53, %v2896_v15  ;;  %v5457_v53 = vld [vmem:[#allocation3 + $0x3b8] sm:$0xff]   ;;  %v5459_v15 = vld [vmem:[#allocation3 + $0x3c8] sm:$0xff]  }
 0x5e4   :  { %4949 = vmatpush3.bf16.msra.mxu0 %v5439_v4  ;;  %v5449_v4 = vld [vmem:[#allocation3 + $0x378] sm:$0xff]  }
 0x5e5   :  { %4950 = vmatprep.subr.bf16.mxu0 %v5440_v41 }
 0x5e8   :  { %4951 = vmatpush3.bf16.msra.mxu0 %v5440_v41  ;;  %v2899_v41 = vld [vmem:[#allocation2 + $0x33] sm:$0xff] }
 0x5e9   :  { %4952 = vmatprep.subr.bf16.mxu0 %v5441_v8  ;;  %v2909_v0 = vpack.c.bf16 %v2899_v41, %v2898_v46  ;;  %v3249_v41 = vld [vmem:[#allocation2 + $0x35] sm:$0xff]  ;;  %v3248_v46 = vld [vmem:[#allocation2 + $0x25] sm:$0xff] }
 0x5ec   :  { %4953 = vmatpush3.bf16.msra.mxu0 %v5441_v8  ;;  %v2900_v8 = vld [vmem:[#allocation2 + $0x43] sm:$0xff] }
 0x5ed   :  { %4966 = vmatprep.subr.bf16.mxu0 %v5442_v12 }
 0x5ef   :  { %4955 = vmatmul.mubr.bf16.vlgmr.msra.gmra.mrb[36].mxu0 %v2734_v20  ;;  %v5452_v20 = vld [vmem:[#allocation3 + $0x390] sm:$0xff]  }
 0x5f0   :  { %4958 = vmatprep.mubr.bf16.mxu0 %v2735_v30  ;;  %4967 = vmatpush3.bf16.msra.mxu0 %v5442_v12  ;;  %v2901_v12 = vld [vmem:[#allocation2 + $0x53] sm:$0xff] }
 0x5f1   :  { %4968 = vmatprep.subr.bf16.mxu0 %v5443_v24  ;;  %v2910_v18 = vpack.c.bf16 %v2901_v12, %v2900_v8  ;;  %v2903_v30 = vld [vmem:[#allocation2 + $0x73] sm:$0xff]  ;;  %v3250_v8 = vld [vmem:[#allocation2 + $0x45] sm:$0xff] }
 0x5f2   :  { %v3251_v12 = vld [vmem:[#allocation2 + $0x55] sm:$0xff] }
 0x5f4   :  { %4969 = vmatpush3.bf16.msra.mxu0 %v5443_v24  ;;  %v2902_v24 = vld [vmem:[#allocation2 + $0x63] sm:$0xff] }
 0x5f5   :  { %4970 = vmatprep.subr.bf16.mxu0 %v5444_v31  ;;  %v2911_v61 = vpack.c.bf16 %v2903_v30, %v2902_v24  ;;  %v3253_v24 = vld [vmem:[#allocation2 + $0x75] sm:$0xff]  ;;  %v3254_v30 = vld [vmem:[#allocation2 + $0x85] sm:$0xff] }
 0x5f7   :  { %4959 = vmatmul.mubr.bf16.gmra.mrb[40].mxu0 %v2736_v38  ;;  %v5454_v38 = vld [vmem:[#allocation3 + $0x3a0] sm:$0xff]  }
 0x5f8   :  { %4962 = vmatprep.mubr.bf16.mxu0 %v2737_v47  ;;  %4971 = vmatpush3.bf16.msra.mxu0 %v5444_v31  ;;  %v2904_v31 = vld [vmem:[#allocation2 + $0x83] sm:$0xff]  ;;  %v2907_v47 = vld [vmem:[#allocation2 + $0xb3] sm:$0xff] }
 0x5f9   :  { %4972 = vmatprep.subr.bf16.mxu0 %v5445_v35  ;;  %v2912_v13 = vpack.c.bf16 %v2905_v36, %v2904_v31  ;;  %v3255_v31 = vld [vmem:[#allocation2 + $0x95] sm:$0xff] }
 0x5fc   :  { %4973 = vmatpush3.bf16.msra.mxu0 %v5445_v35  ;;  %v2906_v35 = vld [vmem:[#allocation2 + $0xa3] sm:$0xff] }
 0x5fd   :  { %4974 = vmatprep.subr.bf16.mxu0 %v5446_v48 }
 0x5ff   :  { %4963 = vmatmul.mubr.bf16.gmra.mrb[44].mxu0 %v2738_v60  ;;  %v5458_v60 = vld [vmem:[#allocation3 + $0x3c0] sm:$0xff]  }
 0x600   :  { %4975 = vmatpush3.bf16.msra.mxu0 %v5446_v48  ;;  %4982 = vmatprep.mubr.bf16.mxu0 %v2908_v16  ;;  %v2913_v48 = vpack.c.bf16 %v2907_v47, %v2906_v35  ;;  %v5462_v16 = vld [vmem:[#allocation3 + $0x3e0] sm:$0xff]   ;;  %v3257_v35 = vld [vmem:[#allocation2 + $0xb5] sm:$0xff] }
 0x601   :  { %4976 = vmatprep.subr.bf16.mxu0 %v5447_v56  ;;  %v3422_v47 = vld [vmem:[#allocation2 + $0x16] sm:$0xff] }
 0x604   :  { %4977 = vmatpush3.bf16.msra.mxu0 %v5447_v56  ;;  %v5460_v56 = vld [vmem:[#allocation3 + $0x3d0] sm:$0xff]  }
 0x605   :  { %4978 = vmatprep.subr.bf16.mxu0 %v5448_v32 }
 0x608   :  { %4979 = vmatpush3.bf16.msra.mxu0 %v5448_v32  ;;  %v3247_v32 = vld [vmem:[#allocation2 + $0x15] sm:$0xff] }
 0x609   :  { %4980 = vmatprep.subr.bf16.mxu0 %v5449_v4 }
 0x60c   :  { %4981 = vmatpush3.bf16.msra.mxu0 %v5449_v4  ;;  %v3246_v4 = vld [vmem:[#allocation2 + $0x5] sm:$0xff] }
 0x60d   :  { %4994 = vmatprep.subr.bf16.mxu0 %v5450_v5 }
 0x60f   :  { %4983 = vmatmul.mubr.bf16.vlgmr.msra.gmra.mrb[36].mxu0 %v2909_v0  ;;  %v3259_v0 = vpack.c.bf16 %v3249_v41, %v3248_v46  ;;  %v3428_v41 = vld [vmem:[#allocation2 + $0x76] sm:$0xff] }
 0x610   :  { %4986 = vmatprep.mubr.bf16.mxu0 %v2910_v18  ;;  %4995 = vmatpush3.bf16.msra.mxu0 %v5450_v5  ;;  %v3258_v5 = vpack.c.bf16 %v3247_v32, %v3246_v4  ;;  %v3260_v18 = vpack.c.bf16 %v3251_v12, %v3250_v8  ;;  %v3426_v32 = vld [vmem:[#allocation2 + $0x56] sm:$0xff]  ;;  %v3423_v4 = vld [vmem:[#allocation2 + $0x26] sm:$0xff] }
 0x611   :  { %4996 = vmatprep.subr.bf16.mxu0 %v5451_v17  ;;  %v3429_v8 = vld [vmem:[#allocation2 + $0x86] sm:$0xff]  ;;  %v3430_v12 = vld [vmem:[#allocation2 + $0x96] sm:$0xff] }
 0x614   :  { %4997 = vmatpush3.bf16.msra.mxu0 %v5451_v17  ;;  %v5467_v17 = vld [vmem:[#allocation3 + $0x408] sm:$0xff]  }
 0x615   :  { %4998 = vmatprep.subr.bf16.mxu0 %v5452_v20 }
 0x617   :  { %4987 = vmatmul.mubr.bf16.gmra.mrb[40].mxu0 %v2911_v61  ;;  %v5469_v61 = vld [vmem:[#allocation3 + $0x418] sm:$0xff]  }
 0x618   :  { %4990 = vmatprep.mubr.bf16.mxu0 %v2912_v13  ;;  %4999 = vmatpush3.bf16.msra.mxu0 %v5452_v20  ;;  %v3252_v20 = vld [vmem:[#allocation2 + $0x65] sm:$0xff] }
 0x619   :  { %5000 = vmatprep.subr.bf16.mxu0 %v5453_v44  ;;  %v3261_v36 = vpack.c.bf16 %v3253_v24, %v3252_v20  ;;  %v5470_v13 = vld [vmem:[#allocation3 + $0x420] sm:$0xff]   ;;  %v3432_v20 = vld [vmem:[#allocation2 + $0xb6] sm:$0xff] }
 0x61a   :  { %v3597_v24 = vld [vmem:[#allocation2 + $0x17] sm:$0xff] }
 0x61c   :  { %5001 = vmatpush3.bf16.msra.mxu0 %v5453_v44  ;;  %v3262_v44 = vpack.c.bf16 %v3255_v31, %v3254_v30  ;;  %v3596_v31 = vld [vmem:[#allocation2 + $0x7] sm:$0xff] }
 0x61d   :  { %5002 = vmatprep.subr.bf16.mxu0 %v5454_v38 }
 0x61f   :  { %4991 = vmatmul.mubr.bf16.gmra.mrb[44].mxu0 %v2913_v48 }
 0x620   :  { %5003 = vmatpush3.bf16.msra.mxu0 %v5454_v38  ;;  %5010 = vmatprep.mubr.bf16.mxu0 %v5948_v45  ;;  %v5461_v45 = vld [vmem:[#allocation3 + $0x3d8] sm:$0xff]   ;;  %v3256_v38 = vld [vmem:[#allocation2 + $0xa5] sm:$0xff] }
 0x621   :  { %5004 = vmatprep.subr.bf16.mxu0 %v5455_v52  ;;  %v3263_v48 = vpack.c.bf16 %v3257_v35, %v3256_v38  ;;  %v5482_v38 = vld [vmem:[#allocation3 + $0x480] sm:$0xff]   ;;  %v3599_v35 = vld [vmem:[#allocation2 + $0x37] sm:$0xff] }
 0x624   :  { %5005 = vmatpush3.bf16.msra.mxu0 %v5455_v52  ;;  %v3421_v52 = vld [vmem:[#allocation2 + $0x6] sm:$0xff] }
 0x625   :  { %5006 = vmatprep.subr.bf16.mxu0 %v5456_v55 }
 0x628   :  { %5007 = vmatpush3.bf16.msra.mxu0 %v5456_v55  ;;  %v5471_v55 = vld [vmem:[#allocation3 + $0x428] sm:$0xff]  }
 0x629   :  { %5008 = vmatprep.subr.bf16.mxu0 %v5457_v53 }
 0x62c   :  { %5009 = vmatpush3.bf16.msra.mxu0 %v5457_v53  ;;  %v3433_v53 = vpack.c.bf16 %v3422_v47, %v3421_v52  ;;  %v3600_v47 = vld [vmem:[#allocation2 + $0x47] sm:$0xff] }
 0x62d   :  { %5022 = vmatprep.subr.bf16.mxu0 %v5458_v60  ;;  %v3598_v52 = vld [vmem:[#allocation2 + $0x27] sm:$0xff] }
 0x62f   :  { %5011 = vmatmul.mubr.bf16.vlgmr.msra.gmra.mrb[36].mxu0 %v5958_v27  ;;  %v5463_v27 = vld [vmem:[#allocation3 + $0x3e8] sm:$0xff]  }
 0x630   :  { %5014 = vmatprep.mubr.bf16.mxu0 %v5969_v9  ;;  %5023 = vmatpush3.bf16.msra.mxu0 %v5458_v60  ;;  %v5464_v9 = vld [vmem:[#allocation3 + $0x3f0] sm:$0xff]  }
 0x631   :  { %5024 = vmatprep.subr.bf16.mxu0 %v5459_v15  ;;  %v5472_v60 = vld [vmem:[#allocation3 + $0x430] sm:$0xff]  }
 0x634   :  { %5025 = vmatpush3.bf16.msra.mxu0 %v5459_v15  ;;  %v5473_v15 = vld [vmem:[#allocation3 + $0x438] sm:$0xff]  }
 0x635   :  { %5026 = vmatprep.subr.bf16.mxu0 %v5460_v56 }
 0x637   :  { %5015 = vmatmul.mubr.bf16.gmra.mrb[40].mxu0 %v5964_v50  ;;  %v5465_v50 = vld [vmem:[#allocation3 + $0x3f8] sm:$0xff]  }
 0x638   :  { %5018 = vmatprep.mubr.bf16.mxu0 %v5973_v26  ;;  %5027 = vmatpush3.bf16.msra.mxu0 %v5460_v56  ;;  %v5466_v26 = vld [vmem:[#allocation3 + $0x400] sm:$0xff]  }
 0x639   :  { %5028 = vmatprep.subr.bf16.mxu0 %v5461_v45  ;;  %v5474_v56 = vld [vmem:[#allocation3 + $0x440] sm:$0xff]  }
 0x63c   :  { %5029 = vmatpush3.bf16.msra.mxu0 %v5461_v45  ;;  %v3424_v45 = vld [vmem:[#allocation2 + $0x36] sm:$0xff] }
 0x63d   :  { %5030 = vmatprep.subr.bf16.mxu0 %v5462_v16 }
 0x63f   :  { %5019 = vmatmul.mubr.bf16.gmra.mrb[44].mxu0 %v5978_v62  ;;  %v5468_v62 = vld [vmem:[#allocation3 + $0x410] sm:$0xff]  }
 0x640   :  { %5031 = vmatpush3.bf16.msra.mxu0 %v5462_v16  ;;  %5038 = vmatprep.mubr.bf16.mxu0 %v3258_v5  ;;  %v3425_v16 = vld [vmem:[#allocation2 + $0x46] sm:$0xff] }
 0x641   :  { %5032 = vmatprep.subr.bf16.mxu0 %v5463_v27  ;;  %v5475_v5 = vld [vmem:[#allocation3 + $0x448] sm:$0xff]  }
 0x644   :  { %5033 = vmatpush3.bf16.msra.mxu0 %v5463_v27  ;;  %v3434_v27 = vpack.c.bf16 %v3424_v45, %v3423_v4  ;;  %v3603_v45 = vld [vmem:[#allocation2 + $0x77] sm:$0xff] }
 0x645   :  { %5034 = vmatprep.subr.bf16.mxu0 %v5464_v9 }
 0x648   :  { %5035 = vmatpush3.bf16.msra.mxu0 %v5464_v9  ;;  %v3435_v9 = vpack.c.bf16 %v3426_v32, %v3425_v16  ;;  %v3604_v16 = vld [vmem:[#allocation2 + $0x87] sm:$0xff]  ;;  %v3605_v32 = vld [vmem:[#allocation2 + $0x97] sm:$0xff] }
 0x649   :  { %5036 = vmatprep.subr.bf16.mxu0 %v5465_v50 }
 0x64c   :  { %5037 = vmatpush3.bf16.msra.mxu0 %v5465_v50  ;;  %v5476_v50 = vld [vmem:[#allocation3 + $0x450] sm:$0xff]  }
 0x64d   :  { %5050 = vmatprep.subr.bf16.mxu0 %v5466_v26 }
 0x64f   :  { %5039 = vmatmul.mubr.bf16.vlgmr.msra.gmra.mrb[36].mxu0 %v3259_v0  ;;  %v5477_v0 = vld [vmem:[#allocation3 + $0x458] sm:$0xff]  }
 0x650   :  { %5042 = vmatprep.mubr.bf16.mxu0 %v3260_v18  ;;  %5051 = vmatpush3.bf16.msra.mxu0 %v5466_v26  ;;  %v3427_v26 = vld [vmem:[#allocation2 + $0x66] sm:$0xff] }
 0x651   :  { %5052 = vmatprep.subr.bf16.mxu0 %v5467_v17  ;;  %v3436_v46 = vpack.c.bf16 %v3428_v41, %v3427_v26  ;;  %v5478_v18 = vld [vmem:[#allocation3 + $0x460] sm:$0xff]   ;;  %v3607_v26 = vld [vmem:[#allocation2 + $0xb7] sm:$0xff] }
 0x652   :  { %v3772_v41 = vld [vmem:[#allocation2 + $0x18] sm:$0xff] }
 0x654   :  { %5053 = vmatpush3.bf16.msra.mxu0 %v5467_v17  ;;  %v3437_v17 = vpack.c.bf16 %v3430_v12, %v3429_v8  ;;  %v3771_v12 = vld [vmem:[#allocation2 + $0x8] sm:$0xff] }
 0x655   :  { %5054 = vmatprep.subr.bf16.mxu0 %v5468_v62 }
 0x657   :  { %5043 = vmatmul.mubr.bf16.gmra.mrb[40].mxu0 %v3261_v36  ;;  %v5479_v36 = vld [vmem:[#allocation3 + $0x468] sm:$0xff]  }
 0x658   :  { %5046 = vmatprep.mubr.bf16.mxu0 %v3262_v44  ;;  %5055 = vmatpush3.bf16.msra.mxu0 %v5468_v62  ;;  %v3431_v62 = vld [vmem:[#allocation2 + $0xa6] sm:$0xff]  ;;  %v5480_v44 = vld [vmem:[#allocation3 + $0x470] sm:$0xff]  }
 0x659   :  { %5056 = vmatprep.subr.bf16.mxu0 %v5469_v61  ;;  %v3438_v30 = vpack.c.bf16 %v3432_v20, %v3431_v62  ;;  %v3774_v62 = vld [vmem:[#allocation2 + $0x38] sm:$0xff]  ;;  %v3775_v20 = vld [vmem:[#allocation2 + $0x48] sm:$0xff] }
 0x65c   :  { %5057 = vmatpush3.bf16.msra.mxu0 %v5469_v61  ;;  %v3608_v61 = vpack.c.bf16 %v3597_v24, %v3596_v31  ;;  %v3776_v24 = vld [vmem:[#allocation2 + $0x58] sm:$0xff] }
 0x65d   :  { %5058 = vmatprep.subr.bf16.mxu0 %v5470_v13 }
 0x65f   :  { %5047 = vmatmul.mubr.bf16.gmra.mrb[44].mxu0 %v3263_v48  ;;  %v3601_v48 = vld [vmem:[#allocation2 + $0x57] sm:$0xff] }
 0x660   :  { %5059 = vmatpush3.bf16.msra.mxu0 %v5470_v13  ;;  %5066 = vmatprep.mubr.bf16.mxu0 %v3433_v53  ;;  %v5481_v13 = vld [vmem:[#allocation3 + $0x478] sm:$0xff]   ;;  %v5483_v53 = vld [vmem:[#allocation3 + $0x488] sm:$0xff]  }
 0x661   :  { %5060 = vmatprep.subr.bf16.mxu0 %v5471_v55 }
 0x664   :  { %5061 = vmatpush3.bf16.msra.mxu0 %v5471_v55  ;;  %v3609_v55 = vpack.c.bf16 %v3599_v35, %v3598_v52  ;;  %v3782_v52 = vld [vmem:[#allocation2 + $0xb8] sm:$0xff] }
 0x665   :  { %5062 = vmatprep.subr.bf16.mxu0 %v5472_v60 }
 0x668   :  { %5063 = vmatpush3.bf16.msra.mxu0 %v5472_v60  ;;  %v3610_v60 = vpack.c.bf16 %v3601_v48, %v3600_v47  ;;  %v3781_v48 = vld [vmem:[#allocation2 + $0xa8] sm:$0xff] }
 0x669   :  { %5064 = vmatprep.subr.bf16.mxu0 %v5473_v15 }
 0x66c   :  { %5065 = vmatpush3.bf16.msra.mxu0 %v5473_v15  ;;  %v5484_v15 = vld [vmem:[#allocation3 + $0x490] sm:$0xff]  }
 0x66d   :  { %5078 = vmatprep.subr.bf16.mxu0 %v5474_v56 }
 0x66f   :  { %5067 = vmatmul.mubr.bf16.vlgmr.msra.gmra.mrb[36].mxu0 %v3434_v27  ;;  %v5485_v27 = vld [vmem:[#allocation3 + $0x498] sm:$0xff]  }
 0x670   :  { %5070 = vmatprep.mubr.bf16.mxu0 %v3435_v9  ;;  %5079 = vmatpush3.bf16.msra.mxu0 %v5474_v56  ;;  %v3602_v56 = vld [vmem:[#allocation2 + $0x67] sm:$0xff] }
 0x671   :  { %5080 = vmatprep.subr.bf16.mxu0 %v5475_v5  ;;  %v3611_v4 = vpack.c.bf16 %v3603_v45, %v3602_v56  ;;  %v5486_v9 = vld [vmem:[#allocation3 + $0x4a0] sm:$0xff]   ;;  %v5997_v45 = vrot.slane %v5933_v14, %v1990_v49 }
 0x674   :  { %5081 = vmatpush3.bf16.msra.mxu0 %v5475_v5  ;;  %v3612_v5 = vpack.c.bf16 %v3605_v32, %v3604_v16 }
 0x675   :  { %5082 = vmatprep.subr.bf16.mxu0 %v5476_v50 }
 0x677   :  { %5071 = vmatmul.mubr.bf16.gmra.mrb[40].mxu0 %v3436_v46  ;;  %v5487_v46 = vld [vmem:[#allocation3 + $0x4a8] sm:$0xff]  }
 0x678   :  { %5074 = vmatprep.mubr.bf16.mxu0 %v3437_v17  ;;  %5083 = vmatpush3.bf16.msra.mxu0 %v5476_v50  ;;  %v3606_v50 = vld [vmem:[#allocation2 + $0xa7] sm:$0xff]  ;;  %v5488_v17 = vld [vmem:[#allocation3 + $0x4b0] sm:$0xff]  }
 0x679   :  { %5084 = vmatprep.subr.bf16.mxu0 %v5477_v0  ;;  %v3613_v8 = vpack.c.bf16 %v3607_v26, %v3606_v50 }
 0x67c   :  { %5085 = vmatpush3.bf16.msra.mxu0 %v5477_v0  ;;  %v3783_v0 = vpack.c.bf16 %v3772_v41, %v3771_v12 }
 0x67d   :  { %5086 = vmatprep.subr.bf16.mxu0 %v5478_v18 }
 0x67f   :  { %5075 = vmatmul.mubr.bf16.gmra.mrb[44].mxu0 %v3438_v30  ;;  %v3773_v30 = vld [vmem:[#allocation2 + $0x28] sm:$0xff] }
 0x680   :  { %5087 = vmatpush3.bf16.msra.mxu0 %v5478_v18  ;;  %5094 = vmatprep.mubr.bf16.mxu0 %v3608_v61  ;;  %v5489_v18 = vld [vmem:[#allocation3 + $0x4b8] sm:$0xff]   ;;  %v3784_v31 = vpack.c.bf16 %v3774_v62, %v3773_v30  ;;  %v3777_v61 = vld [vmem:[#allocation2 + $0x68] sm:$0xff] }
 0x681   :  { %5088 = vmatprep.subr.bf16.mxu0 %v5479_v36 }
 0x684   :  { %5089 = vmatpush3.bf16.msra.mxu0 %v5479_v36  ;;  %v3785_v36 = vpack.c.bf16 %v3776_v24, %v3775_v20 }
 0x685   :  { %5090 = vmatprep.subr.bf16.mxu0 %v5480_v44 }
 0x688   :  { %5091 = vmatpush3.bf16.msra.mxu0 %v5480_v44  ;;  %v3778_v44 = vld [vmem:[#allocation2 + $0x78] sm:$0xff] }
 0x689   :  { %5092 = vmatprep.subr.bf16.mxu0 %v5481_v13  ;;  %v3786_v35 = vpack.c.bf16 %v3778_v44, %v3777_v61 }
 0x68c   :  { %5093 = vmatpush3.bf16.msra.mxu0 %v5481_v13  ;;  %v3779_v13 = vld [vmem:[#allocation2 + $0x88] sm:$0xff] }
 0x68d   :  { %5106 = vmatprep.subr.bf16.mxu0 %v5482_v38 }
 0x68f   :  { %5095 = vmatmul.mubr.bf16.vlgmr.msra.gmra.mrb[36].mxu0 %v3609_v55  ;;  %v3788_v55 = vpack.c.bf16 %v3782_v52, %v3781_v48 }
 0x690   :  { %5098 = vmatprep.mubr.bf16.mxu0 %v3610_v60  ;;  %5107 = vmatpush3.bf16.msra.mxu0 %v5482_v38  ;;  %v3780_v38 = vld [vmem:[#allocation2 + $0x98] sm:$0xff]  ;;  %v5992_v60 = vrot.slane %v5933_v14, %v399_v42 }
 0x691   :  { %5108 = vmatprep.subr.bf16.mxu0 %v5483_v53  ;;  %v3787_v47 = vpack.c.bf16 %v3780_v38, %v3779_v13 }
 0x694   :  { %5109 = vmatpush3.bf16.msra.mxu0 %v5483_v53  ;;  %v3933_v53 = vrot.slane %v5933_v14, %v383_v40 }
 0x695   :  { %5110 = vmatprep.subr.bf16.mxu0 %v5484_v15 }
 0x697   :  { %5099 = vmatmul.mubr.bf16.gmra.mrb[40].mxu0 %v3611_v4 }
 0x698   :  { %5102 = vmatprep.mubr.bf16.mxu0 %v3612_v5  ;;  %5111 = vmatpush3.bf16.msra.mxu0 %v5484_v15 }
 0x699   :  { %5112 = vmatprep.subr.bf16.mxu0 %v5485_v27 }
 0x69c   :  { %5113 = vmatpush3.bf16.msra.mxu0 %v5485_v27 }
 0x69d   :  { %5114 = vmatprep.subr.bf16.mxu0 %v5486_v9 }
 0x69f   :  { %5103 = vmatmul.mubr.bf16.gmra.mrb[44].mxu0 %v3613_v8 }
 0x6a0   :  { %5115 = vmatpush3.bf16.msra.mxu0 %v5486_v9  ;;  %5122 = vmatprep.mubr.bf16.mxu0 %v3783_v0 }
 0x6a1   :  { %5116 = vmatprep.subr.bf16.mxu0 %v5487_v46 }
 0x6a4   :  { %5117 = vmatpush3.bf16.msra.mxu0 %v5487_v46 }
 0x6a5   :  { %5118 = vmatprep.subr.bf16.mxu0 %v5488_v17 }
 0x6a8   :  { %5119 = vmatpush3.bf16.msra.mxu0 %v5488_v17 }
 0x6a9   :  { %5120 = vmatprep.subr.bf16.mxu0 %v5489_v18 }
 0x6ac   :  { %5121 = vmatpush3.bf16.msra.mxu0 %v5489_v18 }
 0x6af   :  { %5123 = vmatmul.mubr.bf16.vlgmr.msra.gmra.mrb[36].mxu0 %v3784_v31 }
 0x6b0   :  { %5126 = vmatprep.mubr.bf16.mxu0 %v3785_v36 }
 0x6b7   :  { %5127 = vmatmul.mubr.bf16.gmra.mrb[40].mxu0 %v3786_v35 }
 0x6b8   :  { %5130 = vmatprep.mubr.bf16.mxu0 %v3787_v47 }
 0x6bf   :  { %5131 = vmatmul.mubr.bf16.gmra.mrb[44].mxu0 %v3788_v55 }
 0x782   :  { %v5124_v15 = vpop.f32.mrb[36].mxu0 }
 0x783   :  { %v3936_v56 = vadd.f32 %v5124_v15, %v3933_v53  ;;  %v3871_v16 = vpop.f32.mrb[37].mxu0 }
 0x784   :  { %v3934_v32 = vadd.f32 %v3933_v53, %v3871_v16  ;;  %v5125_v4 = vpop.f32.mrb[38].mxu0 }
 0x785   :  { %v3952_v27 = vmul.f32 %v5992_v60, %v3936_v56  ;;  %v3937_v5 = vadd.f32 %v5125_v4, %v3933_v53  ;;  %v3874_v9 = vpop.f32.mrb[39].mxu0 }
 0x786   :  { %v3950_v40 = vmul.f32 %v5992_v60, %v3934_v32  ;;  %v3935_v50 = vadd.f32 %v3933_v53, %v3874_v9 }
 0x787   :  { %v3968_v42 = vadd.f32 %v5997_v45, %v3952_v27  ;;  %v3953_v26 = vmul.f32 %v5992_v60, %v3937_v5 }
 0x788   :  { %v3966_v41 = vadd.f32 %v5997_v45, %v3950_v40  ;;  %v3951_v37 = vmul.f32 %v5992_v60, %v3935_v50 }
 0x789   :  { %v3980_v49 = vadd.f32 %v3968_v42, %v2038_v11  ;;  %v3969_v14 = vadd.f32 %v5997_v45, %v3953_v26 }
 0x78a   :  { %v3978_v8 = vadd.f32 %v3966_v41, %v2036_v6  ;;  %v3967_v12 = vadd.f32 %v5997_v45, %v3951_v37  ;;  %v5128_v46 = vpop.f32.mrb[40].mxu0 }
 0x78b   :  { %v3992_v0 = vmax.f32 %v3980_v49, 0.0  ;;  %v3981_v17 = vadd.f32 %v3969_v14, %v2039_v39  ;;  %v3887_v18 = vpop.f32.mrb[41].mxu0  ;;  %v3940_v24 = vadd.f32 %v5128_v46, %v3933_v53 }
 0x78c   :  { %v3990_v62 = vmax.f32 %v3978_v8, 0.0  ;;  %v3979_v20 = vadd.f32 %v3967_v12, %v2037_v7  ;;  %v3938_v63 = vadd.f32 %v3933_v53, %v3887_v18  ;;  %v5129_v11 = vpop.f32.mrb[42].mxu0 }
 0x78d   :  { %v3993_v30 = vmax.f32 %v3981_v17, 0.0  ;;  %v3941_v31 = vadd.f32 %v5129_v11, %v3933_v53  ;;  %v3890_v36 = vpop.f32.mrb[43].mxu0  ;;  %v3956_v10 = vmul.f32 %v5992_v60, %v3940_v24 }
 0x78e   :  { %v4005_v43 = vmax.f32 %v3990_v62, %v3992_v0  ;;  %v3991_v6 = vmax.f32 %v3979_v20, 0.0  ;;  %v3954_v61 = vmul.f32 %v5992_v60, %v3938_v63  ;;  %v3939_v44 = vadd.f32 %v3933_v53, %v3890_v36 }
 0x78f   :  { %v3957_v1 = vmul.f32 %v5992_v60, %v3941_v31  ;;  %v3972_v55 = vadd.f32 %v5997_v45, %v3956_v10 }
 0x790   :  { %v4002_v13 = vmax.f32 %v3991_v6, %v3993_v30  ;;  %v3970_v39 = vadd.f32 %v5997_v45, %v3954_v61  ;;  %v3955_v38 = vmul.f32 %v5992_v60, %v3939_v44 }
 0x791   :  { %v3973_v4 = vadd.f32 %v5997_v45, %v3957_v1  ;;  %v3984_v23 = vadd.f32 %v3972_v55, %v2042_v34 }
 0x792   :  { %v3982_v7 = vadd.f32 %v3970_v39, %v2040_v28  ;;  %v3971_v35 = vadd.f32 %v5997_v45, %v3955_v38  ;;  %v5132_v47 = vpop.f32.mrb[44].mxu0 }
 0x793   :  { %v3944_v48 = vadd.f32 %v5132_v47, %v3933_v53  ;;  %v3903_v52 = vpop.f32.mrb[45].mxu0  ;;  %v3985_v14 = vadd.f32 %v3973_v4, %v2043_v25  ;;  %v3996_v34 = vmax.f32 %v3984_v23, 0.0 }
 0x794   :  { %v3994_v15 = vmax.f32 %v3982_v7, 0.0  ;;  %v3983_v56 = vadd.f32 %v3971_v35, %v2041_v29  ;;  %v3942_v16 = vadd.f32 %v3933_v53, %v3903_v52  ;;  %v5133_v32 = vpop.f32.mrb[46].mxu0 }
 0x795   :  { %v3960_v27 = vmul.f32 %v5992_v60, %v3944_v48  ;;  %v3945_v5 = vadd.f32 %v5133_v32, %v3933_v53  ;;  %v3906_v19 = vpop.f32.mrb[47].mxu0  ;;  %v3997_v0 = vmax.f32 %v3985_v14, 0.0 }
 0x796   :  { %v4006_v28 = vmax.f32 %v4005_v43, %v3994_v15  ;;  %v3995_v9 = vmax.f32 %v3983_v56, 0.0  ;;  %v3958_v40 = vmul.f32 %v5992_v60, %v3942_v16  ;;  %v3943_v50 = vadd.f32 %v3933_v53, %v3906_v19 }
 0x797   :  { %v3976_v42 = vadd.f32 %v5997_v45, %v3960_v27  ;;  %v3961_v26 = vmul.f32 %v5992_v60, %v3945_v5 }
 0x798   :  { %4008 = vst [vmem:[#allocation6 + $0x8] sm:$0xff] %v4006_v28  ;;  %v4003_v29 = vmax.f32 %v4002_v13, %v3995_v9  ;;  %v3974_v41 = vadd.f32 %v5997_v45, %v3958_v40  ;;  %v3959_v37 = vmul.f32 %v5992_v60, %v3943_v50 }
 0x799   :  { %v3977_v49 = vadd.f32 %v5997_v45, %v3961_v26  ;;  %v3988_v53 = vadd.f32 %v3976_v42, %v2046_v33 }
 0x79a   :  { %4004 = vst [vmem:[#allocation6] sm:$0xff] %v4003_v29  ;;  %v3986_v8 = vadd.f32 %v3974_v41, %v2044_v2  ;;  %v3975_v21 = vadd.f32 %v5997_v45, %v3959_v37 }
 0x79b   :  { %v3989_v46 = vadd.f32 %v3977_v49, %v2047_v58  ;;  %v4000_v22 = vmax.f32 %v3988_v53, 0.0 }
 0x79c   :  { %v3998_v12 = vmax.f32 %v3986_v8, 0.0  ;;  %v3987_v60 = vadd.f32 %v3975_v21, %v2045_v59 }
 0x79d   :  { %v4001_v33 = vmax.f32 %v3989_v46, 0.0 }
 0x79e   :  { %v4013_v25 = vmax.f32 %v3996_v34, %v3998_v12  ;;  %v3999_v17 = vmax.f32 %v3987_v60, 0.0 }
 0x7a0   :  { %v4014_v3 = vmax.f32 %v4013_v25, %v4000_v22  ;;  %v4009_v54 = vmax.f32 %v3997_v0, %v3999_v17 }
 0x7a2   :  { %4016 = vst [vmem:[#allocation6 + $0x18] sm:$0xff] %v4014_v3  ;;  %v4010_v2 = vmax.f32 %v4009_v54, %v4001_v33 }
 0x7a4   :  { %4012 = vst [vmem:[#allocation6 + $0x10] sm:$0xff] %v4010_v2 }
 0x7a5   :  { %5527 = shalt.err (!%p5524_p12)
}
 0x7a6   :  { %s5528_s28 = scalar_lea.hbm %s6065_s6, 512 }
 0x7a7   :  { %p5529_p13 = scmp.ne.s32.totalorder %s6065_s6, %s5528_s28  ;;  %p5532_p0 = scmp.lt.u32.totalorder %s5528_s28, %s6065_s6 }
 0x7a9   :  { %p5534_p1 = pnand %p5532_p0, %p5529_p13 }
 0x7ab   :  { %5537 = shalt.err (!%p5534_p1)
}
 0x7ac   :  { %s5548_s8 = smov 128   ;;  %s5549_s9 = smov 8  }
 0x7ad   :  { %4028 = dma.vmem_to_hbm [thread:$0]  %s4023_s24, 512, %s6065_s6, [#allocation5], %s5548_s8, %s5548_s8, %s5549_s9  }
 0x7ae   :  { %5540 = dma.done.wait [#allocation5], 512  }
 0x7af   :  { %5541 = vsyncadd [#allocation5], 4294966784 }
 0x7b0   :  { %4032 = vsyncpa [#allocation4], 1 }
 0x7b1   :  { %4033 = vsyncpa [#allocation5], 1 }

</bundles_post_ra>
